<compile_context>
chip_gen: v7x
topology: tpu7x:2x2x1
jax: 0.10.0
libtpu: 0.0.40
codegen_flags: <defaults>
</compile_context>

<pallas_src>
import functools
import math

import jax
import jax.numpy as jnp
from jax import lax
from jax.experimental import pallas as pl
from jax.experimental.pallas import tpu as pltpu

F32 = jnp.float32
BF16 = jnp.bfloat16

# Explicit scoped-VMEM budget: >= default on v6e/v7x, raises the v5e default.
# TODO(synk): re-size per production N / C once real model sizes are known.
_VMEM_LIMIT = 32 * 1024 * 1024


# ----------------------------- in-kernel helpers ----------------------------

def _leaky(x, slope=0.2):
    return jnp.where(x >= 0, x, slope * x)


def _softmax_rows(e, exact=False):
    # Row softmax; the exact divide is used where the result feeds top_k.
    e = e - jnp.max(e, axis=-1, keepdims=True)
    p = jnp.exp(e)
    s = jnp.sum(p, axis=-1, keepdims=True)
    if exact:
        return p / s
    return p * pl.reciprocal(s, approx=True)


def _tile(n, pref):
    # pref is a multiple of 128 (lane-aligned); n <= pref uses the full dim,
    # otherwise pl.cdiv gives a padded last tile (masked where it matters).
    return n if n <= pref else pref


# --------------------- fused embedding + backbone kernel --------------------

def _embed_backbone_kernel(x_ref, we1_ref, we2_ref, w1_ref, w2_ref, w3_ref,
                           w4_ref, emb_ref, feat_ref):
    # x: (1, 3, tn) -> embedded (1, C, tn) and backbone feature (1, C, tn).
    x = x_ref[0].astype(BF16)
    h = _leaky(jnp.dot(we1_ref[...], x, preferred_element_type=F32))
    e = _leaky(jnp.dot(we2_ref[...], h.astype(BF16), preferred_element_type=F32))
    emb_ref[0] = e
    h = _leaky(jnp.dot(w1_ref[...], e.astype(BF16), preferred_element_type=F32))
    f = e + jnp.dot(w2_ref[...], h.astype(BF16), preferred_element_type=F32)
    h = _leaky(jnp.dot(w3_ref[...], f.astype(BF16), preferred_element_type=F32))
    feat_ref[0] = f + jnp.dot(w4_ref[...], h.astype(BF16),
                              preferred_element_type=F32)


def embed_backbone(x3, emb_p, bb_p, *, point_tile=512):
    # TODO(synk): PcdEmbedding / PcdBackbone sources not provided; implemented
    # as a 3->H->C point-wise MLP + two residual point-wise conv blocks
    # (BatchNorm = eval-mode identity, conv bias omitted).
    B, Ci, N = x3.shape
    H = emb_p['w1'].shape[0]
    C = emb_p['w2'].shape[0]
    tn = _tile(N, point_tile)
    nt = pl.cdiv(N, tn)
    return pl.pallas_call(
        _embed_backbone_kernel,
        out_shape=(jax.ShapeDtypeStruct((B, C, N), F32),
                   jax.ShapeDtypeStruct((B, C, N), F32)),
        grid=(B, nt),
        in_specs=[pl.BlockSpec((1, Ci, tn), lambda b, t: (b, 0, t)),
                  pl.BlockSpec((H, Ci), lambda b, t: (0, 0)),
                  pl.BlockSpec((C, H), lambda b, t: (0, 0)),
                  pl.BlockSpec((C, C), lambda b, t: (0, 0)),
                  pl.BlockSpec((C, C), lambda b, t: (0, 0)),
                  pl.BlockSpec((C, C), lambda b, t: (0, 0)),
                  pl.BlockSpec((C, C), lambda b, t: (0, 0))],
        out_specs=(pl.BlockSpec((1, C, tn), lambda b, t: (b, 0, t)),
                   pl.BlockSpec((1, C, tn), lambda b, t: (b, 0, t))),
        compiler_params=pltpu.CompilerParams(
            dimension_semantics=("parallel", "parallel"),
            vmem_limit_bytes=_VMEM_LIMIT),
    )(x3, emb_p['w1'], emb_p['w2'],
      bb_p['w1'], bb_p['w2'], bb_p['w3'], bb_p['w4'])


# ------------------ GlobalDownSample (APES, attention-based) ----------------
# Stage 1: query-tiled attention; only the per-key column sums ("selection"
#          importance) are accumulated — no (N, N) matrix in VMEM or HBM.
#          K = Wk @ x is hoisted into a VMEM scratch computed once per batch.
# Stage 2: after top-k, recompute attention for the selected query points
#          (also query-tiled) and fuse the V @ A^T product into the kernel.

def _ds_select_kernel(xq_ref, x_ref, wq_ref, wk_ref, sel_ref, k_scr,
                      *, inv_sqrt_c, n_real, tq):
    r = pl.program_id(1)

    @pl.when(r == 0)
    def _init():
        k_scr[...] = jnp.dot(wk_ref[...], x_ref[0].astype(BF16),
                             preferred_element_type=F32).astype(BF16)
        sel_ref[...] = jnp.zeros_like(sel_ref)

    q = jnp.dot(wq_ref[...], xq_ref[0].astype(BF16),
                preferred_element_type=F32)                          # (C, tq)
    e = lax.dot_general(q.astype(BF16), k_scr[...],
                        (((0,), (0,)), ((), ())),
                        preferred_element_type=F32) * inv_sqrt_c     # (tq, N)
    a = _softmax_rows(e, exact=True)          # exact divide: feeds lax.top_k
    row_ids = r * tq + lax.broadcasted_iota(jnp.int32, (tq, 1), 0)
    a = jnp.where(row_ids < n_real, a, 0.0)   # mask padded query rows
    sel_ref[0] += jnp.sum(a, axis=0, keepdims=True)


def _ds_gather_kernel(xsel_ref, x_ref, wq_ref, wk_ref, wv_ref, o_ref,
                      k_scr, v_scr, *, inv_sqrt_c):
    s = pl.program_id(1)

    @pl.when(s == 0)
    def _init():
        xb = x_ref[0].astype(BF16)
        k_scr[...] = jnp.dot(wk_ref[...], xb,
                             preferred_element_type=F32).astype(BF16)
        v_scr[...] = jnp.dot(wv_ref[...], xb,
                             preferred_element_type=F32).astype(BF16)

    q = jnp.dot(wq_ref[...], xsel_ref[0].astype(BF16),
                preferred_element_type=F32)                          # (C, ts)
    e = lax.dot_general(q.astype(BF16), k_scr[...],
                        (((0,), (0,)), ((), ())),
                        preferred_element_type=F32) * inv_sqrt_c     # (ts, N)
    a = _softmax_rows(e)
    o_ref[0] = lax.dot_general(v_scr[...], a.astype(BF16),
                               (((1,), (1,)), ((), ())),
                               preferred_element_type=F32)           # (C, ts)


def global_downsample(x, p, npts, *, q_tile=256):
    # TODO(synk): GlobalDownSample source not provided; APES-style: per-key
    # importance = column sums of the self-attention map, top-k selection,
    # then cross-attention from the selected queries onto all points.
    B, C, N = x.shape
    inv_sqrt_c = 1.0 / math.sqrt(C)

    tq = _tile(N, q_tile)
    nt = pl.cdiv(N, tq)
    sel = pl.pallas_call(
        functools.partial(_ds_select_kernel, inv_sqrt_c=inv_sqrt_c,
                          n_real=N, tq=tq),
        out_shape=jax.ShapeDtypeStruct((B, 1, N), F32),
        grid=(B, nt),
        in_specs=[pl.BlockSpec((1, C, tq), lambda b, r: (b, 0, r)),
                  pl.BlockSpec((1, C, N), lambda b, r: (b, 0, 0)),
                  pl.BlockSpec((C, C), lambda b, r: (0, 0)),
                  pl.BlockSpec((C, C), lambda b, r: (0, 0))],
        out_specs=pl.BlockSpec((1, 1, N), lambda b, r: (b, 0, 0)),
        scratch_shapes=[pltpu.VMEM((C, N), BF16)],
        compiler_params=pltpu.CompilerParams(
            dimension_semantics=("parallel", "arbitrary"),
            vmem_limit_bytes=_VMEM_LIMIT),
    )(x, x, p['q'], p['k'])[:, 0, :]                                 # (B, N)

    _, idx = lax.top_k(sel, npts)                                    # (B, npts)
    # TODO(synk): selected-column gather kept in plain JAX (tiny (B, C, npts)
    # tensor); a scalar-prefetch in-kernel lane gather would save one HBM trip.
    x_sel = jnp.take_along_axis(x, idx[:, None, :], axis=2)          # (B, C, npts)

    ts = _tile(npts, q_tile)
    ns = pl.cdiv(npts, ts)
    return pl.pallas_call(
        functools.partial(_ds_gather_kernel, inv_sqrt_c=inv_sqrt_c),
        out_shape=jax.ShapeDtypeStruct((B, C, npts), F32),
        grid=(B, ns),
        in_specs=[pl.BlockSpec((1, C, ts), lambda b, s: (b, 0, s)),
                  pl.BlockSpec((1, C, N), lambda b, s: (b, 0, 0)),
                  pl.BlockSpec((C, C), lambda b, s: (0, 0)),
                  pl.BlockSpec((C, C), lambda b, s: (0, 0)),
                  pl.BlockSpec((C, C), lambda b, s: (0, 0))],
        out_specs=pl.BlockSpec((1, C, ts), lambda b, s: (b, 0, s)),
        scratch_shapes=[pltpu.VMEM((C, N), BF16), pltpu.VMEM((C, N), BF16)],
        compiler_params=pltpu.CompilerParams(
            dimension_semantics=("parallel", "arbitrary"),
            vmem_limit_bytes=_VMEM_LIMIT),
    )(x_sel, x, p['q'], p['k'], p['v'])


# ------------------------- fused N2PAttention block -------------------------

def _n2p_kernel(xq_ref, x_ref, wq_ref, wkv_ref, wff1_ref, wff2_ref, o_ref,
                kv_scr, *, heads):
    # TODO(synk): APES N2PAttention uses kNN grouping; implemented as global
    # multi-head self-attention + FFN with residuals (BatchNorm = identity).
    r = pl.program_id(1)
    C = xq_ref.shape[1]
    D = C // heads
    inv_sqrt_d = 1.0 / math.sqrt(D)

    @pl.when(r == 0)
    def _init():
        # K|V for the full point set, computed once per batch element.
        kv_scr[...] = jnp.dot(wkv_ref[...], x_ref[0].astype(BF16),
                              preferred_element_type=F32)

    x_tile = xq_ref[0]                                               # (C, tq)
    q = jnp.dot(wq_ref[...], x_tile.astype(BF16),
                preferred_element_type=F32)                          # (C, tq)

    # Heads unrolled with static sublane slices (no reshape across tiles).
    # TODO(synk): at production sizes pad C to 128 / per-head D to >=32.
    outs = []
    for h in range(heads):
        qh = q[h * D:(h + 1) * D].astype(BF16)                       # (D, tq)
        kh = kv_scr[h * D:(h + 1) * D].astype(BF16)                  # (D, M)
        vh = kv_scr[C + h * D:C + (h + 1) * D].astype(BF16)          # (D, M)
        e = lax.dot_general(qh, kh, (((0,), (0,)), ((), ())),
                            preferred_element_type=F32) * inv_sqrt_d
        a = _softmax_rows(e)                                         # (tq, M)
        outs.append(lax.dot_general(vh, a.astype(BF16),
                                    (((1,), (1,)), ((), ())),
                                    preferred_element_type=F32))     # (D, tq)
    attn = jnp.concatenate(outs, axis=0)                             # (C, tq)

    y = x_tile + attn
    hdn = _leaky(jnp.dot(wff1_ref[...], y.astype(BF16),
                         preferred_element_type=F32))
    o_ref[0] = y + jnp.dot(wff2_ref[...], hdn.astype(BF16),
                           preferred_element_type=F32)


def n2p_attention(x, p, heads=4, *, q_tile=256):
    B, C, M = x.shape
    tq = _tile(M, q_tile)
    nt = pl.cdiv(M, tq)
    return pl.pallas_call(
        functools.partial(_n2p_kernel, heads=heads),
        out_shape=jax.ShapeDtypeStruct((B, C, M), F32),
        grid=(B, nt),
        in_specs=[pl.BlockSpec((1, C, tq), lambda b, r: (b, 0, r)),
                  pl.BlockSpec((1, C, M), lambda b, r: (b, 0, 0)),
                  pl.BlockSpec((C, C), lambda b, r: (0, 0)),
                  pl.BlockSpec((2 * C, C), lambda b, r: (0, 0)),
                  pl.BlockSpec((2 * C, C), lambda b, r: (0, 0)),
                  pl.BlockSpec((C, 2 * C), lambda b, r: (0, 0))],
        out_specs=pl.BlockSpec((1, C, tq), lambda b, r: (b, 0, r)),
        scratch_shapes=[pltpu.VMEM((2 * C, M), F32)],
        compiler_params=pltpu.CompilerParams(
            dimension_semantics=("parallel", "arbitrary"),
            vmem_limit_bytes=_VMEM_LIMIT),
    )(x, x, p['wq'], p['wkv'], p['ff1'], p['ff2'])


# ---------------------- fused UpSample (cross-attention) --------------------

def _upsample_kernel(xu_ref, xd_ref, wq_ref, wkv_ref, wskip_ref, o_ref,
                     kv_scr, *, inv_sqrt_c):
    r = pl.program_id(1)
    C = xu_ref.shape[1]

    @pl.when(r == 0)
    def _init():
        kv_scr[...] = jnp.dot(wkv_ref[...], xd_ref[0].astype(BF16),
                              preferred_element_type=F32).astype(BF16)

    xu = xu_ref[0]                                                   # (C, tq)
    q = jnp.dot(wq_ref[...], xu.astype(BF16), preferred_element_type=F32)
    k = kv_scr[0:C]
    v = kv_scr[C:2 * C]
    e = lax.dot_general(q.astype(BF16), k, (((0,), (0,)), ((), ())),
                        preferred_element_type=F32) * inv_sqrt_c     # (tq, Nk)
    a = _softmax_rows(e)
    attn = lax.dot_general(v, a.astype(BF16), (((1,), (1,)), ((), ())),
                           preferred_element_type=F32)               # (C, tq)
    o_ref[0] = jnp.dot(wskip_ref[...], xu.astype(BF16),
                       preferred_element_type=F32) + attn


def upsample(x_up, x_down, p, *, q_tile=256):
    # TODO(synk): UpSample source not provided; implemented as cross-attention
    # (queries from x_up, keys/values from x_down) plus a skip projection.
    B, C, Nq = x_up.shape
    Nk = x_down.shape[2]
    inv_sqrt_c = 1.0 / math.sqrt(C)
    tq = _tile(Nq, q_tile)
    nt = pl.cdiv(Nq, tq)
    return pl.pallas_call(
        functools.partial(_upsample_kernel, inv_sqrt_c=inv_sqrt_c),
        out_shape=jax.ShapeDtypeStruct((B, C, Nq), F32),
        grid=(B, nt),
        in_specs=[pl.BlockSpec((1, C, tq), lambda b, r: (b, 0, r)),
                  pl.BlockSpec((1, C, Nk), lambda b, r: (b, 0, 0)),
                  pl.BlockSpec((C, C), lambda b, r: (0, 0)),
                  pl.BlockSpec((2 * C, C), lambda b, r: (0, 0)),
                  pl.BlockSpec((C, C), lambda b, r: (0, 0))],
        out_specs=pl.BlockSpec((1, C, tq), lambda b, r: (b, 0, r)),
        scratch_shapes=[pltpu.VMEM((2 * C, Nk), BF16)],
        compiler_params=pltpu.CompilerParams(
            dimension_semantics=("parallel", "arbitrary"),
            vmem_limit_bytes=_VMEM_LIMIT),
    )(x_up, x_down, p['wq'], p['wkv'], p['wskip'])


# ------------- final UpSample + global max-pool + MLP head (fused) ----------

def _upsample_pool_head_kernel(xu_ref, xd_ref, wq_ref, wkv_ref, wskip_ref,
                               w1_ref, b1_ref, w2_ref, b2_ref, o_ref,
                               kv_scr, pool_scr, *, inv_sqrt_c, n_real, tq):
    r = pl.program_id(1)
    C = xu_ref.shape[1]

    @pl.when(r == 0)
    def _init():
        kv_scr[...] = jnp.dot(wkv_ref[...], xd_ref[0].astype(BF16),
                              preferred_element_type=F32).astype(BF16)
        pool_scr[...] = jnp.full_like(pool_scr, -jnp.inf)
        o_ref[...] = jnp.zeros_like(o_ref)

    xu = xu_ref[0]                                                   # (C, tq)
    q = jnp.dot(wq_ref[...], xu.astype(BF16), preferred_element_type=F32)
    k = kv_scr[0:C]
    v = kv_scr[C:2 * C]
    e = lax.dot_general(q.astype(BF16), k, (((0,), (0,)), ((), ())),
                        preferred_element_type=F32) * inv_sqrt_c
    a = _softmax_rows(e)
    attn = lax.dot_general(v, a.astype(BF16), (((1,), (1,)), ((), ())),
                           preferred_element_type=F32)
    feat = jnp.dot(wskip_ref[...], xu.astype(BF16),
                   preferred_element_type=F32) + attn                # (C, tq)

    # Running global max-pool over query tiles (padded columns masked off).
    col_ids = r * tq + lax.broadcasted_iota(jnp.int32, (1, tq), 1)
    feat_m = jnp.where(col_ids < n_real, feat, -jnp.inf)
    pool_scr[...] = jnp.maximum(pool_scr[...],
                                jnp.max(feat_m, axis=1, keepdims=True))

    @pl.when(r == pl.num_programs(1) - 1)
    def _head():
        # TODO(synk): MLPHead source not provided; implemented as global
        # max-pool + 2-layer MLP (ReLU), fused here to save a kernel launch.
        pooled = pool_scr[...]                                       # (C, 1)
        h = jnp.maximum(jnp.dot(w1_ref[...], pooled.astype(BF16),
                                preferred_element_type=F32) + b1_ref[...], 0.0)
        o_ref[0] = jnp.dot(w2_ref[...], h.astype(BF16),
                           preferred_element_type=F32) + b2_ref[...]


def upsample_pool_head(x_up, x_down, p_up, p_head, *, q_tile=256):
    B, C, Nq = x_up.shape
    Nk = x_down.shape[2]
    Co = p_head['w2'].shape[0]
    inv_sqrt_c = 1.0 / math.sqrt(C)
    tq = _tile(Nq, q_tile)
    nt = pl.cdiv(Nq, tq)
    out = pl.pallas_call(
        functools.partial(_upsample_pool_head_kernel, inv_sqrt_c=inv_sqrt_c,
                          n_real=Nq, tq=tq),
        out_shape=jax.ShapeDtypeStruct((B, Co, 1), F32),
        grid=(B, nt),
        in_specs=[pl.BlockSpec((1, C, tq), lambda b, r: (b, 0, r)),
                  pl.BlockSpec((1, C, Nk), lambda b, r: (b, 0, 0)),
                  pl.BlockSpec((C, C), lambda b, r: (0, 0)),
                  pl.BlockSpec((2 * C, C), lambda b, r: (0, 0)),
                  pl.BlockSpec((C, C), lambda b, r: (0, 0)),
                  pl.BlockSpec((C, C), lambda b, r: (0, 0)),
                  pl.BlockSpec((C, 1), lambda b, r: (0, 0)),
                  pl.BlockSpec((Co, C), lambda b, r: (0, 0)),
                  pl.BlockSpec((Co, 1), lambda b, r: (0, 0))],
        out_specs=pl.BlockSpec((1, Co, 1), lambda b, r: (b, 0, 0)),
        scratch_shapes=[pltpu.VMEM((2 * C, Nk), BF16),
                        pltpu.VMEM((C, 1), F32)],
        compiler_params=pltpu.CompilerParams(
            dimension_semantics=("parallel", "arbitrary"),
            vmem_limit_bytes=_VMEM_LIMIT),
    )(x_up, x_down, p_up['wq'], p_up['wkv'], p_up['wskip'],
      p_head['w1'], p_head['b1'], p_head['w2'], p_head['b2'])
    return out[:, :, 0]                                              # (B, Co)


# --------------------------------- full model --------------------------------

def model_forward(params, pcd, prep_points, *, npts_ds, heads=4):
    x3 = jnp.transpose(pcd, (0, 2, 1))                  # (B, 3, N)
    p3 = jnp.transpose(prep_points, (0, 2, 1))          # (B, 3, Np)

    x_emb, pcd_feat = embed_backbone(x3, params['embedding'],
                                     params['pcd_backbone'])
    _, prep_feat = embed_backbone(p3, params['embedding'],
                                  params['prep_backbone'])

    f1 = global_downsample(pcd_feat, params['ds1'], npts_ds)   # (B, C, npts)
    f1 = n2p_attention(f1, params['n2p'], heads=heads)         # (B, C, npts)
    f1 = upsample(f1, prep_feat, params['upsample'])           # shared UpSample
    temp = upsample(x_emb, f1, params['upsample'])             # (B, C, N)
    out = upsample_pool_head(temp, prep_feat, params['upsample'],
                             params['head'])                   # (B, M*3)

    B = out.shape[0]
    M = params['template_params'].shape[1]
    return params['template_params'] + out.reshape(B, M, 3)


def init_params(key, C=32, emb_hidden=8, M=8):
    # Weights stored in bf16 (MXU operands); biases / template kept f32.
    # TODO(synk): for production pad C (and per-head D) to 128 so MXU
    # contractions run at full depth; toy sizes kept small for the demo.
    ks = iter(jax.random.split(key, 40))

    def w(shape, scale=0.1, dtype=BF16):
        return (scale * jax.random.normal(next(ks), shape, F32)).astype(dtype)

    return {
        'embedding': {'w1': w((emb_hidden, 3)), 'w2': w((C, emb_hidden))},
        'pcd_backbone': {'w1': w((C, C)), 'w2': w((C, C)),
                         'w3': w((C, C)), 'w4': w((C, C))},
        'prep_backbone': {'w1': w((C, C)), 'w2': w((C, C)),
                          'w3': w((C, C)), 'w4': w((C, C))},
        'ds1': {'q': w((C, C)), 'k': w((C, C)), 'v': w((C, C))},
        'n2p': {'wq': w((C, C)),
                'wkv': jnp.concatenate([w((C, C)), w((C, C))], 0),
                'ff1': w((2 * C, C)), 'ff2': w((C, 2 * C))},
        'upsample': {'wq': w((C, C)),
                     'wkv': jnp.concatenate([w((C, C)), w((C, C))], 0),
                     'wskip': w((C, C))},
        'head': {'w1': w((C, C)), 'b1': jnp.zeros((C, 1), F32),
                 'w2': w((M * 3, C)), 'b2': jnp.zeros((M * 3, 1), F32)},
        'template_params': w((1, M, 3), 1.0, F32),   # registered buffer
    }


if __name__ == "__main__":
    key = jax.random.PRNGKey(0)
    kp, kx, ky = jax.random.split(key, 3)

    C, M, NPTS = 32, 8, 8          # GlobalDownSample(2048) scaled to 8 for N=16
    params = init_params(kp, C=C, emb_hidden=8, M=M)

    B, N, Np = 2, 16, 16
    pcd = jax.random.normal(kx, (B, N, 3), F32)
    prep_points = jax.random.normal(ky, (B, Np, 3), F32)

    fwd = jax.jit(functools.partial(model_forward, npts_ds=NPTS, heads=4))
    out = jax.block_until_ready(fwd(params, pcd, prep_points))

    assert out.shape == (B, M, 3), out.shape
    assert bool(jnp.all(jnp.isfinite(out)))
    print("KERNEL_OK")
</pallas_src>

<mosaic_0001>
module attributes {stable_mosaic.version = 11 : i64} {
  func.func @_embed_backbone_kernel(%arg0: i32, %arg1: i32, %arg2: memref<1x3x16xf32, #tpu.memory_space<vmem>>, %arg3: memref<8x3xbf16, #tpu.memory_space<vmem>>, %arg4: memref<32x8xbf16, #tpu.memory_space<vmem>>, %arg5: memref<32x32xbf16, #tpu.memory_space<vmem>>, %arg6: memref<32x32xbf16, #tpu.memory_space<vmem>>, %arg7: memref<32x32xbf16, #tpu.memory_space<vmem>>, %arg8: memref<32x32xbf16, #tpu.memory_space<vmem>>, %arg9: memref<1x32x16xf32, #tpu.memory_space<vmem>>, %arg10: memref<1x32x16xf32, #tpu.memory_space<vmem>>) attributes {dimension_semantics = [#tpu.dimension_semantics<parallel>, #tpu.dimension_semantics<parallel>], iteration_bounds = array<i64: 2, 1>, scalar_prefetch = 0 : i64, scratch_operands = 0 : i64, tpu.core_type = #tpu.core_type<tc>, window_params = [{transform_indices = @transform_0, window_bounds = array<i64: 1, 3, 16>}, {pipeline_mode = #tpu.pipeline_mode<synchronous>, transform_indices = @transform_1, window_bounds = array<i64: 8, 3>}, {pipeline_mode = #tpu.pipeline_mode<synchronous>, transform_indices = @transform_2, window_bounds = array<i64: 32, 8>}, {pipeline_mode = #tpu.pipeline_mode<synchronous>, transform_indices = @transform_3, window_bounds = array<i64: 32, 32>}, {pipeline_mode = #tpu.pipeline_mode<synchronous>, transform_indices = @transform_4, window_bounds = array<i64: 32, 32>}, {pipeline_mode = #tpu.pipeline_mode<synchronous>, transform_indices = @transform_5, window_bounds = array<i64: 32, 32>}, {pipeline_mode = #tpu.pipeline_mode<synchronous>, transform_indices = @transform_6, window_bounds = array<i64: 32, 32>}, {transform_indices = @transform_7, window_bounds = array<i64: 1, 32, 16>}, {transform_indices = @transform_8, window_bounds = array<i64: 1, 32, 16>}]} {
    %c0 = arith.constant 0 : index
    %c0_0 = arith.constant 0 : index
    %c0_1 = arith.constant 0 : index
    %0 = vector.load %arg2[%c0, %c0_0, %c0_1] : memref<1x3x16xf32, #tpu.memory_space<vmem>>, vector<1x3x16xf32>
    %1 = vector.shape_cast %0 : vector<1x3x16xf32> to vector<3x16xf32>
    %2 = arith.truncf %1 : vector<3x16xf32> to vector<3x16xbf16>
    %c0_2 = arith.constant 0 : index
    %c0_3 = arith.constant 0 : index
    %3 = vector.load %arg3[%c0_2, %c0_3] : memref<8x3xbf16, #tpu.memory_space<vmem>>, vector<8x3xbf16>
    %cst = arith.constant dense<0.000000e+00> : vector<8x16xf32>
    %4 = tpu.matmul %3, %2, %cst {dimension_numbers = #tpu.dot_dimension_numbers<[1], [0], [0], [1], [0, 0, 1, 1], [], []>} : vector<8x3xbf16>, vector<3x16xbf16>, vector<8x16xf32> -> vector<8x16xf32>
    %cst_4 = arith.constant 0.000000e+00 : f32
    %5 = vector.broadcast %cst_4 : f32 to vector<8x16xf32>
    %6 = arith.cmpf oge, %4, %5 : vector<8x16xf32>
    %cst_5 = arith.constant 2.000000e-01 : f32
    %7 = vector.broadcast %cst_5 : f32 to vector<8x16xf32>
    %8 = arith.mulf %7, %4 : vector<8x16xf32>
    %9 = arith.select %6, %4, %8 : vector<8x16xi1>, vector<8x16xf32>
    %c0_6 = arith.constant 0 : index
    %c0_7 = arith.constant 0 : index
    %10 = vector.load %arg4[%c0_6, %c0_7] : memref<32x8xbf16, #tpu.memory_space<vmem>>, vector<32x8xbf16>
    %11 = arith.truncf %9 : vector<8x16xf32> to vector<8x16xbf16>
    %cst_8 = arith.constant dense<0.000000e+00> : vector<32x16xf32>
    %12 = tpu.matmul %10, %11, %cst_8 {dimension_numbers = #tpu.dot_dimension_numbers<[1], [0], [0], [1], [0, 0, 1, 1], [], []>} : vector<32x8xbf16>, vector<8x16xbf16>, vector<32x16xf32> -> vector<32x16xf32>
    %cst_9 = arith.constant 0.000000e+00 : f32
    %13 = vector.broadcast %cst_9 : f32 to vector<32x16xf32>
    %14 = arith.cmpf oge, %12, %13 : vector<32x16xf32>
    %cst_10 = arith.constant 2.000000e-01 : f32
    %15 = vector.broadcast %cst_10 : f32 to vector<32x16xf32>
    %16 = arith.mulf %15, %12 : vector<32x16xf32>
    %17 = arith.select %14, %12, %16 : vector<32x16xi1>, vector<32x16xf32>
    %c0_11 = arith.constant 0 : index
    %c0_12 = arith.constant 0 : index
    %c0_13 = arith.constant 0 : index
    %18 = vector.load %arg9[%c0_11, %c0_12, %c0_13] : memref<1x32x16xf32, #tpu.memory_space<vmem>>, vector<1x32x16xf32>
    %19 = vector.shape_cast %18 : vector<1x32x16xf32> to vector<32x16xf32>
    %20 = vector.shape_cast %17 : vector<32x16xf32> to vector<1x32x16xf32>
    tpu.vector_store %arg9[%c0_11, %c0_12, %c0_13], %20 {strides = array<i32>} : memref<1x32x16xf32, #tpu.memory_space<vmem>>, vector<1x32x16xf32>,
    %c0_14 = arith.constant 0 : index
    %c0_15 = arith.constant 0 : index
    %21 = vector.load %arg5[%c0_14, %c0_15] : memref<32x32xbf16, #tpu.memory_space<vmem>>, vector<32x32xbf16>
    %22 = arith.truncf %17 : vector<32x16xf32> to vector<32x16xbf16>
    %cst_16 = arith.constant dense<0.000000e+00> : vector<32x16xf32>
    %23 = tpu.matmul %21, %22, %cst_16 {dimension_numbers = #tpu.dot_dimension_numbers<[1], [0], [0], [1], [0, 0, 1, 1], [], []>} : vector<32x32xbf16>, vector<32x16xbf16>, vector<32x16xf32> -> vector<32x16xf32>
    %cst_17 = arith.constant 0.000000e+00 : f32
    %24 = vector.broadcast %cst_17 : f32 to vector<32x16xf32>
    %25 = arith.cmpf oge, %23, %24 : vector<32x16xf32>
    %cst_18 = arith.constant 2.000000e-01 : f32
    %26 = vector.broadcast %cst_18 : f32 to vector<32x16xf32>
    %27 = arith.mulf %26, %23 : vector<32x16xf32>
    %28 = arith.select %25, %23, %27 : vector<32x16xi1>, vector<32x16xf32>
    %c0_19 = arith.constant 0 : index
    %c0_20 = arith.constant 0 : index
    %29 = vector.load %arg6[%c0_19, %c0_20] : memref<32x32xbf16, #tpu.memory_space<vmem>>, vector<32x32xbf16>
    %30 = arith.truncf %28 : vector<32x16xf32> to vector<32x16xbf16>
    %cst_21 = arith.constant dense<0.000000e+00> : vector<32x16xf32>
    %31 = tpu.matmul %29, %30, %cst_21 {dimension_numbers = #tpu.dot_dimension_numbers<[1], [0], [0], [1], [0, 0, 1, 1], [], []>} : vector<32x32xbf16>, vector<32x16xbf16>, vector<32x16xf32> -> vector<32x16xf32>
    %32 = arith.addf %17, %31 : vector<32x16xf32>
    %c0_22 = arith.constant 0 : index
    %c0_23 = arith.constant 0 : index
    %33 = vector.load %arg7[%c0_22, %c0_23] : memref<32x32xbf16, #tpu.memory_space<vmem>>, vector<32x32xbf16>
    %34 = arith.truncf %32 : vector<32x16xf32> to vector<32x16xbf16>
    %cst_24 = arith.constant dense<0.000000e+00> : vector<32x16xf32>
    %35 = tpu.matmul %33, %34, %cst_24 {dimension_numbers = #tpu.dot_dimension_numbers<[1], [0], [0], [1], [0, 0, 1, 1], [], []>} : vector<32x32xbf16>, vector<32x16xbf16>, vector<32x16xf32> -> vector<32x16xf32>
    %cst_25 = arith.constant 0.000000e+00 : f32
    %36 = vector.broadcast %cst_25 : f32 to vector<32x16xf32>
    %37 = arith.cmpf oge, %35, %36 : vector<32x16xf32>
    %cst_26 = arith.constant 2.000000e-01 : f32
    %38 = vector.broadcast %cst_26 : f32 to vector<32x16xf32>
    %39 = arith.mulf %38, %35 : vector<32x16xf32>
    %40 = arith.select %37, %35, %39 : vector<32x16xi1>, vector<32x16xf32>
    %c0_27 = arith.constant 0 : index
    %c0_28 = arith.constant 0 : index
    %41 = vector.load %arg8[%c0_27, %c0_28] : memref<32x32xbf16, #tpu.memory_space<vmem>>, vector<32x32xbf16>
    %42 = arith.truncf %40 : vector<32x16xf32> to vector<32x16xbf16>
    %cst_29 = arith.constant dense<0.000000e+00> : vector<32x16xf32>
    %43 = tpu.matmul %41, %42, %cst_29 {dimension_numbers = #tpu.dot_dimension_numbers<[1], [0], [0], [1], [0, 0, 1, 1], [], []>} : vector<32x32xbf16>, vector<32x16xbf16>, vector<32x16xf32> -> vector<32x16xf32>
    %44 = arith.addf %32, %43 : vector<32x16xf32>
    %c0_30 = arith.constant 0 : index
    %c0_31 = arith.constant 0 : index
    %c0_32 = arith.constant 0 : index
    %45 = vector.load %arg10[%c0_30, %c0_31, %c0_32] : memref<1x32x16xf32, #tpu.memory_space<vmem>>, vector<1x32x16xf32>
    %46 = vector.shape_cast %45 : vector<1x32x16xf32> to vector<32x16xf32>
    %47 = vector.shape_cast %44 : vector<32x16xf32> to vector<1x32x16xf32>
    tpu.vector_store %arg10[%c0_30, %c0_31, %c0_32], %47 {strides = array<i32>} : memref<1x32x16xf32, #tpu.memory_space<vmem>>, vector<1x32x16xf32>,
    return
  }
  func.func @transform_0(%arg0: i32, %arg1: i32) -> (i32, i32, i32) {
    %c0_i32 = arith.constant 0 : i32
    %c0_i32_0 = arith.constant 0 : i32
    return %arg0, %c0_i32, %arg1 : i32, i32, i32
  }
  func.func @transform_1(%arg0: i32, %arg1: i32) -> (i32, i32) {
    %c0_i32 = arith.constant 0 : i32
    %c0_i32_0 = arith.constant 0 : i32
    %c0_i32_1 = arith.constant 0 : i32
    return %c0_i32, %c0_i32_0 : i32, i32
  }
  func.func @transform_2(%arg0: i32, %arg1: i32) -> (i32, i32) {
    %c0_i32 = arith.constant 0 : i32
    %c0_i32_0 = arith.constant 0 : i32
    %c0_i32_1 = arith.constant 0 : i32
    return %c0_i32, %c0_i32_0 : i32, i32
  }
  func.func @transform_3(%arg0: i32, %arg1: i32) -> (i32, i32) {
    %c0_i32 = arith.constant 0 : i32
    %c0_i32_0 = arith.constant 0 : i32
    %c0_i32_1 = arith.constant 0 : i32
    return %c0_i32, %c0_i32_0 : i32, i32
  }
  func.func @transform_4(%arg0: i32, %arg1: i32) -> (i32, i32) {
    %c0_i32 = arith.constant 0 : i32
    %c0_i32_0 = arith.constant 0 : i32
    %c0_i32_1 = arith.constant 0 : i32
    return %c0_i32, %c0_i32_0 : i32, i32
  }
  func.func @transform_5(%arg0: i32, %arg1: i32) -> (i32, i32) {
    %c0_i32 = arith.constant 0 : i32
    %c0_i32_0 = arith.constant 0 : i32
    %c0_i32_1 = arith.constant 0 : i32
    return %c0_i32, %c0_i32_0 : i32, i32
  }
  func.func @transform_6(%arg0: i32, %arg1: i32) -> (i32, i32) {
    %c0_i32 = arith.constant 0 : i32
    %c0_i32_0 = arith.constant 0 : i32
    %c0_i32_1 = arith.constant 0 : i32
    return %c0_i32, %c0_i32_0 : i32, i32
  }
  func.func @transform_7(%arg0: i32, %arg1: i32) -> (i32, i32, i32) {
    %c0_i32 = arith.constant 0 : i32
    %c0_i32_0 = arith.constant 0 : i32
    return %arg0, %c0_i32, %arg1 : i32, i32, i32
  }
  func.func @transform_8(%arg0: i32, %arg1: i32) -> (i32, i32, i32) {
    %c0_i32 = arith.constant 0 : i32
    %c0_i32_0 = arith.constant 0 : i32
    return %arg0, %c0_i32, %arg1 : i32, i32, i32
  }
}

module attributes {stable_mosaic.version = 11 : i64} {
  func.func @_ds_select_kernel(%arg0: i32, %arg1: i32, %arg2: memref<1x32x16xf32, #tpu.memory_space<vmem>>, %arg3: memref<1x32x16xf32, #tpu.memory_space<vmem>>, %arg4: memref<32x32xbf16, #tpu.memory_space<vmem>>, %arg5: memref<32x32xbf16, #tpu.memory_space<vmem>>, %arg6: memref<1x1x16xf32, #tpu.memory_space<vmem>>, %arg7: memref<32x16xbf16, #tpu.memory_space<vmem>>) attributes {dimension_semantics = [#tpu.dimension_semantics<parallel>, #tpu.dimension_semantics<arbitrary>], iteration_bounds = array<i64: 2, 1>, scalar_prefetch = 0 : i64, scratch_operands = 1 : i64, tpu.core_type = #tpu.core_type<tc>, window_params = [{transform_indices = @transform_0, window_bounds = array<i64: 1, 32, 16>}, {transform_indices = @transform_1, window_bounds = array<i64: 1, 32, 16>}, {pipeline_mode = #tpu.pipeline_mode<synchronous>, transform_indices = @transform_2, window_bounds = array<i64: 32, 32>}, {pipeline_mode = #tpu.pipeline_mode<synchronous>, transform_indices = @transform_3, window_bounds = array<i64: 32, 32>}, {transform_indices = @transform_4, window_bounds = array<i64: 1, 1, 16>}]} {
    %c0_i32 = arith.constant 0 : i32
    %0 = arith.cmpi eq, %arg1, %c0_i32 : i32
    %1 = arith.extui %0 : i1 to i32
    %c0_i32_0 = arith.constant 0 : i32
    %2 = arith.cmpi ne, %1, %c0_i32_0 : i32
    scf.if %2 {
      %c0_20 = arith.constant 0 : index
      %c0_21 = arith.constant 0 : index
      %40 = vector.load %arg5[%c0_20, %c0_21] : memref<32x32xbf16, #tpu.memory_space<vmem>>, vector<32x32xbf16>
      %c0_22 = arith.constant 0 : index
      %c0_23 = arith.constant 0 : index
      %c0_24 = arith.constant 0 : index
      %41 = vector.load %arg3[%c0_22, %c0_23, %c0_24] : memref<1x32x16xf32, #tpu.memory_space<vmem>>, vector<1x32x16xf32>
      %42 = vector.shape_cast %41 : vector<1x32x16xf32> to vector<32x16xf32>
      %43 = arith.truncf %42 : vector<32x16xf32> to vector<32x16xbf16>
      %cst_25 = arith.constant dense<0.000000e+00> : vector<32x16xf32>
      %44 = tpu.matmul %40, %43, %cst_25 {dimension_numbers = #tpu.dot_dimension_numbers<[1], [0], [0], [1], [0, 0, 1, 1], [], []>} : vector<32x32xbf16>, vector<32x16xbf16>, vector<32x16xf32> -> vector<32x16xf32>
      %45 = arith.truncf %44 : vector<32x16xf32> to vector<32x16xbf16>
      %c0_26 = arith.constant 0 : index
      %c0_27 = arith.constant 0 : index
      %46 = vector.load %arg7[%c0_26, %c0_27] : memref<32x16xbf16, #tpu.memory_space<vmem>>, vector<32x16xbf16>
      tpu.vector_store %arg7[%c0_26, %c0_27], %45 {strides = array<i32>} : memref<32x16xbf16, #tpu.memory_space<vmem>>, vector<32x16xbf16>,
      %cst_28 = arith.constant 0.000000e+00 : f32
      %47 = vector.broadcast %cst_28 : f32 to vector<1x1x16xf32>
      %c0_29 = arith.constant 0 : index
      %c0_30 = arith.constant 0 : index
      %c0_31 = arith.constant 0 : index
      %48 = vector.load %arg6[%c0_29, %c0_30, %c0_31] : memref<1x1x16xf32, #tpu.memory_space<vmem>>, vector<1x1x16xf32>
      tpu.vector_store %arg6[%c0_29, %c0_30, %c0_31], %47 {strides = array<i32>} : memref<1x1x16xf32, #tpu.memory_space<vmem>>, vector<1x1x16xf32>,
    } else {
    }
    %c0 = arith.constant 0 : index
    %c0_1 = arith.constant 0 : index
    %3 = vector.load %arg4[%c0, %c0_1] : memref<32x32xbf16, #tpu.memory_space<vmem>>, vector<32x32xbf16>
    %c0_2 = arith.constant 0 : index
    %c0_3 = arith.constant 0 : index
    %c0_4 = arith.constant 0 : index
    %4 = vector.load %arg2[%c0_2, %c0_3, %c0_4] : memref<1x32x16xf32, #tpu.memory_space<vmem>>, vector<1x32x16xf32>
    %5 = vector.shape_cast %4 : vector<1x32x16xf32> to vector<32x16xf32>
    %6 = arith.truncf %5 : vector<32x16xf32> to vector<32x16xbf16>
    %cst = arith.constant dense<0.000000e+00> : vector<32x16xf32>
    %7 = tpu.matmul %3, %6, %cst {dimension_numbers = #tpu.dot_dimension_numbers<[1], [0], [0], [1], [0, 0, 1, 1], [], []>} : vector<32x32xbf16>, vector<32x16xbf16>, vector<32x16xf32> -> vector<32x16xf32>
    %8 = arith.truncf %7 : vector<32x16xf32> to vector<32x16xbf16>
    %c0_5 = arith.constant 0 : index
    %c0_6 = arith.constant 0 : index
    %9 = vector.load %arg7[%c0_5, %c0_6] : memref<32x16xbf16, #tpu.memory_space<vmem>>, vector<32x16xbf16>
    %cst_7 = arith.constant dense<0.000000e+00> : vector<16x16xf32>
    %10 = tpu.matmul %8, %9, %cst_7 {dimension_numbers = #tpu.dot_dimension_numbers<[0], [0], [1], [1], [0, 1, 1, 1], [], []>} : vector<32x16xbf16>, vector<32x16xbf16>, vector<16x16xf32> -> vector<16x16xf32>
    %cst_8 = arith.constant 0.176776692 : f32
    %11 = vector.broadcast %cst_8 : f32 to vector<16x16xf32>
    %12 = arith.mulf %10, %11 : vector<16x16xf32>
    %cst_9 = arith.constant dense<0xFF800000> : vector<16xf32>
    %13 = vector.multi_reduction <maximumf>, %12, %cst_9 [1] : vector<16x16xf32> to vector<16xf32>
    %14 = vector.shape_cast %13 : vector<16xf32> to vector<16x1xf32>
    %15 = vector.broadcast %14 : vector<16x1xf32> to vector<16x16xf32>
    %16 = arith.subf %12, %15 : vector<16x16xf32>
    %17 = math.exp %16 : vector<16x16xf32>
    %cst_10 = arith.constant dense<0.000000e+00> : vector<16xf32>
    %18 = vector.multi_reduction <add>, %17, %cst_10 [1] : vector<16x16xf32> to vector<16xf32>
    %19 = vector.shape_cast %18 : vector<16xf32> to vector<16x1xf32>
    %20 = vector.broadcast %19 : vector<16x1xf32> to vector<16x16xf32>
    %21 = arith.divf %17, %20 : vector<16x16xf32>
    %c16_i32 = arith.constant 16 : i32
    %22 = arith.muli %arg1, %c16_i32 : i32
    %23 = tpu.iota {dimensions = array<i32: 0>} : vector<16x1xi32>
    %24 = vector.broadcast %22 : i32 to vector<16x1xi32>
    %25 = arith.addi %24, %23 : vector<16x1xi32>
    %c16_i32_11 = arith.constant 16 : i32
    %26 = vector.broadcast %c16_i32_11 : i32 to vector<16x1xi32>
    %27 = arith.cmpi slt, %25, %26 : vector<16x1xi32>
    %cst_12 = arith.constant 0.000000e+00 : f32
    %28 = vector.shape_cast %27 : vector<16x1xi1> to vector<16x1xi1>
    %29 = vector.broadcast %28 : vector<16x1xi1> to vector<16x16xi1>
    %30 = vector.broadcast %cst_12 : f32 to vector<16x16xf32>
    %31 = arith.select %29, %21, %30 : vector<16x16xi1>, vector<16x16xf32>
    %c0_13 = arith.constant 0 : index
    %c0_14 = arith.constant 0 : index
    %c0_15 = arith.constant 0 : index
    %32 = vector.load %arg6[%c0_13, %c0_14, %c0_15] : memref<1x1x16xf32, #tpu.memory_space<vmem>>, vector<1x1x16xf32>
    %33 = vector.shape_cast %32 : vector<1x1x16xf32> to vector<1x16xf32>
    %cst_16 = arith.constant dense<0.000000e+00> : vector<16xf32>
    %34 = vector.multi_reduction <add>, %31, %cst_16 [0] : vector<16x16xf32> to vector<16xf32>
    %35 = vector.shape_cast %34 : vector<16xf32> to vector<1x16xf32>
    %36 = arith.addf %33, %35 : vector<1x16xf32>
    %c0_17 = arith.constant 0 : index
    %c0_18 = arith.constant 0 : index
    %c0_19 = arith.constant 0 : index
    %37 = vector.load %arg6[%c0_17, %c0_18, %c0_19] : memref<1x1x16xf32, #tpu.memory_space<vmem>>, vector<1x1x16xf32>
    %38 = vector.shape_cast %37 : vector<1x1x16xf32> to vector<1x16xf32>
    %39 = vector.shape_cast %36 : vector<1x16xf32> to vector<1x1x16xf32>
    tpu.vector_store %arg6[%c0_17, %c0_18, %c0_19], %39 {strides = array<i32>} : memref<1x1x16xf32, #tpu.memory_space<vmem>>, vector<1x1x16xf32>,
    return
  }
  func.func @transform_0(%arg0: i32, %arg1: i32) -> (i32, i32, i32) {
    %c0_i32 = arith.constant 0 : i32
    %c0_i32_0 = arith.constant 0 : i32
    return %arg0, %c0_i32, %arg1 : i32, i32, i32
  }
  func.func @transform_1(%arg0: i32, %arg1: i32) -> (i32, i32, i32) {
    %c0_i32 = arith.constant 0 : i32
    %c0_i32_0 = arith.constant 0 : i32
    %c0_i32_1 = arith.constant 0 : i32
    return %arg0, %c0_i32, %c0_i32_0 : i32, i32, i32
  }
  func.func @transform_2(%arg0: i32, %arg1: i32) -> (i32, i32) {
    %c0_i32 = arith.constant 0 : i32
    %c0_i32_0 = arith.constant 0 : i32
    %c0_i32_1 = arith.constant 0 : i32
    return %c0_i32, %c0_i32_0 : i32, i32
  }
  func.func @transform_3(%arg0: i32, %arg1: i32) -> (i32, i32) {
    %c0_i32 = arith.constant 0 : i32
    %c0_i32_0 = arith.constant 0 : i32
    %c0_i32_1 = arith.constant 0 : i32
    return %c0_i32, %c0_i32_0 : i32, i32
  }
  func.func @transform_4(%arg0: i32, %arg1: i32) -> (i32, i32, i32) {
    %c0_i32 = arith.constant 0 : i32
    %c0_i32_0 = arith.constant 0 : i32
    %c0_i32_1 = arith.constant 0 : i32
    return %arg0, %c0_i32, %c0_i32_0 : i32, i32, i32
  }
}

module attributes {stable_mosaic.version = 11 : i64} {
  func.func @_ds_gather_kernel(%arg0: i32, %arg1: i32, %arg2: memref<1x32x8xf32, #tpu.memory_space<vmem>>, %arg3: memref<1x32x16xf32, #tpu.memory_space<vmem>>, %arg4: memref<32x32xbf16, #tpu.memory_space<vmem>>, %arg5: memref<32x32xbf16, #tpu.memory_space<vmem>>, %arg6: memref<32x32xbf16, #tpu.memory_space<vmem>>, %arg7: memref<1x32x8xf32, #tpu.memory_space<vmem>>, %arg8: memref<32x16xbf16, #tpu.memory_space<vmem>>, %arg9: memref<32x16xbf16, #tpu.memory_space<vmem>>) attributes {dimension_semantics = [#tpu.dimension_semantics<parallel>, #tpu.dimension_semantics<arbitrary>], iteration_bounds = array<i64: 2, 1>, scalar_prefetch = 0 : i64, scratch_operands = 2 : i64, tpu.core_type = #tpu.core_type<tc>, window_params = [{transform_indices = @transform_0, window_bounds = array<i64: 1, 32, 8>}, {transform_indices = @transform_1, window_bounds = array<i64: 1, 32, 16>}, {pipeline_mode = #tpu.pipeline_mode<synchronous>, transform_indices = @transform_2, window_bounds = array<i64: 32, 32>}, {pipeline_mode = #tpu.pipeline_mode<synchronous>, transform_indices = @transform_3, window_bounds = array<i64: 32, 32>}, {pipeline_mode = #tpu.pipeline_mode<synchronous>, transform_indices = @transform_4, window_bounds = array<i64: 32, 32>}, {transform_indices = @transform_5, window_bounds = array<i64: 1, 32, 8>}]} {
    %c0_i32 = arith.constant 0 : i32
    %0 = arith.cmpi eq, %arg1, %c0_i32 : i32
    %1 = arith.extui %0 : i1 to i32
    %c0_i32_0 = arith.constant 0 : i32
    %2 = arith.cmpi ne, %1, %c0_i32_0 : i32
    scf.if %2 {
      %c0_17 = arith.constant 0 : index
      %c0_18 = arith.constant 0 : index
      %c0_19 = arith.constant 0 : index
      %29 = vector.load %arg3[%c0_17, %c0_18, %c0_19] : memref<1x32x16xf32, #tpu.memory_space<vmem>>, vector<1x32x16xf32>
      %30 = vector.shape_cast %29 : vector<1x32x16xf32> to vector<32x16xf32>
      %31 = arith.truncf %30 : vector<32x16xf32> to vector<32x16xbf16>
      %c0_20 = arith.constant 0 : index
      %c0_21 = arith.constant 0 : index
      %32 = vector.load %arg5[%c0_20, %c0_21] : memref<32x32xbf16, #tpu.memory_space<vmem>>, vector<32x32xbf16>
      %cst_22 = arith.constant dense<0.000000e+00> : vector<32x16xf32>
      %33 = tpu.matmul %32, %31, %cst_22 {dimension_numbers = #tpu.dot_dimension_numbers<[1], [0], [0], [1], [0, 0, 1, 1], [], []>} : vector<32x32xbf16>, vector<32x16xbf16>, vector<32x16xf32> -> vector<32x16xf32>
      %34 = arith.truncf %33 : vector<32x16xf32> to vector<32x16xbf16>
      %c0_23 = arith.constant 0 : index
      %c0_24 = arith.constant 0 : index
      %35 = vector.load %arg8[%c0_23, %c0_24] : memref<32x16xbf16, #tpu.memory_space<vmem>>, vector<32x16xbf16>
      tpu.vector_store %arg8[%c0_23, %c0_24], %34 {strides = array<i32>} : memref<32x16xbf16, #tpu.memory_space<vmem>>, vector<32x16xbf16>,
      %c0_25 = arith.constant 0 : index
      %c0_26 = arith.constant 0 : index
      %36 = vector.load %arg6[%c0_25, %c0_26] : memref<32x32xbf16, #tpu.memory_space<vmem>>, vector<32x32xbf16>
      %cst_27 = arith.constant dense<0.000000e+00> : vector<32x16xf32>
      %37 = tpu.matmul %36, %31, %cst_27 {dimension_numbers = #tpu.dot_dimension_numbers<[1], [0], [0], [1], [0, 0, 1, 1], [], []>} : vector<32x32xbf16>, vector<32x16xbf16>, vector<32x16xf32> -> vector<32x16xf32>
      %38 = arith.truncf %37 : vector<32x16xf32> to vector<32x16xbf16>
      %c0_28 = arith.constant 0 : index
      %c0_29 = arith.constant 0 : index
      %39 = vector.load %arg9[%c0_28, %c0_29] : memref<32x16xbf16, #tpu.memory_space<vmem>>, vector<32x16xbf16>
      tpu.vector_store %arg9[%c0_28, %c0_29], %38 {strides = array<i32>} : memref<32x16xbf16, #tpu.memory_space<vmem>>, vector<32x16xbf16>,
    } else {
    }
    %c0 = arith.constant 0 : index
    %c0_1 = arith.constant 0 : index
    %3 = vector.load %arg4[%c0, %c0_1] : memref<32x32xbf16, #tpu.memory_space<vmem>>, vector<32x32xbf16>
    %c0_2 = arith.constant 0 : index
    %c0_3 = arith.constant 0 : index
    %c0_4 = arith.constant 0 : index
    %4 = vector.load %arg2[%c0_2, %c0_3, %c0_4] : memref<1x32x8xf32, #tpu.memory_space<vmem>>, vector<1x32x8xf32>
    %5 = vector.shape_cast %4 : vector<1x32x8xf32> to vector<32x8xf32>
    %6 = arith.truncf %5 : vector<32x8xf32> to vector<32x8xbf16>
    %cst = arith.constant dense<0.000000e+00> : vector<32x8xf32>
    %7 = tpu.matmul %3, %6, %cst {dimension_numbers = #tpu.dot_dimension_numbers<[1], [0], [0], [1], [0, 0, 1, 1], [], []>} : vector<32x32xbf16>, vector<32x8xbf16>, vector<32x8xf32> -> vector<32x8xf32>
    %8 = arith.truncf %7 : vector<32x8xf32> to vector<32x8xbf16>
    %c0_5 = arith.constant 0 : index
    %c0_6 = arith.constant 0 : index
    %9 = vector.load %arg8[%c0_5, %c0_6] : memref<32x16xbf16, #tpu.memory_space<vmem>>, vector<32x16xbf16>
    %cst_7 = arith.constant dense<0.000000e+00> : vector<8x16xf32>
    %10 = tpu.matmul %8, %9, %cst_7 {dimension_numbers = #tpu.dot_dimension_numbers<[0], [0], [1], [1], [0, 1, 1, 1], [], []>} : vector<32x8xbf16>, vector<32x16xbf16>, vector<8x16xf32> -> vector<8x16xf32>
    %cst_8 = arith.constant 0.176776692 : f32
    %11 = vector.broadcast %cst_8 : f32 to vector<8x16xf32>
    %12 = arith.mulf %10, %11 : vector<8x16xf32>
    %cst_9 = arith.constant dense<0xFF800000> : vector<8xf32>
    %13 = vector.multi_reduction <maximumf>, %12, %cst_9 [1] : vector<8x16xf32> to vector<8xf32>
    %14 = vector.shape_cast %13 : vector<8xf32> to vector<8x1xf32>
    %15 = vector.broadcast %14 : vector<8x1xf32> to vector<8x16xf32>
    %16 = arith.subf %12, %15 : vector<8x16xf32>
    %17 = math.exp %16 : vector<8x16xf32>
    %cst_10 = arith.constant dense<0.000000e+00> : vector<8xf32>
    %18 = vector.multi_reduction <add>, %17, %cst_10 [1] : vector<8x16xf32> to vector<8xf32>
    %19 = vector.shape_cast %18 : vector<8xf32> to vector<8x1xf32>
    %20 = tpu.reciprocal %19 {approx = true} : vector<8x1xf32> -> vector<8x1xf32>
    %21 = vector.broadcast %20 : vector<8x1xf32> to vector<8x16xf32>
    %22 = arith.mulf %17, %21 : vector<8x16xf32>
    %c0_11 = arith.constant 0 : index
    %c0_12 = arith.constant 0 : index
    %23 = vector.load %arg9[%c0_11, %c0_12] : memref<32x16xbf16, #tpu.memory_space<vmem>>, vector<32x16xbf16>
    %24 = arith.truncf %22 : vector<8x16xf32> to vector<8x16xbf16>
    %cst_13 = arith.constant dense<0.000000e+00> : vector<32x8xf32>
    %25 = tpu.matmul %23, %24, %cst_13 {dimension_numbers = #tpu.dot_dimension_numbers<[1], [1], [0], [0], [0, 0, 1, 0], [], []>} : vector<32x16xbf16>, vector<8x16xbf16>, vector<32x8xf32> -> vector<32x8xf32>
    %c0_14 = arith.constant 0 : index
    %c0_15 = arith.constant 0 : index
    %c0_16 = arith.constant 0 : index
    %26 = vector.load %arg7[%c0_14, %c0_15, %c0_16] : memref<1x32x8xf32, #tpu.memory_space<vmem>>, vector<1x32x8xf32>
    %27 = vector.shape_cast %26 : vector<1x32x8xf32> to vector<32x8xf32>
    %28 = vector.shape_cast %25 : vector<32x8xf32> to vector<1x32x8xf32>
    tpu.vector_store %arg7[%c0_14, %c0_15, %c0_16], %28 {strides = array<i32>} : memref<1x32x8xf32, #tpu.memory_space<vmem>>, vector<1x32x8xf32>,
    return
  }
  func.func @transform_0(%arg0: i32, %arg1: i32) -> (i32, i32, i32) {
    %c0_i32 = arith.constant 0 : i32
    %c0_i32_0 = arith.constant 0 : i32
    return %arg0, %c0_i32, %arg1 : i32, i32, i32
  }
  func.func @transform_1(%arg0: i32, %arg1: i32) -> (i32, i32, i32) {
    %c0_i32 = arith.constant 0 : i32
    %c0_i32_0 = arith.constant 0 : i32
    %c0_i32_1 = arith.constant 0 : i32
    return %arg0, %c0_i32, %c0_i32_0 : i32, i32, i32
  }
  func.func @transform_2(%arg0: i32, %arg1: i32) -> (i32, i32) {
    %c0_i32 = arith.constant 0 : i32
    %c0_i32_0 = arith.constant 0 : i32
    %c0_i32_1 = arith.constant 0 : i32
    return %c0_i32, %c0_i32_0 : i32, i32
  }
  func.func @transform_3(%arg0: i32, %arg1: i32) -> (i32, i32) {
    %c0_i32 = arith.constant 0 : i32
    %c0_i32_0 = arith.constant 0 : i32
    %c0_i32_1 = arith.constant 0 : i32
    return %c0_i32, %c0_i32_0 : i32, i32
  }
  func.func @transform_4(%arg0: i32, %arg1: i32) -> (i32, i32) {
    %c0_i32 = arith.constant 0 : i32
    %c0_i32_0 = arith.constant 0 : i32
    %c0_i32_1 = arith.constant 0 : i32
    return %c0_i32, %c0_i32_0 : i32, i32
  }
  func.func @transform_5(%arg0: i32, %arg1: i32) -> (i32, i32, i32) {
    %c0_i32 = arith.constant 0 : i32
    %c0_i32_0 = arith.constant 0 : i32
    return %arg0, %c0_i32, %arg1 : i32, i32, i32
  }
}

module attributes {stable_mosaic.version = 11 : i64} {
  func.func @_n2p_kernel(%arg0: i32, %arg1: i32, %arg2: memref<1x32x8xf32, #tpu.memory_space<vmem>>, %arg3: memref<1x32x8xf32, #tpu.memory_space<vmem>>, %arg4: memref<32x32xbf16, #tpu.memory_space<vmem>>, %arg5: memref<64x32xbf16, #tpu.memory_space<vmem>>, %arg6: memref<64x32xbf16, #tpu.memory_space<vmem>>, %arg7: memref<32x64xbf16, #tpu.memory_space<vmem>>, %arg8: memref<1x32x8xf32, #tpu.memory_space<vmem>>, %arg9: memref<64x8xf32, #tpu.memory_space<vmem>>) attributes {dimension_semantics = [#tpu.dimension_semantics<parallel>, #tpu.dimension_semantics<arbitrary>], iteration_bounds = array<i64: 2, 1>, scalar_prefetch = 0 : i64, scratch_operands = 1 : i64, tpu.core_type = #tpu.core_type<tc>, window_params = [{transform_indices = @transform_0, window_bounds = array<i64: 1, 32, 8>}, {transform_indices = @transform_1, window_bounds = array<i64: 1, 32, 8>}, {pipeline_mode = #tpu.pipeline_mode<synchronous>, transform_indices = @transform_2, window_bounds = array<i64: 32, 32>}, {pipeline_mode = #tpu.pipeline_mode<synchronous>, transform_indices = @transform_3, window_bounds = array<i64: 64, 32>}, {pipeline_mode = #tpu.pipeline_mode<synchronous>, transform_indices = @transform_4, window_bounds = array<i64: 64, 32>}, {pipeline_mode = #tpu.pipeline_mode<synchronous>, transform_indices = @transform_5, window_bounds = array<i64: 32, 64>}, {transform_indices = @transform_6, window_bounds = array<i64: 1, 32, 8>}]} {
    %c0_i32 = arith.constant 0 : i32
    %0 = arith.cmpi eq, %arg1, %c0_i32 : i32
    %1 = arith.extui %0 : i1 to i32
    %c0_i32_0 = arith.constant 0 : i32
    %2 = arith.cmpi ne, %1, %c0_i32_0 : i32
    scf.if %2 {
      %c0_45 = arith.constant 0 : index
      %c0_46 = arith.constant 0 : index
      %109 = vector.load %arg5[%c0_45, %c0_46] : memref<64x32xbf16, #tpu.memory_space<vmem>>, vector<64x32xbf16>
      %c0_47 = arith.constant 0 : index
      %c0_48 = arith.constant 0 : index
      %c0_49 = arith.constant 0 : index
      %110 = vector.load %arg3[%c0_47, %c0_48, %c0_49] : memref<1x32x8xf32, #tpu.memory_space<vmem>>, vector<1x32x8xf32>
      %111 = vector.shape_cast %110 : vector<1x32x8xf32> to vector<32x8xf32>
      %112 = arith.truncf %111 : vector<32x8xf32> to vector<32x8xbf16>
      %cst_50 = arith.constant dense<0.000000e+00> : vector<64x8xf32>
      %113 = tpu.matmul %109, %112, %cst_50 {dimension_numbers = #tpu.dot_dimension_numbers<[1], [0], [0], [1], [0, 0, 1, 1], [], []>} : vector<64x32xbf16>, vector<32x8xbf16>, vector<64x8xf32> -> vector<64x8xf32>
      %c0_51 = arith.constant 0 : index
      %c0_52 = arith.constant 0 : index
      %114 = vector.load %arg9[%c0_51, %c0_52] : memref<64x8xf32, #tpu.memory_space<vmem>>, vector<64x8xf32>
      tpu.vector_store %arg9[%c0_51, %c0_52], %113 {strides = array<i32>} : memref<64x8xf32, #tpu.memory_space<vmem>>, vector<64x8xf32>,
    } else {
    }
    %c0 = arith.constant 0 : index
    %c0_1 = arith.constant 0 : index
    %c0_2 = arith.constant 0 : index
    %3 = vector.load %arg2[%c0, %c0_1, %c0_2] : memref<1x32x8xf32, #tpu.memory_space<vmem>>, vector<1x32x8xf32>
    %4 = vector.shape_cast %3 : vector<1x32x8xf32> to vector<32x8xf32>
    %c0_3 = arith.constant 0 : index
    %c0_4 = arith.constant 0 : index
    %5 = vector.load %arg4[%c0_3, %c0_4] : memref<32x32xbf16, #tpu.memory_space<vmem>>, vector<32x32xbf16>
    %6 = arith.truncf %4 : vector<32x8xf32> to vector<32x8xbf16>
    %cst = arith.constant dense<0.000000e+00> : vector<32x8xf32>
    %7 = tpu.matmul %5, %6, %cst {dimension_numbers = #tpu.dot_dimension_numbers<[1], [0], [0], [1], [0, 0, 1, 1], [], []>} : vector<32x32xbf16>, vector<32x8xbf16>, vector<32x8xf32> -> vector<32x8xf32>
    %8 = vector.extract_strided_slice %7 {offsets = [0, 0], sizes = [8, 8], strides = [1, 1]} : vector<32x8xf32> to vector<8x8xf32>
    %9 = arith.truncf %8 : vector<8x8xf32> to vector<8x8xbf16>
    %c0_5 = arith.constant 0 : index
    %c0_6 = arith.constant 0 : index
    %10 = vector.load %arg9[%c0_5, %c0_6] : memref<64x8xf32, #tpu.memory_space<vmem>>, vector<8x8xf32>
    %11 = arith.truncf %10 : vector<8x8xf32> to vector<8x8xbf16>
    %c32 = arith.constant 32 : index
    %c0_7 = arith.constant 0 : index
    %12 = vector.load %arg9[%c32, %c0_7] : memref<64x8xf32, #tpu.memory_space<vmem>>, vector<8x8xf32>
    %13 = arith.truncf %12 : vector<8x8xf32> to vector<8x8xbf16>
    %cst_8 = arith.constant dense<0.000000e+00> : vector<8x8xf32>
    %14 = tpu.matmul %9, %11, %cst_8 {dimension_numbers = #tpu.dot_dimension_numbers<[0], [0], [1], [1], [0, 1, 1, 1], [], []>} : vector<8x8xbf16>, vector<8x8xbf16>, vector<8x8xf32> -> vector<8x8xf32>
    %cst_9 = arith.constant 0.353553385 : f32
    %15 = vector.broadcast %cst_9 : f32 to vector<8x8xf32>
    %16 = arith.mulf %14, %15 : vector<8x8xf32>
    %cst_10 = arith.constant dense<0xFF800000> : vector<8xf32>
    %17 = vector.multi_reduction <maximumf>, %16, %cst_10 [1] : vector<8x8xf32> to vector<8xf32>
    %18 = vector.shape_cast %17 : vector<8xf32> to vector<8x1xf32>
    %19 = vector.broadcast %18 : vector<8x1xf32> to vector<8x8xf32>
    %20 = arith.subf %16, %19 : vector<8x8xf32>
    %21 = math.exp %20 : vector<8x8xf32>
    %cst_11 = arith.constant dense<0.000000e+00> : vector<8xf32>
    %22 = vector.multi_reduction <add>, %21, %cst_11 [1] : vector<8x8xf32> to vector<8xf32>
    %23 = vector.shape_cast %22 : vector<8xf32> to vector<8x1xf32>
    %24 = tpu.reciprocal %23 {approx = true} : vector<8x1xf32> -> vector<8x1xf32>
    %25 = vector.broadcast %24 : vector<8x1xf32> to vector<8x8xf32>
    %26 = arith.mulf %21, %25 : vector<8x8xf32>
    %27 = arith.truncf %26 : vector<8x8xf32> to vector<8x8xbf16>
    %cst_12 = arith.constant dense<0.000000e+00> : vector<8x8xf32>
    %28 = tpu.matmul %13, %27, %cst_12 {dimension_numbers = #tpu.dot_dimension_numbers<[1], [1], [0], [0], [0, 0, 1, 0], [], []>} : vector<8x8xbf16>, vector<8x8xbf16>, vector<8x8xf32> -> vector<8x8xf32>
    %29 = vector.extract_strided_slice %7 {offsets = [8, 0], sizes = [8, 8], strides = [1, 1]} : vector<32x8xf32> to vector<8x8xf32>
    %30 = arith.truncf %29 : vector<8x8xf32> to vector<8x8xbf16>
    %c8 = arith.constant 8 : index
    %c0_13 = arith.constant 0 : index
    %31 = vector.load %arg9[%c8, %c0_13] : memref<64x8xf32, #tpu.memory_space<vmem>>, vector<8x8xf32>
    %32 = arith.truncf %31 : vector<8x8xf32> to vector<8x8xbf16>
    %c40 = arith.constant 40 : index
    %c0_14 = arith.constant 0 : index
    %33 = vector.load %arg9[%c40, %c0_14] : memref<64x8xf32, #tpu.memory_space<vmem>>, vector<8x8xf32>
    %34 = arith.truncf %33 : vector<8x8xf32> to vector<8x8xbf16>
    %cst_15 = arith.constant dense<0.000000e+00> : vector<8x8xf32>
    %35 = tpu.matmul %30, %32, %cst_15 {dimension_numbers = #tpu.dot_dimension_numbers<[0], [0], [1], [1], [0, 1, 1, 1], [], []>} : vector<8x8xbf16>, vector<8x8xbf16>, vector<8x8xf32> -> vector<8x8xf32>
    %cst_16 = arith.constant 0.353553385 : f32
    %36 = vector.broadcast %cst_16 : f32 to vector<8x8xf32>
    %37 = arith.mulf %35, %36 : vector<8x8xf32>
    %cst_17 = arith.constant dense<0xFF800000> : vector<8xf32>
    %38 = vector.multi_reduction <maximumf>, %37, %cst_17 [1] : vector<8x8xf32> to vector<8xf32>
    %39 = vector.shape_cast %38 : vector<8xf32> to vector<8x1xf32>
    %40 = vector.broadcast %39 : vector<8x1xf32> to vector<8x8xf32>
    %41 = arith.subf %37, %40 : vector<8x8xf32>
    %42 = math.exp %41 : vector<8x8xf32>
    %cst_18 = arith.constant dense<0.000000e+00> : vector<8xf32>
    %43 = vector.multi_reduction <add>, %42, %cst_18 [1] : vector<8x8xf32> to vector<8xf32>
    %44 = vector.shape_cast %43 : vector<8xf32> to vector<8x1xf32>
    %45 = tpu.reciprocal %44 {approx = true} : vector<8x1xf32> -> vector<8x1xf32>
    %46 = vector.broadcast %45 : vector<8x1xf32> to vector<8x8xf32>
    %47 = arith.mulf %42, %46 : vector<8x8xf32>
    %48 = arith.truncf %47 : vector<8x8xf32> to vector<8x8xbf16>
    %cst_19 = arith.constant dense<0.000000e+00> : vector<8x8xf32>
    %49 = tpu.matmul %34, %48, %cst_19 {dimension_numbers = #tpu.dot_dimension_numbers<[1], [1], [0], [0], [0, 0, 1, 0], [], []>} : vector<8x8xbf16>, vector<8x8xbf16>, vector<8x8xf32> -> vector<8x8xf32>
    %50 = vector.extract_strided_slice %7 {offsets = [16, 0], sizes = [8, 8], strides = [1, 1]} : vector<32x8xf32> to vector<8x8xf32>
    %51 = arith.truncf %50 : vector<8x8xf32> to vector<8x8xbf16>
    %c16 = arith.constant 16 : index
    %c0_20 = arith.constant 0 : index
    %52 = vector.load %arg9[%c16, %c0_20] : memref<64x8xf32, #tpu.memory_space<vmem>>, vector<8x8xf32>
    %53 = arith.truncf %52 : vector<8x8xf32> to vector<8x8xbf16>
    %c48 = arith.constant 48 : index
    %c0_21 = arith.constant 0 : index
    %54 = vector.load %arg9[%c48, %c0_21] : memref<64x8xf32, #tpu.memory_space<vmem>>, vector<8x8xf32>
    %55 = arith.truncf %54 : vector<8x8xf32> to vector<8x8xbf16>
    %cst_22 = arith.constant dense<0.000000e+00> : vector<8x8xf32>
    %56 = tpu.matmul %51, %53, %cst_22 {dimension_numbers = #tpu.dot_dimension_numbers<[0], [0], [1], [1], [0, 1, 1, 1], [], []>} : vector<8x8xbf16>, vector<8x8xbf16>, vector<8x8xf32> -> vector<8x8xf32>
    %cst_23 = arith.constant 0.353553385 : f32
    %57 = vector.broadcast %cst_23 : f32 to vector<8x8xf32>
    %58 = arith.mulf %56, %57 : vector<8x8xf32>
    %cst_24 = arith.constant dense<0xFF800000> : vector<8xf32>
    %59 = vector.multi_reduction <maximumf>, %58, %cst_24 [1] : vector<8x8xf32> to vector<8xf32>
    %60 = vector.shape_cast %59 : vector<8xf32> to vector<8x1xf32>
    %61 = vector.broadcast %60 : vector<8x1xf32> to vector<8x8xf32>
    %62 = arith.subf %58, %61 : vector<8x8xf32>
    %63 = math.exp %62 : vector<8x8xf32>
    %cst_25 = arith.constant dense<0.000000e+00> : vector<8xf32>
    %64 = vector.multi_reduction <add>, %63, %cst_25 [1] : vector<8x8xf32> to vector<8xf32>
    %65 = vector.shape_cast %64 : vector<8xf32> to vector<8x1xf32>
    %66 = tpu.reciprocal %65 {approx = true} : vector<8x1xf32> -> vector<8x1xf32>
    %67 = vector.broadcast %66 : vector<8x1xf32> to vector<8x8xf32>
    %68 = arith.mulf %63, %67 : vector<8x8xf32>
    %69 = arith.truncf %68 : vector<8x8xf32> to vector<8x8xbf16>
    %cst_26 = arith.constant dense<0.000000e+00> : vector<8x8xf32>
    %70 = tpu.matmul %55, %69, %cst_26 {dimension_numbers = #tpu.dot_dimension_numbers<[1], [1], [0], [0], [0, 0, 1, 0], [], []>} : vector<8x8xbf16>, vector<8x8xbf16>, vector<8x8xf32> -> vector<8x8xf32>
    %71 = vector.extract_strided_slice %7 {offsets = [24, 0], sizes = [8, 8], strides = [1, 1]} : vector<32x8xf32> to vector<8x8xf32>
    %72 = arith.truncf %71 : vector<8x8xf32> to vector<8x8xbf16>
    %c24 = arith.constant 24 : index
    %c0_27 = arith.constant 0 : index
    %73 = vector.load %arg9[%c24, %c0_27] : memref<64x8xf32, #tpu.memory_space<vmem>>, vector<8x8xf32>
    %74 = arith.truncf %73 : vector<8x8xf32> to vector<8x8xbf16>
    %c56 = arith.constant 56 : index
    %c0_28 = arith.constant 0 : index
    %75 = vector.load %arg9[%c56, %c0_28] : memref<64x8xf32, #tpu.memory_space<vmem>>, vector<8x8xf32>
    %76 = arith.truncf %75 : vector<8x8xf32> to vector<8x8xbf16>
    %cst_29 = arith.constant dense<0.000000e+00> : vector<8x8xf32>
    %77 = tpu.matmul %72, %74, %cst_29 {dimension_numbers = #tpu.dot_dimension_numbers<[0], [0], [1], [1], [0, 1, 1, 1], [], []>} : vector<8x8xbf16>, vector<8x8xbf16>, vector<8x8xf32> -> vector<8x8xf32>
    %cst_30 = arith.constant 0.353553385 : f32
    %78 = vector.broadcast %cst_30 : f32 to vector<8x8xf32>
    %79 = arith.mulf %77, %78 : vector<8x8xf32>
    %cst_31 = arith.constant dense<0xFF800000> : vector<8xf32>
    %80 = vector.multi_reduction <maximumf>, %79, %cst_31 [1] : vector<8x8xf32> to vector<8xf32>
    %81 = vector.shape_cast %80 : vector<8xf32> to vector<8x1xf32>
    %82 = vector.broadcast %81 : vector<8x1xf32> to vector<8x8xf32>
    %83 = arith.subf %79, %82 : vector<8x8xf32>
    %84 = math.exp %83 : vector<8x8xf32>
    %cst_32 = arith.constant dense<0.000000e+00> : vector<8xf32>
    %85 = vector.multi_reduction <add>, %84, %cst_32 [1] : vector<8x8xf32> to vector<8xf32>
    %86 = vector.shape_cast %85 : vector<8xf32> to vector<8x1xf32>
    %87 = tpu.reciprocal %86 {approx = true} : vector<8x1xf32> -> vector<8x1xf32>
    %88 = vector.broadcast %87 : vector<8x1xf32> to vector<8x8xf32>
    %89 = arith.mulf %84, %88 : vector<8x8xf32>
    %90 = arith.truncf %89 : vector<8x8xf32> to vector<8x8xbf16>
    %cst_33 = arith.constant dense<0.000000e+00> : vector<8x8xf32>
    %91 = tpu.matmul %76, %90, %cst_33 {dimension_numbers = #tpu.dot_dimension_numbers<[1], [1], [0], [0], [0, 0, 1, 0], [], []>} : vector<8x8xbf16>, vector<8x8xbf16>, vector<8x8xf32> -> vector<8x8xf32>
    %92 = tpu.concatenate %28, %49, %70, %91 in 0 : vector<8x8xf32>, vector<8x8xf32>, vector<8x8xf32>, vector<8x8xf32> -> vector<32x8xf32>
    %93 = arith.addf %4, %92 : vector<32x8xf32>
    %c0_34 = arith.constant 0 : index
    %c0_35 = arith.constant 0 : index
    %94 = vector.load %arg6[%c0_34, %c0_35] : memref<64x32xbf16, #tpu.memory_space<vmem>>, vector<64x32xbf16>
    %95 = arith.truncf %93 : vector<32x8xf32> to vector<32x8xbf16>
    %cst_36 = arith.constant dense<0.000000e+00> : vector<64x8xf32>
    %96 = tpu.matmul %94, %95, %cst_36 {dimension_numbers = #tpu.dot_dimension_numbers<[1], [0], [0], [1], [0, 0, 1, 1], [], []>} : vector<64x32xbf16>, vector<32x8xbf16>, vector<64x8xf32> -> vector<64x8xf32>
    %cst_37 = arith.constant 0.000000e+00 : f32
    %97 = vector.broadcast %cst_37 : f32 to vector<64x8xf32>
    %98 = arith.cmpf oge, %96, %97 : vector<64x8xf32>
    %cst_38 = arith.constant 2.000000e-01 : f32
    %99 = vector.broadcast %cst_38 : f32 to vector<64x8xf32>
    %100 = arith.mulf %99, %96 : vector<64x8xf32>
    %101 = arith.select %98, %96, %100 : vector<64x8xi1>, vector<64x8xf32>
    %c0_39 = arith.constant 0 : index
    %c0_40 = arith.constant 0 : index
    %102 = vector.load %arg7[%c0_39, %c0_40] : memref<32x64xbf16, #tpu.memory_space<vmem>>, vector<32x64xbf16>
    %103 = arith.truncf %101 : vector<64x8xf32> to vector<64x8xbf16>
    %cst_41 = arith.constant dense<0.000000e+00> : vector<32x8xf32>
    %104 = tpu.matmul %102, %103, %cst_41 {dimension_numbers = #tpu.dot_dimension_numbers<[1], [0], [0], [1], [0, 0, 1, 1], [], []>} : vector<32x64xbf16>, vector<64x8xbf16>, vector<32x8xf32> -> vector<32x8xf32>
    %105 = arith.addf %93, %104 : vector<32x8xf32>
    %c0_42 = arith.constant 0 : index
    %c0_43 = arith.constant 0 : index
    %c0_44 = arith.constant 0 : index
    %106 = vector.load %arg8[%c0_42, %c0_43, %c0_44] : memref<1x32x8xf32, #tpu.memory_space<vmem>>, vector<1x32x8xf32>
    %107 = vector.shape_cast %106 : vector<1x32x8xf32> to vector<32x8xf32>
    %108 = vector.shape_cast %105 : vector<32x8xf32> to vector<1x32x8xf32>
    tpu.vector_store %arg8[%c0_42, %c0_43, %c0_44], %108 {strides = array<i32>} : memref<1x32x8xf32, #tpu.memory_space<vmem>>, vector<1x32x8xf32>,
    return
  }
  func.func @transform_0(%arg0: i32, %arg1: i32) -> (i32, i32, i32) {
    %c0_i32 = arith.constant 0 : i32
    %c0_i32_0 = arith.constant 0 : i32
    return %arg0, %c0_i32, %arg1 : i32, i32, i32
  }
  func.func @transform_1(%arg0: i32, %arg1: i32) -> (i32, i32, i32) {
    %c0_i32 = arith.constant 0 : i32
    %c0_i32_0 = arith.constant 0 : i32
    %c0_i32_1 = arith.constant 0 : i32
    return %arg0, %c0_i32, %c0_i32_0 : i32, i32, i32
  }
  func.func @transform_2(%arg0: i32, %arg1: i32) -> (i32, i32) {
    %c0_i32 = arith.constant 0 : i32
    %c0_i32_0 = arith.constant 0 : i32
    %c0_i32_1 = arith.constant 0 : i32
    return %c0_i32, %c0_i32_0 : i32, i32
  }
  func.func @transform_3(%arg0: i32, %arg1: i32) -> (i32, i32) {
    %c0_i32 = arith.constant 0 : i32
    %c0_i32_0 = arith.constant 0 : i32
    %c0_i32_1 = arith.constant 0 : i32
    return %c0_i32, %c0_i32_0 : i32, i32
  }
  func.func @transform_4(%arg0: i32, %arg1: i32) -> (i32, i32) {
    %c0_i32 = arith.constant 0 : i32
    %c0_i32_0 = arith.constant 0 : i32
    %c0_i32_1 = arith.constant 0 : i32
    return %c0_i32, %c0_i32_0 : i32, i32
  }
  func.func @transform_5(%arg0: i32, %arg1: i32) -> (i32, i32) {
    %c0_i32 = arith.constant 0 : i32
    %c0_i32_0 = arith.constant 0 : i32
    %c0_i32_1 = arith.constant 0 : i32
    return %c0_i32, %c0_i32_0 : i32, i32
  }
  func.func @transform_6(%arg0: i32, %arg1: i32) -> (i32, i32, i32) {
    %c0_i32 = arith.constant 0 : i32
    %c0_i32_0 = arith.constant 0 : i32
    return %arg0, %c0_i32, %arg1 : i32, i32, i32
  }
}

module attributes {stable_mosaic.version = 11 : i64} {
  func.func @_embed_backbone_kernel(%arg0: i32, %arg1: i32, %arg2: memref<1x3x16xf32, #tpu.memory_space<vmem>>, %arg3: memref<8x3xbf16, #tpu.memory_space<vmem>>, %arg4: memref<32x8xbf16, #tpu.memory_space<vmem>>, %arg5: memref<32x32xbf16, #tpu.memory_space<vmem>>, %arg6: memref<32x32xbf16, #tpu.memory_space<vmem>>, %arg7: memref<32x32xbf16, #tpu.memory_space<vmem>>, %arg8: memref<32x32xbf16, #tpu.memory_space<vmem>>, %arg9: memref<1x32x16xf32, #tpu.memory_space<vmem>>, %arg10: memref<1x32x16xf32, #tpu.memory_space<vmem>>) attributes {dimension_semantics = [#tpu.dimension_semantics<parallel>, #tpu.dimension_semantics<parallel>], iteration_bounds = array<i64: 2, 1>, scalar_prefetch = 0 : i64, scratch_operands = 0 : i64, tpu.core_type = #tpu.core_type<tc>, window_params = [{transform_indices = @transform_0, window_bounds = array<i64: 1, 3, 16>}, {pipeline_mode = #tpu.pipeline_mode<synchronous>, transform_indices = @transform_1, window_bounds = array<i64: 8, 3>}, {pipeline_mode = #tpu.pipeline_mode<synchronous>, transform_indices = @transform_2, window_bounds = array<i64: 32, 8>}, {pipeline_mode = #tpu.pipeline_mode<synchronous>, transform_indices = @transform_3, window_bounds = array<i64: 32, 32>}, {pipeline_mode = #tpu.pipeline_mode<synchronous>, transform_indices = @transform_4, window_bounds = array<i64: 32, 32>}, {pipeline_mode = #tpu.pipeline_mode<synchronous>, transform_indices = @transform_5, window_bounds = array<i64: 32, 32>}, {pipeline_mode = #tpu.pipeline_mode<synchronous>, transform_indices = @transform_6, window_bounds = array<i64: 32, 32>}, {transform_indices = @transform_7, window_bounds = array<i64: 1, 32, 16>}, {transform_indices = @transform_8, window_bounds = array<i64: 1, 32, 16>}]} {
    %c0 = arith.constant 0 : index
    %c0_0 = arith.constant 0 : index
    %c0_1 = arith.constant 0 : index
    %0 = vector.load %arg2[%c0, %c0_0, %c0_1] : memref<1x3x16xf32, #tpu.memory_space<vmem>>, vector<1x3x16xf32>
    %1 = vector.shape_cast %0 : vector<1x3x16xf32> to vector<3x16xf32>
    %2 = arith.truncf %1 : vector<3x16xf32> to vector<3x16xbf16>
    %c0_2 = arith.constant 0 : index
    %c0_3 = arith.constant 0 : index
    %3 = vector.load %arg3[%c0_2, %c0_3] : memref<8x3xbf16, #tpu.memory_space<vmem>>, vector<8x3xbf16>
    %cst = arith.constant dense<0.000000e+00> : vector<8x16xf32>
    %4 = tpu.matmul %3, %2, %cst {dimension_numbers = #tpu.dot_dimension_numbers<[1], [0], [0], [1], [0, 0, 1, 1], [], []>} : vector<8x3xbf16>, vector<3x16xbf16>, vector<8x16xf32> -> vector<8x16xf32>
    %cst_4 = arith.constant 0.000000e+00 : f32
    %5 = vector.broadcast %cst_4 : f32 to vector<8x16xf32>
    %6 = arith.cmpf oge, %4, %5 : vector<8x16xf32>
    %cst_5 = arith.constant 2.000000e-01 : f32
    %7 = vector.broadcast %cst_5 : f32 to vector<8x16xf32>
    %8 = arith.mulf %7, %4 : vector<8x16xf32>
    %9 = arith.select %6, %4, %8 : vector<8x16xi1>, vector<8x16xf32>
    %c0_6 = arith.constant 0 : index
    %c0_7 = arith.constant 0 : index
    %10 = vector.load %arg4[%c0_6, %c0_7] : memref<32x8xbf16, #tpu.memory_space<vmem>>, vector<32x8xbf16>
    %11 = arith.truncf %9 : vector<8x16xf32> to vector<8x16xbf16>
    %cst_8 = arith.constant dense<0.000000e+00> : vector<32x16xf32>
    %12 = tpu.matmul %10, %11, %cst_8 {dimension_numbers = #tpu.dot_dimension_numbers<[1], [0], [0], [1], [0, 0, 1, 1], [], []>} : vector<32x8xbf16>, vector<8x16xbf16>, vector<32x16xf32> -> vector<32x16xf32>
    %cst_9 = arith.constant 0.000000e+00 : f32
    %13 = vector.broadcast %cst_9 : f32 to vector<32x16xf32>
    %14 = arith.cmpf oge, %12, %13 : vector<32x16xf32>
    %cst_10 = arith.constant 2.000000e-01 : f32
    %15 = vector.broadcast %cst_10 : f32 to vector<32x16xf32>
    %16 = arith.mulf %15, %12 : vector<32x16xf32>
    %17 = arith.select %14, %12, %16 : vector<32x16xi1>, vector<32x16xf32>
    %c0_11 = arith.constant 0 : index
    %c0_12 = arith.constant 0 : index
    %c0_13 = arith.constant 0 : index
    %18 = vector.load %arg9[%c0_11, %c0_12, %c0_13] : memref<1x32x16xf32, #tpu.memory_space<vmem>>, vector<1x32x16xf32>
    %19 = vector.shape_cast %18 : vector<1x32x16xf32> to vector<32x16xf32>
    %20 = vector.shape_cast %17 : vector<32x16xf32> to vector<1x32x16xf32>
    tpu.vector_store %arg9[%c0_11, %c0_12, %c0_13], %20 {strides = array<i32>} : memref<1x32x16xf32, #tpu.memory_space<vmem>>, vector<1x32x16xf32>,
    %c0_14 = arith.constant 0 : index
    %c0_15 = arith.constant 0 : index
    %21 = vector.load %arg5[%c0_14, %c0_15] : memref<32x32xbf16, #tpu.memory_space<vmem>>, vector<32x32xbf16>
    %22 = arith.truncf %17 : vector<32x16xf32> to vector<32x16xbf16>
    %cst_16 = arith.constant dense<0.000000e+00> : vector<32x16xf32>
    %23 = tpu.matmul %21, %22, %cst_16 {dimension_numbers = #tpu.dot_dimension_numbers<[1], [0], [0], [1], [0, 0, 1, 1], [], []>} : vector<32x32xbf16>, vector<32x16xbf16>, vector<32x16xf32> -> vector<32x16xf32>
    %cst_17 = arith.constant 0.000000e+00 : f32
    %24 = vector.broadcast %cst_17 : f32 to vector<32x16xf32>
    %25 = arith.cmpf oge, %23, %24 : vector<32x16xf32>
    %cst_18 = arith.constant 2.000000e-01 : f32
    %26 = vector.broadcast %cst_18 : f32 to vector<32x16xf32>
    %27 = arith.mulf %26, %23 : vector<32x16xf32>
    %28 = arith.select %25, %23, %27 : vector<32x16xi1>, vector<32x16xf32>
    %c0_19 = arith.constant 0 : index
    %c0_20 = arith.constant 0 : index
    %29 = vector.load %arg6[%c0_19, %c0_20] : memref<32x32xbf16, #tpu.memory_space<vmem>>, vector<32x32xbf16>
    %30 = arith.truncf %28 : vector<32x16xf32> to vector<32x16xbf16>
    %cst_21 = arith.constant dense<0.000000e+00> : vector<32x16xf32>
    %31 = tpu.matmul %29, %30, %cst_21 {dimension_numbers = #tpu.dot_dimension_numbers<[1], [0], [0], [1], [0, 0, 1, 1], [], []>} : vector<32x32xbf16>, vector<32x16xbf16>, vector<32x16xf32> -> vector<32x16xf32>
    %32 = arith.addf %17, %31 : vector<32x16xf32>
    %c0_22 = arith.constant 0 : index
    %c0_23 = arith.constant 0 : index
    %33 = vector.load %arg7[%c0_22, %c0_23] : memref<32x32xbf16, #tpu.memory_space<vmem>>, vector<32x32xbf16>
    %34 = arith.truncf %32 : vector<32x16xf32> to vector<32x16xbf16>
    %cst_24 = arith.constant dense<0.000000e+00> : vector<32x16xf32>
    %35 = tpu.matmul %33, %34, %cst_24 {dimension_numbers = #tpu.dot_dimension_numbers<[1], [0], [0], [1], [0, 0, 1, 1], [], []>} : vector<32x32xbf16>, vector<32x16xbf16>, vector<32x16xf32> -> vector<32x16xf32>
    %cst_25 = arith.constant 0.000000e+00 : f32
    %36 = vector.broadcast %cst_25 : f32 to vector<32x16xf32>
    %37 = arith.cmpf oge, %35, %36 : vector<32x16xf32>
    %cst_26 = arith.constant 2.000000e-01 : f32
    %38 = vector.broadcast %cst_26 : f32 to vector<32x16xf32>
    %39 = arith.mulf %38, %35 : vector<32x16xf32>
    %40 = arith.select %37, %35, %39 : vector<32x16xi1>, vector<32x16xf32>
    %c0_27 = arith.constant 0 : index
    %c0_28 = arith.constant 0 : index
    %41 = vector.load %arg8[%c0_27, %c0_28] : memref<32x32xbf16, #tpu.memory_space<vmem>>, vector<32x32xbf16>
    %42 = arith.truncf %40 : vector<32x16xf32> to vector<32x16xbf16>
    %cst_29 = arith.constant dense<0.000000e+00> : vector<32x16xf32>
    %43 = tpu.matmul %41, %42, %cst_29 {dimension_numbers = #tpu.dot_dimension_numbers<[1], [0], [0], [1], [0, 0, 1, 1], [], []>} : vector<32x32xbf16>, vector<32x16xbf16>, vector<32x16xf32> -> vector<32x16xf32>
    %44 = arith.addf %32, %43 : vector<32x16xf32>
    %c0_30 = arith.constant 0 : index
    %c0_31 = arith.constant 0 : index
    %c0_32 = arith.constant 0 : index
    %45 = vector.load %arg10[%c0_30, %c0_31, %c0_32] : memref<1x32x16xf32, #tpu.memory_space<vmem>>, vector<1x32x16xf32>
    %46 = vector.shape_cast %45 : vector<1x32x16xf32> to vector<32x16xf32>
    %47 = vector.shape_cast %44 : vector<32x16xf32> to vector<1x32x16xf32>
    tpu.vector_store %arg10[%c0_30, %c0_31, %c0_32], %47 {strides = array<i32>} : memref<1x32x16xf32, #tpu.memory_space<vmem>>, vector<1x32x16xf32>,
    return
  }
  func.func @transform_0(%arg0: i32, %arg1: i32) -> (i32, i32, i32) {
    %c0_i32 = arith.constant 0 : i32
    %c0_i32_0 = arith.constant 0 : i32
    return %arg0, %c0_i32, %arg1 : i32, i32, i32
  }
  func.func @transform_1(%arg0: i32, %arg1: i32) -> (i32, i32) {
    %c0_i32 = arith.constant 0 : i32
    %c0_i32_0 = arith.constant 0 : i32
    %c0_i32_1 = arith.constant 0 : i32
    return %c0_i32, %c0_i32_0 : i32, i32
  }
  func.func @transform_2(%arg0: i32, %arg1: i32) -> (i32, i32) {
    %c0_i32 = arith.constant 0 : i32
    %c0_i32_0 = arith.constant 0 : i32
    %c0_i32_1 = arith.constant 0 : i32
    return %c0_i32, %c0_i32_0 : i32, i32
  }
  func.func @transform_3(%arg0: i32, %arg1: i32) -> (i32, i32) {
    %c0_i32 = arith.constant 0 : i32
    %c0_i32_0 = arith.constant 0 : i32
    %c0_i32_1 = arith.constant 0 : i32
    return %c0_i32, %c0_i32_0 : i32, i32
  }
  func.func @transform_4(%arg0: i32, %arg1: i32) -> (i32, i32) {
    %c0_i32 = arith.constant 0 : i32
    %c0_i32_0 = arith.constant 0 : i32
    %c0_i32_1 = arith.constant 0 : i32
    return %c0_i32, %c0_i32_0 : i32, i32
  }
  func.func @transform_5(%arg0: i32, %arg1: i32) -> (i32, i32) {
    %c0_i32 = arith.constant 0 : i32
    %c0_i32_0 = arith.constant 0 : i32
    %c0_i32_1 = arith.constant 0 : i32
    return %c0_i32, %c0_i32_0 : i32, i32
  }
  func.func @transform_6(%arg0: i32, %arg1: i32) -> (i32, i32) {
    %c0_i32 = arith.constant 0 : i32
    %c0_i32_0 = arith.constant 0 : i32
    %c0_i32_1 = arith.constant 0 : i32
    return %c0_i32, %c0_i32_0 : i32, i32
  }
  func.func @transform_7(%arg0: i32, %arg1: i32) -> (i32, i32, i32) {
    %c0_i32 = arith.constant 0 : i32
    %c0_i32_0 = arith.constant 0 : i32
    return %arg0, %c0_i32, %arg1 : i32, i32, i32
  }
  func.func @transform_8(%arg0: i32, %arg1: i32) -> (i32, i32, i32) {
    %c0_i32 = arith.constant 0 : i32
    %c0_i32_0 = arith.constant 0 : i32
    return %arg0, %c0_i32, %arg1 : i32, i32, i32
  }
}

module attributes {stable_mosaic.version = 11 : i64} {
  func.func @_upsample_kernel(%arg0: i32, %arg1: i32, %arg2: memref<1x32x8xf32, #tpu.memory_space<vmem>>, %arg3: memref<1x32x16xf32, #tpu.memory_space<vmem>>, %arg4: memref<32x32xbf16, #tpu.memory_space<vmem>>, %arg5: memref<64x32xbf16, #tpu.memory_space<vmem>>, %arg6: memref<32x32xbf16, #tpu.memory_space<vmem>>, %arg7: memref<1x32x8xf32, #tpu.memory_space<vmem>>, %arg8: memref<64x16xbf16, #tpu.memory_space<vmem>>) attributes {dimension_semantics = [#tpu.dimension_semantics<parallel>, #tpu.dimension_semantics<arbitrary>], iteration_bounds = array<i64: 2, 1>, scalar_prefetch = 0 : i64, scratch_operands = 1 : i64, tpu.core_type = #tpu.core_type<tc>, window_params = [{transform_indices = @transform_0, window_bounds = array<i64: 1, 32, 8>}, {transform_indices = @transform_1, window_bounds = array<i64: 1, 32, 16>}, {pipeline_mode = #tpu.pipeline_mode<synchronous>, transform_indices = @transform_2, window_bounds = array<i64: 32, 32>}, {pipeline_mode = #tpu.pipeline_mode<synchronous>, transform_indices = @transform_3, window_bounds = array<i64: 64, 32>}, {pipeline_mode = #tpu.pipeline_mode<synchronous>, transform_indices = @transform_4, window_bounds = array<i64: 32, 32>}, {transform_indices = @transform_5, window_bounds = array<i64: 1, 32, 8>}]} {
    %c0_i32 = arith.constant 0 : i32
    %0 = arith.cmpi eq, %arg1, %c0_i32 : i32
    %1 = arith.extui %0 : i1 to i32
    %c0_i32_0 = arith.constant 0 : i32
    %2 = arith.cmpi ne, %1, %c0_i32_0 : i32
    scf.if %2 {
      %c0_19 = arith.constant 0 : index
      %c0_20 = arith.constant 0 : index
      %33 = vector.load %arg5[%c0_19, %c0_20] : memref<64x32xbf16, #tpu.memory_space<vmem>>, vector<64x32xbf16>
      %c0_21 = arith.constant 0 : index
      %c0_22 = arith.constant 0 : index
      %c0_23 = arith.constant 0 : index
      %34 = vector.load %arg3[%c0_21, %c0_22, %c0_23] : memref<1x32x16xf32, #tpu.memory_space<vmem>>, vector<1x32x16xf32>
      %35 = vector.shape_cast %34 : vector<1x32x16xf32> to vector<32x16xf32>
      %36 = arith.truncf %35 : vector<32x16xf32> to vector<32x16xbf16>
      %cst_24 = arith.constant dense<0.000000e+00> : vector<64x16xf32>
      %37 = tpu.matmul %33, %36, %cst_24 {dimension_numbers = #tpu.dot_dimension_numbers<[1], [0], [0], [1], [0, 0, 1, 1], [], []>} : vector<64x32xbf16>, vector<32x16xbf16>, vector<64x16xf32> -> vector<64x16xf32>
      %38 = arith.truncf %37 : vector<64x16xf32> to vector<64x16xbf16>
      %c0_25 = arith.constant 0 : index
      %c0_26 = arith.constant 0 : index
      %39 = vector.load %arg8[%c0_25, %c0_26] : memref<64x16xbf16, #tpu.memory_space<vmem>>, vector<64x16xbf16>
      tpu.vector_store %arg8[%c0_25, %c0_26], %38 {strides = array<i32>} : memref<64x16xbf16, #tpu.memory_space<vmem>>, vector<64x16xbf16>,
    } else {
    }
    %c0 = arith.constant 0 : index
    %c0_1 = arith.constant 0 : index
    %c0_2 = arith.constant 0 : index
    %3 = vector.load %arg2[%c0, %c0_1, %c0_2] : memref<1x32x8xf32, #tpu.memory_space<vmem>>, vector<1x32x8xf32>
    %4 = vector.shape_cast %3 : vector<1x32x8xf32> to vector<32x8xf32>
    %c0_3 = arith.constant 0 : index
    %c0_4 = arith.constant 0 : index
    %5 = vector.load %arg4[%c0_3, %c0_4] : memref<32x32xbf16, #tpu.memory_space<vmem>>, vector<32x32xbf16>
    %6 = arith.truncf %4 : vector<32x8xf32> to vector<32x8xbf16>
    %cst = arith.constant dense<0.000000e+00> : vector<32x8xf32>
    %7 = tpu.matmul %5, %6, %cst {dimension_numbers = #tpu.dot_dimension_numbers<[1], [0], [0], [1], [0, 0, 1, 1], [], []>} : vector<32x32xbf16>, vector<32x8xbf16>, vector<32x8xf32> -> vector<32x8xf32>
    %c0_5 = arith.constant 0 : index
    %c0_6 = arith.constant 0 : index
    %8 = vector.load %arg8[%c0_5, %c0_6] : memref<64x16xbf16, #tpu.memory_space<vmem>>, vector<32x16xbf16>
    %c32 = arith.constant 32 : index
    %c0_7 = arith.constant 0 : index
    %9 = vector.load %arg8[%c32, %c0_7] : memref<64x16xbf16, #tpu.memory_space<vmem>>, vector<32x16xbf16>
    %10 = arith.truncf %7 : vector<32x8xf32> to vector<32x8xbf16>
    %cst_8 = arith.constant dense<0.000000e+00> : vector<8x16xf32>
    %11 = tpu.matmul %10, %8, %cst_8 {dimension_numbers = #tpu.dot_dimension_numbers<[0], [0], [1], [1], [0, 1, 1, 1], [], []>} : vector<32x8xbf16>, vector<32x16xbf16>, vector<8x16xf32> -> vector<8x16xf32>
    %cst_9 = arith.constant 0.176776692 : f32
    %12 = vector.broadcast %cst_9 : f32 to vector<8x16xf32>
    %13 = arith.mulf %11, %12 : vector<8x16xf32>
    %cst_10 = arith.constant dense<0xFF800000> : vector<8xf32>
    %14 = vector.multi_reduction <maximumf>, %13, %cst_10 [1] : vector<8x16xf32> to vector<8xf32>
    %15 = vector.shape_cast %14 : vector<8xf32> to vector<8x1xf32>
    %16 = vector.broadcast %15 : vector<8x1xf32> to vector<8x16xf32>
    %17 = arith.subf %13, %16 : vector<8x16xf32>
    %18 = math.exp %17 : vector<8x16xf32>
    %cst_11 = arith.constant dense<0.000000e+00> : vector<8xf32>
    %19 = vector.multi_reduction <add>, %18, %cst_11 [1] : vector<8x16xf32> to vector<8xf32>
    %20 = vector.shape_cast %19 : vector<8xf32> to vector<8x1xf32>
    %21 = tpu.reciprocal %20 {approx = true} : vector<8x1xf32> -> vector<8x1xf32>
    %22 = vector.broadcast %21 : vector<8x1xf32> to vector<8x16xf32>
    %23 = arith.mulf %18, %22 : vector<8x16xf32>
    %24 = arith.truncf %23 : vector<8x16xf32> to vector<8x16xbf16>
    %cst_12 = arith.constant dense<0.000000e+00> : vector<32x8xf32>
    %25 = tpu.matmul %9, %24, %cst_12 {dimension_numbers = #tpu.dot_dimension_numbers<[1], [1], [0], [0], [0, 0, 1, 0], [], []>} : vector<32x16xbf16>, vector<8x16xbf16>, vector<32x8xf32> -> vector<32x8xf32>
    %c0_13 = arith.constant 0 : index
    %c0_14 = arith.constant 0 : index
    %26 = vector.load %arg6[%c0_13, %c0_14] : memref<32x32xbf16, #tpu.memory_space<vmem>>, vector<32x32xbf16>
    %27 = arith.truncf %4 : vector<32x8xf32> to vector<32x8xbf16>
    %cst_15 = arith.constant dense<0.000000e+00> : vector<32x8xf32>
    %28 = tpu.matmul %26, %27, %cst_15 {dimension_numbers = #tpu.dot_dimension_numbers<[1], [0], [0], [1], [0, 0, 1, 1], [], []>} : vector<32x32xbf16>, vector<32x8xbf16>, vector<32x8xf32> -> vector<32x8xf32>
    %29 = arith.addf %28, %25 : vector<32x8xf32>
    %c0_16 = arith.constant 0 : index
    %c0_17 = arith.constant 0 : index
    %c0_18 = arith.constant 0 : index
    %30 = vector.load %arg7[%c0_16, %c0_17, %c0_18] : memref<1x32x8xf32, #tpu.memory_space<vmem>>, vector<1x32x8xf32>
    %31 = vector.shape_cast %30 : vector<1x32x8xf32> to vector<32x8xf32>
    %32 = vector.shape_cast %29 : vector<32x8xf32> to vector<1x32x8xf32>
    tpu.vector_store %arg7[%c0_16, %c0_17, %c0_18], %32 {strides = array<i32>} : memref<1x32x8xf32, #tpu.memory_space<vmem>>, vector<1x32x8xf32>,
    return
  }
  func.func @transform_0(%arg0: i32, %arg1: i32) -> (i32, i32, i32) {
    %c0_i32 = arith.constant 0 : i32
    %c0_i32_0 = arith.constant 0 : i32
    return %arg0, %c0_i32, %arg1 : i32, i32, i32
  }
  func.func @transform_1(%arg0: i32, %arg1: i32) -> (i32, i32, i32) {
    %c0_i32 = arith.constant 0 : i32
    %c0_i32_0 = arith.constant 0 : i32
    %c0_i32_1 = arith.constant 0 : i32
    return %arg0, %c0_i32, %c0_i32_0 : i32, i32, i32
  }
  func.func @transform_2(%arg0: i32, %arg1: i32) -> (i32, i32) {
    %c0_i32 = arith.constant 0 : i32
    %c0_i32_0 = arith.constant 0 : i32
    %c0_i32_1 = arith.constant 0 : i32
    return %c0_i32, %c0_i32_0 : i32, i32
  }
  func.func @transform_3(%arg0: i32, %arg1: i32) -> (i32, i32) {
    %c0_i32 = arith.constant 0 : i32
    %c0_i32_0 = arith.constant 0 : i32
    %c0_i32_1 = arith.constant 0 : i32
    return %c0_i32, %c0_i32_0 : i32, i32
  }
  func.func @transform_4(%arg0: i32, %arg1: i32) -> (i32, i32) {
    %c0_i32 = arith.constant 0 : i32
    %c0_i32_0 = arith.constant 0 : i32
    %c0_i32_1 = arith.constant 0 : i32
    return %c0_i32, %c0_i32_0 : i32, i32
  }
  func.func @transform_5(%arg0: i32, %arg1: i32) -> (i32, i32, i32) {
    %c0_i32 = arith.constant 0 : i32
    %c0_i32_0 = arith.constant 0 : i32
    return %arg0, %c0_i32, %arg1 : i32, i32, i32
  }
}

module attributes {stable_mosaic.version = 11 : i64} {
  func.func @_upsample_kernel(%arg0: i32, %arg1: i32, %arg2: memref<1x32x16xf32, #tpu.memory_space<vmem>>, %arg3: memref<1x32x8xf32, #tpu.memory_space<vmem>>, %arg4: memref<32x32xbf16, #tpu.memory_space<vmem>>, %arg5: memref<64x32xbf16, #tpu.memory_space<vmem>>, %arg6: memref<32x32xbf16, #tpu.memory_space<vmem>>, %arg7: memref<1x32x16xf32, #tpu.memory_space<vmem>>, %arg8: memref<64x8xbf16, #tpu.memory_space<vmem>>) attributes {dimension_semantics = [#tpu.dimension_semantics<parallel>, #tpu.dimension_semantics<arbitrary>], iteration_bounds = array<i64: 2, 1>, scalar_prefetch = 0 : i64, scratch_operands = 1 : i64, tpu.core_type = #tpu.core_type<tc>, window_params = [{transform_indices = @transform_0, window_bounds = array<i64: 1, 32, 16>}, {transform_indices = @transform_1, window_bounds = array<i64: 1, 32, 8>}, {pipeline_mode = #tpu.pipeline_mode<synchronous>, transform_indices = @transform_2, window_bounds = array<i64: 32, 32>}, {pipeline_mode = #tpu.pipeline_mode<synchronous>, transform_indices = @transform_3, window_bounds = array<i64: 64, 32>}, {pipeline_mode = #tpu.pipeline_mode<synchronous>, transform_indices = @transform_4, window_bounds = array<i64: 32, 32>}, {transform_indices = @transform_5, window_bounds = array<i64: 1, 32, 16>}]} {
    %c0_i32 = arith.constant 0 : i32
    %0 = arith.cmpi eq, %arg1, %c0_i32 : i32
    %1 = arith.extui %0 : i1 to i32
    %c0_i32_0 = arith.constant 0 : i32
    %2 = arith.cmpi ne, %1, %c0_i32_0 : i32
    scf.if %2 {
      %c0_19 = arith.constant 0 : index
      %c0_20 = arith.constant 0 : index
      %33 = vector.load %arg5[%c0_19, %c0_20] : memref<64x32xbf16, #tpu.memory_space<vmem>>, vector<64x32xbf16>
      %c0_21 = arith.constant 0 : index
      %c0_22 = arith.constant 0 : index
      %c0_23 = arith.constant 0 : index
      %34 = vector.load %arg3[%c0_21, %c0_22, %c0_23] : memref<1x32x8xf32, #tpu.memory_space<vmem>>, vector<1x32x8xf32>
      %35 = vector.shape_cast %34 : vector<1x32x8xf32> to vector<32x8xf32>
      %36 = arith.truncf %35 : vector<32x8xf32> to vector<32x8xbf16>
      %cst_24 = arith.constant dense<0.000000e+00> : vector<64x8xf32>
      %37 = tpu.matmul %33, %36, %cst_24 {dimension_numbers = #tpu.dot_dimension_numbers<[1], [0], [0], [1], [0, 0, 1, 1], [], []>} : vector<64x32xbf16>, vector<32x8xbf16>, vector<64x8xf32> -> vector<64x8xf32>
      %38 = arith.truncf %37 : vector<64x8xf32> to vector<64x8xbf16>
      %c0_25 = arith.constant 0 : index
      %c0_26 = arith.constant 0 : index
      %39 = vector.load %arg8[%c0_25, %c0_26] : memref<64x8xbf16, #tpu.memory_space<vmem>>, vector<64x8xbf16>
      tpu.vector_store %arg8[%c0_25, %c0_26], %38 {strides = array<i32>} : memref<64x8xbf16, #tpu.memory_space<vmem>>, vector<64x8xbf16>,
    } else {
    }
    %c0 = arith.constant 0 : index
    %c0_1 = arith.constant 0 : index
    %c0_2 = arith.constant 0 : index
    %3 = vector.load %arg2[%c0, %c0_1, %c0_2] : memref<1x32x16xf32, #tpu.memory_space<vmem>>, vector<1x32x16xf32>
    %4 = vector.shape_cast %3 : vector<1x32x16xf32> to vector<32x16xf32>
    %c0_3 = arith.constant 0 : index
    %c0_4 = arith.constant 0 : index
    %5 = vector.load %arg4[%c0_3, %c0_4] : memref<32x32xbf16, #tpu.memory_space<vmem>>, vector<32x32xbf16>
    %6 = arith.truncf %4 : vector<32x16xf32> to vector<32x16xbf16>
    %cst = arith.constant dense<0.000000e+00> : vector<32x16xf32>
    %7 = tpu.matmul %5, %6, %cst {dimension_numbers = #tpu.dot_dimension_numbers<[1], [0], [0], [1], [0, 0, 1, 1], [], []>} : vector<32x32xbf16>, vector<32x16xbf16>, vector<32x16xf32> -> vector<32x16xf32>
    %c0_5 = arith.constant 0 : index
    %c0_6 = arith.constant 0 : index
    %8 = vector.load %arg8[%c0_5, %c0_6] : memref<64x8xbf16, #tpu.memory_space<vmem>>, vector<32x8xbf16>
    %c32 = arith.constant 32 : index
    %c0_7 = arith.constant 0 : index
    %9 = vector.load %arg8[%c32, %c0_7] : memref<64x8xbf16, #tpu.memory_space<vmem>>, vector<32x8xbf16>
    %10 = arith.truncf %7 : vector<32x16xf32> to vector<32x16xbf16>
    %cst_8 = arith.constant dense<0.000000e+00> : vector<16x8xf32>
    %11 = tpu.matmul %10, %8, %cst_8 {dimension_numbers = #tpu.dot_dimension_numbers<[0], [0], [1], [1], [0, 1, 1, 1], [], []>} : vector<32x16xbf16>, vector<32x8xbf16>, vector<16x8xf32> -> vector<16x8xf32>
    %cst_9 = arith.constant 0.176776692 : f32
    %12 = vector.broadcast %cst_9 : f32 to vector<16x8xf32>
    %13 = arith.mulf %11, %12 : vector<16x8xf32>
    %cst_10 = arith.constant dense<0xFF800000> : vector<16xf32>
    %14 = vector.multi_reduction <maximumf>, %13, %cst_10 [1] : vector<16x8xf32> to vector<16xf32>
    %15 = vector.shape_cast %14 : vector<16xf32> to vector<16x1xf32>
    %16 = vector.broadcast %15 : vector<16x1xf32> to vector<16x8xf32>
    %17 = arith.subf %13, %16 : vector<16x8xf32>
    %18 = math.exp %17 : vector<16x8xf32>
    %cst_11 = arith.constant dense<0.000000e+00> : vector<16xf32>
    %19 = vector.multi_reduction <add>, %18, %cst_11 [1] : vector<16x8xf32> to vector<16xf32>
    %20 = vector.shape_cast %19 : vector<16xf32> to vector<16x1xf32>
    %21 = tpu.reciprocal %20 {approx = true} : vector<16x1xf32> -> vector<16x1xf32>
    %22 = vector.broadcast %21 : vector<16x1xf32> to vector<16x8xf32>
    %23 = arith.mulf %18, %22 : vector<16x8xf32>
    %24 = arith.truncf %23 : vector<16x8xf32> to vector<16x8xbf16>
    %cst_12 = arith.constant dense<0.000000e+00> : vector<32x16xf32>
    %25 = tpu.matmul %9, %24, %cst_12 {dimension_numbers = #tpu.dot_dimension_numbers<[1], [1], [0], [0], [0, 0, 1, 0], [], []>} : vector<32x8xbf16>, vector<16x8xbf16>, vector<32x16xf32> -> vector<32x16xf32>
    %c0_13 = arith.constant 0 : index
    %c0_14 = arith.constant 0 : index
    %26 = vector.load %arg6[%c0_13, %c0_14] : memref<32x32xbf16, #tpu.memory_space<vmem>>, vector<32x32xbf16>
    %27 = arith.truncf %4 : vector<32x16xf32> to vector<32x16xbf16>
    %cst_15 = arith.constant dense<0.000000e+00> : vector<32x16xf32>
    %28 = tpu.matmul %26, %27, %cst_15 {dimension_numbers = #tpu.dot_dimension_numbers<[1], [0], [0], [1], [0, 0, 1, 1], [], []>} : vector<32x32xbf16>, vector<32x16xbf16>, vector<32x16xf32> -> vector<32x16xf32>
    %29 = arith.addf %28, %25 : vector<32x16xf32>
    %c0_16 = arith.constant 0 : index
    %c0_17 = arith.constant 0 : index
    %c0_18 = arith.constant 0 : index
    %30 = vector.load %arg7[%c0_16, %c0_17, %c0_18] : memref<1x32x16xf32, #tpu.memory_space<vmem>>, vector<1x32x16xf32>
    %31 = vector.shape_cast %30 : vector<1x32x16xf32> to vector<32x16xf32>
    %32 = vector.shape_cast %29 : vector<32x16xf32> to vector<1x32x16xf32>
    tpu.vector_store %arg7[%c0_16, %c0_17, %c0_18], %32 {strides = array<i32>} : memref<1x32x16xf32, #tpu.memory_space<vmem>>, vector<1x32x16xf32>,
    return
  }
  func.func @transform_0(%arg0: i32, %arg1: i32) -> (i32, i32, i32) {
    %c0_i32 = arith.constant 0 : i32
    %c0_i32_0 = arith.constant 0 : i32
    return %arg0, %c0_i32, %arg1 : i32, i32, i32
  }
  func.func @transform_1(%arg0: i32, %arg1: i32) -> (i32, i32, i32) {
    %c0_i32 = arith.constant 0 : i32
    %c0_i32_0 = arith.constant 0 : i32
    %c0_i32_1 = arith.constant 0 : i32
    return %arg0, %c0_i32, %c0_i32_0 : i32, i32, i32
  }
  func.func @transform_2(%arg0: i32, %arg1: i32) -> (i32, i32) {
    %c0_i32 = arith.constant 0 : i32
    %c0_i32_0 = arith.constant 0 : i32
    %c0_i32_1 = arith.constant 0 : i32
    return %c0_i32, %c0_i32_0 : i32, i32
  }
  func.func @transform_3(%arg0: i32, %arg1: i32) -> (i32, i32) {
    %c0_i32 = arith.constant 0 : i32
    %c0_i32_0 = arith.constant 0 : i32
    %c0_i32_1 = arith.constant 0 : i32
    return %c0_i32, %c0_i32_0 : i32, i32
  }
  func.func @transform_4(%arg0: i32, %arg1: i32) -> (i32, i32) {
    %c0_i32 = arith.constant 0 : i32
    %c0_i32_0 = arith.constant 0 : i32
    %c0_i32_1 = arith.constant 0 : i32
    return %c0_i32, %c0_i32_0 : i32, i32
  }
  func.func @transform_5(%arg0: i32, %arg1: i32) -> (i32, i32, i32) {
    %c0_i32 = arith.constant 0 : i32
    %c0_i32_0 = arith.constant 0 : i32
    return %arg0, %c0_i32, %arg1 : i32, i32, i32
  }
}

module attributes {stable_mosaic.version = 11 : i64} {
  func.func @_upsample_pool_head_kernel(%arg0: i32, %arg1: i32, %arg2: memref<1x32x16xf32, #tpu.memory_space<vmem>>, %arg3: memref<1x32x16xf32, #tpu.memory_space<vmem>>, %arg4: memref<32x32xbf16, #tpu.memory_space<vmem>>, %arg5: memref<64x32xbf16, #tpu.memory_space<vmem>>, %arg6: memref<32x32xbf16, #tpu.memory_space<vmem>>, %arg7: memref<32x32xbf16, #tpu.memory_space<vmem>>, %arg8: memref<32x1xf32, #tpu.memory_space<vmem>>, %arg9: memref<24x32xbf16, #tpu.memory_space<vmem>>, %arg10: memref<24x1xf32, #tpu.memory_space<vmem>>, %arg11: memref<1x24x1xf32, #tpu.memory_space<vmem>>, %arg12: memref<64x16xbf16, #tpu.memory_space<vmem>>, %arg13: memref<32x1xf32, #tpu.memory_space<vmem>>) attributes {dimension_semantics = [#tpu.dimension_semantics<parallel>, #tpu.dimension_semantics<arbitrary>], iteration_bounds = array<i64: 2, 1>, scalar_prefetch = 0 : i64, scratch_operands = 2 : i64, tpu.core_type = #tpu.core_type<tc>, window_params = [{transform_indices = @transform_0, window_bounds = array<i64: 1, 32, 16>}, {transform_indices = @transform_1, window_bounds = array<i64: 1, 32, 16>}, {pipeline_mode = #tpu.pipeline_mode<synchronous>, transform_indices = @transform_2, window_bounds = array<i64: 32, 32>}, {pipeline_mode = #tpu.pipeline_mode<synchronous>, transform_indices = @transform_3, window_bounds = array<i64: 64, 32>}, {pipeline_mode = #tpu.pipeline_mode<synchronous>, transform_indices = @transform_4, window_bounds = array<i64: 32, 32>}, {pipeline_mode = #tpu.pipeline_mode<synchronous>, transform_indices = @transform_5, window_bounds = array<i64: 32, 32>}, {pipeline_mode = #tpu.pipeline_mode<synchronous>, transform_indices = @transform_6, window_bounds = array<i64: 32, 1>}, {pipeline_mode = #tpu.pipeline_mode<synchronous>, transform_indices = @transform_7, window_bounds = array<i64: 24, 32>}, {pipeline_mode = #tpu.pipeline_mode<synchronous>, transform_indices = @transform_8, window_bounds = array<i64: 24, 1>}, {transform_indices = @transform_9, window_bounds = array<i64: 1, 24, 1>}]} {
    %c0_i32 = arith.constant 0 : i32
    %0 = arith.cmpi eq, %arg1, %c0_i32 : i32
    %1 = arith.extui %0 : i1 to i32
    %c0_i32_0 = arith.constant 0 : i32
    %2 = arith.cmpi ne, %1, %c0_i32_0 : i32
    scf.if %2 {
      %c0_25 = arith.constant 0 : index
      %c0_26 = arith.constant 0 : index
      %48 = vector.load %arg5[%c0_25, %c0_26] : memref<64x32xbf16, #tpu.memory_space<vmem>>, vector<64x32xbf16>
      %c0_27 = arith.constant 0 : index
      %c0_28 = arith.constant 0 : index
      %c0_29 = arith.constant 0 : index
      %49 = vector.load %arg3[%c0_27, %c0_28, %c0_29] : memref<1x32x16xf32, #tpu.memory_space<vmem>>, vector<1x32x16xf32>
      %50 = vector.shape_cast %49 : vector<1x32x16xf32> to vector<32x16xf32>
      %51 = arith.truncf %50 : vector<32x16xf32> to vector<32x16xbf16>
      %cst_30 = arith.constant dense<0.000000e+00> : vector<64x16xf32>
      %52 = tpu.matmul %48, %51, %cst_30 {dimension_numbers = #tpu.dot_dimension_numbers<[1], [0], [0], [1], [0, 0, 1, 1], [], []>} : vector<64x32xbf16>, vector<32x16xbf16>, vector<64x16xf32> -> vector<64x16xf32>
      %53 = arith.truncf %52 : vector<64x16xf32> to vector<64x16xbf16>
      %c0_31 = arith.constant 0 : index
      %c0_32 = arith.constant 0 : index
      %54 = vector.load %arg12[%c0_31, %c0_32] : memref<64x16xbf16, #tpu.memory_space<vmem>>, vector<64x16xbf16>
      tpu.vector_store %arg12[%c0_31, %c0_32], %53 {strides = array<i32>} : memref<64x16xbf16, #tpu.memory_space<vmem>>, vector<64x16xbf16>,
      %cst_33 = arith.constant 0xFF800000 : f32
      %55 = vector.broadcast %cst_33 : f32 to vector<32x1xf32>
      %c0_34 = arith.constant 0 : index
      %c0_35 = arith.constant 0 : index
      %56 = vector.load %arg13[%c0_34, %c0_35] : memref<32x1xf32, #tpu.memory_space<vmem>>, vector<32x1xf32>
      tpu.vector_store %arg13[%c0_34, %c0_35], %55 {strides = array<i32>} : memref<32x1xf32, #tpu.memory_space<vmem>>, vector<32x1xf32>,
      %cst_36 = arith.constant 0.000000e+00 : f32
      %57 = vector.broadcast %cst_36 : f32 to vector<1x24x1xf32>
      %c0_37 = arith.constant 0 : index
      %c0_38 = arith.constant 0 : index
      %c0_39 = arith.constant 0 : index
      %58 = vector.load %arg11[%c0_37, %c0_38, %c0_39] : memref<1x24x1xf32, #tpu.memory_space<vmem>>, vector<1x24x1xf32>
      tpu.vector_store %arg11[%c0_37, %c0_38, %c0_39], %57 {strides = array<i32>} : memref<1x24x1xf32, #tpu.memory_space<vmem>>, vector<1x24x1xf32>,
    } else {
    }
    %c0 = arith.constant 0 : index
    %c0_1 = arith.constant 0 : index
    %c0_2 = arith.constant 0 : index
    %3 = vector.load %arg2[%c0, %c0_1, %c0_2] : memref<1x32x16xf32, #tpu.memory_space<vmem>>, vector<1x32x16xf32>
    %4 = vector.shape_cast %3 : vector<1x32x16xf32> to vector<32x16xf32>
    %c0_3 = arith.constant 0 : index
    %c0_4 = arith.constant 0 : index
    %5 = vector.load %arg4[%c0_3, %c0_4] : memref<32x32xbf16, #tpu.memory_space<vmem>>, vector<32x32xbf16>
    %6 = arith.truncf %4 : vector<32x16xf32> to vector<32x16xbf16>
    %cst = arith.constant dense<0.000000e+00> : vector<32x16xf32>
    %7 = tpu.matmul %5, %6, %cst {dimension_numbers = #tpu.dot_dimension_numbers<[1], [0], [0], [1], [0, 0, 1, 1], [], []>} : vector<32x32xbf16>, vector<32x16xbf16>, vector<32x16xf32> -> vector<32x16xf32>
    %c0_5 = arith.constant 0 : index
    %c0_6 = arith.constant 0 : index
    %8 = vector.load %arg12[%c0_5, %c0_6] : memref<64x16xbf16, #tpu.memory_space<vmem>>, vector<32x16xbf16>
    %c32 = arith.constant 32 : index
    %c0_7 = arith.constant 0 : index
    %9 = vector.load %arg12[%c32, %c0_7] : memref<64x16xbf16, #tpu.memory_space<vmem>>, vector<32x16xbf16>
    %10 = arith.truncf %7 : vector<32x16xf32> to vector<32x16xbf16>
    %cst_8 = arith.constant dense<0.000000e+00> : vector<16x16xf32>
    %11 = tpu.matmul %10, %8, %cst_8 {dimension_numbers = #tpu.dot_dimension_numbers<[0], [0], [1], [1], [0, 1, 1, 1], [], []>} : vector<32x16xbf16>, vector<32x16xbf16>, vector<16x16xf32> -> vector<16x16xf32>
    %cst_9 = arith.constant 0.176776692 : f32
    %12 = vector.broadcast %cst_9 : f32 to vector<16x16xf32>
    %13 = arith.mulf %11, %12 : vector<16x16xf32>
    %cst_10 = arith.constant dense<0xFF800000> : vector<16xf32>
    %14 = vector.multi_reduction <maximumf>, %13, %cst_10 [1] : vector<16x16xf32> to vector<16xf32>
    %15 = vector.shape_cast %14 : vector<16xf32> to vector<16x1xf32>
    %16 = vector.broadcast %15 : vector<16x1xf32> to vector<16x16xf32>
    %17 = arith.subf %13, %16 : vector<16x16xf32>
    %18 = math.exp %17 : vector<16x16xf32>
    %cst_11 = arith.constant dense<0.000000e+00> : vector<16xf32>
    %19 = vector.multi_reduction <add>, %18, %cst_11 [1] : vector<16x16xf32> to vector<16xf32>
    %20 = vector.shape_cast %19 : vector<16xf32> to vector<16x1xf32>
    %21 = tpu.reciprocal %20 {approx = true} : vector<16x1xf32> -> vector<16x1xf32>
    %22 = vector.broadcast %21 : vector<16x1xf32> to vector<16x16xf32>
    %23 = arith.mulf %18, %22 : vector<16x16xf32>
    %24 = arith.truncf %23 : vector<16x16xf32> to vector<16x16xbf16>
    %cst_12 = arith.constant dense<0.000000e+00> : vector<32x16xf32>
    %25 = tpu.matmul %9, %24, %cst_12 {dimension_numbers = #tpu.dot_dimension_numbers<[1], [1], [0], [0], [0, 0, 1, 0], [], []>} : vector<32x16xbf16>, vector<16x16xbf16>, vector<32x16xf32> -> vector<32x16xf32>
    %c0_13 = arith.constant 0 : index
    %c0_14 = arith.constant 0 : index
    %26 = vector.load %arg6[%c0_13, %c0_14] : memref<32x32xbf16, #tpu.memory_space<vmem>>, vector<32x32xbf16>
    %27 = arith.truncf %4 : vector<32x16xf32> to vector<32x16xbf16>
    %cst_15 = arith.constant dense<0.000000e+00> : vector<32x16xf32>
    %28 = tpu.matmul %26, %27, %cst_15 {dimension_numbers = #tpu.dot_dimension_numbers<[1], [0], [0], [1], [0, 0, 1, 1], [], []>} : vector<32x32xbf16>, vector<32x16xbf16>, vector<32x16xf32> -> vector<32x16xf32>
    %29 = arith.addf %28, %25 : vector<32x16xf32>
    %c16_i32 = arith.constant 16 : i32
    %30 = arith.muli %arg1, %c16_i32 : i32
    %31 = tpu.iota {dimensions = array<i32: 1>} : vector<1x16xi32>
    %32 = vector.broadcast %30 : i32 to vector<1x16xi32>
    %33 = arith.addi %32, %31 : vector<1x16xi32>
    %c16_i32_16 = arith.constant 16 : i32
    %34 = vector.broadcast %c16_i32_16 : i32 to vector<1x16xi32>
    %35 = arith.cmpi slt, %33, %34 : vector<1x16xi32>
    %cst_17 = arith.constant 0xFF800000 : f32
    %36 = vector.shape_cast %35 : vector<1x16xi1> to vector<1x16xi1>
    %37 = vector.broadcast %36 : vector<1x16xi1> to vector<32x16xi1>
    %38 = vector.broadcast %cst_17 : f32 to vector<32x16xf32>
    %39 = arith.select %37, %29, %38 : vector<32x16xi1>, vector<32x16xf32>
    %c0_18 = arith.constant 0 : index
    %c0_19 = arith.constant 0 : index
    %40 = vector.load %arg13[%c0_18, %c0_19] : memref<32x1xf32, #tpu.memory_space<vmem>>, vector<32x1xf32>
    %cst_20 = arith.constant dense<0xFF800000> : vector<32xf32>
    %41 = vector.multi_reduction <maximumf>, %39, %cst_20 [1] : vector<32x16xf32> to vector<32xf32>
    %42 = vector.shape_cast %41 : vector<32xf32> to vector<32x1xf32>
    %43 = arith.maximumf %40, %42 : vector<32x1xf32>
    %c0_21 = arith.constant 0 : index
    %c0_22 = arith.constant 0 : index
    %44 = vector.load %arg13[%c0_21, %c0_22] : memref<32x1xf32, #tpu.memory_space<vmem>>, vector<32x1xf32>
    tpu.vector_store %arg13[%c0_21, %c0_22], %43 {strides = array<i32>} : memref<32x1xf32, #tpu.memory_space<vmem>>, vector<32x1xf32>,
    %c0_i32_23 = arith.constant 0 : i32
    %45 = arith.cmpi eq, %arg1, %c0_i32_23 : i32
    %46 = arith.extui %45 : i1 to i32
    %c0_i32_24 = arith.constant 0 : i32
    %47 = arith.cmpi ne, %46, %c0_i32_24 : i32
    scf.if %47 {
      %c0_25 = arith.constant 0 : index
      %c0_26 = arith.constant 0 : index
      %48 = vector.load %arg13[%c0_25, %c0_26] : memref<32x1xf32, #tpu.memory_space<vmem>>, vector<32x1xf32>
      %c0_27 = arith.constant 0 : index
      %c0_28 = arith.constant 0 : index
      %49 = vector.load %arg7[%c0_27, %c0_28] : memref<32x32xbf16, #tpu.memory_space<vmem>>, vector<32x32xbf16>
      %50 = arith.truncf %48 : vector<32x1xf32> to vector<32x1xbf16>
      %cst_29 = arith.constant dense<0.000000e+00> : vector<32x1xf32>
      %51 = tpu.matmul %49, %50, %cst_29 {dimension_numbers = #tpu.dot_dimension_numbers<[1], [0], [0], [1], [0, 0, 1, 1], [], []>} : vector<32x32xbf16>, vector<32x1xbf16>, vector<32x1xf32> -> vector<32x1xf32>
      %c0_30 = arith.constant 0 : index
      %c0_31 = arith.constant 0 : index
      %52 = vector.load %arg8[%c0_30, %c0_31] : memref<32x1xf32, #tpu.memory_space<vmem>>, vector<32x1xf32>
      %53 = arith.addf %51, %52 : vector<32x1xf32>
      %cst_32 = arith.constant 0.000000e+00 : f32
      %54 = vector.broadcast %cst_32 : f32 to vector<32x1xf32>
      %55 = arith.maximumf %53, %54 : vector<32x1xf32>
      %c0_33 = arith.constant 0 : index
      %c0_34 = arith.constant 0 : index
      %56 = vector.load %arg9[%c0_33, %c0_34] : memref<24x32xbf16, #tpu.memory_space<vmem>>, vector<24x32xbf16>
      %57 = arith.truncf %55 : vector<32x1xf32> to vector<32x1xbf16>
      %cst_35 = arith.constant dense<0.000000e+00> : vector<24x1xf32>
      %58 = tpu.matmul %56, %57, %cst_35 {dimension_numbers = #tpu.dot_dimension_numbers<[1], [0], [0], [1], [0, 0, 1, 1], [], []>} : vector<24x32xbf16>, vector<32x1xbf16>, vector<24x1xf32> -> vector<24x1xf32>
      %c0_36 = arith.constant 0 : index
      %c0_37 = arith.constant 0 : index
      %59 = vector.load %arg10[%c0_36, %c0_37] : memref<24x1xf32, #tpu.memory_space<vmem>>, vector<24x1xf32>
      %60 = arith.addf %58, %59 : vector<24x1xf32>
      %c0_38 = arith.constant 0 : index
      %c0_39 = arith.constant 0 : index
      %c0_40 = arith.constant 0 : index
      %61 = vector.load %arg11[%c0_38, %c0_39, %c0_40] : memref<1x24x1xf32, #tpu.memory_space<vmem>>, vector<1x24x1xf32>
      %62 = vector.shape_cast %61 : vector<1x24x1xf32> to vector<24x1xf32>
      %63 = vector.shape_cast %60 : vector<24x1xf32> to vector<1x24x1xf32>
      tpu.vector_store %arg11[%c0_38, %c0_39, %c0_40], %63 {strides = array<i32>} : memref<1x24x1xf32, #tpu.memory_space<vmem>>, vector<1x24x1xf32>,
    } else {
    }
    return
  }
  func.func @transform_0(%arg0: i32, %arg1: i32) -> (i32, i32, i32) {
    %c0_i32 = arith.constant 0 : i32
    %c0_i32_0 = arith.constant 0 : i32
    return %arg0, %c0_i32, %arg1 : i32, i32, i32
  }
  func.func @transform_1(%arg0: i32, %arg1: i32) -> (i32, i32, i32) {
    %c0_i32 = arith.constant 0 : i32
    %c0_i32_0 = arith.constant 0 : i32
    %c0_i32_1 = arith.constant 0 : i32
    return %arg0, %c0_i32, %c0_i32_0 : i32, i32, i32
  }
  func.func @transform_2(%arg0: i32, %arg1: i32) -> (i32, i32) {
    %c0_i32 = arith.constant 0 : i32
    %c0_i32_0 = arith.constant 0 : i32
    %c0_i32_1 = arith.constant 0 : i32
    return %c0_i32, %c0_i32_0 : i32, i32
  }
  func.func @transform_3(%arg0: i32, %arg1: i32) -> (i32, i32) {
    %c0_i32 = arith.constant 0 : i32
    %c0_i32_0 = arith.constant 0 : i32
    %c0_i32_1 = arith.constant 0 : i32
    return %c0_i32, %c0_i32_0 : i32, i32
  }
  func.func @transform_4(%arg0: i32, %arg1: i32) -> (i32, i32) {
    %c0_i32 = arith.constant 0 : i32
    %c0_i32_0 = arith.constant 0 : i32
    %c0_i32_1 = arith.constant 0 : i32
    return %c0_i32, %c0_i32_0 : i32, i32
  }
  func.func @transform_5(%arg0: i32, %arg1: i32) -> (i32, i32) {
    %c0_i32 = arith.constant 0 : i32
    %c0_i32_0 = arith.constant 0 : i32
    %c0_i32_1 = arith.constant 0 : i32
    return %c0_i32, %c0_i32_0 : i32, i32
  }
  func.func @transform_6(%arg0: i32, %arg1: i32) -> (i32, i32) {
    %c0_i32 = arith.constant 0 : i32
    %c0_i32_0 = arith.constant 0 : i32
    %c0_i32_1 = arith.constant 0 : i32
    return %c0_i32, %c0_i32_0 : i32, i32
  }
  func.func @transform_7(%arg0: i32, %arg1: i32) -> (i32, i32) {
    %c0_i32 = arith.constant 0 : i32
    %c0_i32_0 = arith.constant 0 : i32
    %c0_i32_1 = arith.constant 0 : i32
    return %c0_i32, %c0_i32_0 : i32, i32
  }
  func.func @transform_8(%arg0: i32, %arg1: i32) -> (i32, i32) {
    %c0_i32 = arith.constant 0 : i32
    %c0_i32_0 = arith.constant 0 : i32
    %c0_i32_1 = arith.constant 0 : i32
    return %c0_i32, %c0_i32_0 : i32, i32
  }
  func.func @transform_9(%arg0: i32, %arg1: i32) -> (i32, i32, i32) {
    %c0_i32 = arith.constant 0 : i32
    %c0_i32_0 = arith.constant 0 : i32
    %c0_i32_1 = arith.constant 0 : i32
    return %arg0, %c0_i32, %c0_i32_0 : i32, i32, i32
  }
}

</mosaic_0001>

<bundles_post_ra>
// kernel: model_forward.10
= control target key start
LH: loop header
LB: loop body
LE: loop exit
PB: predicated region body
PF: predicated region fallthrough
CT: control target
= control target key end

     0   :  { %s738_s15 = smov 0   ;;  %s740_s16 = smov 0   ;;  %s810_s0 = inlined_call_operand.vmem [shape: f32[2,32,16], index: 0, kind: input, shape index: {}, may-alias: {0,1}]   ;;  %s811_s1 = inlined_call_operand.vmem [shape: f32[2,32,16], index: 1, kind: input, shape index: {}, may-alias: {0,1}]   ;;  %s812_s2 = inlined_call_operand.vmem [shape: bf16[32,32], index: 2, kind: input, shape index: {}]   ;;  %s813_s3 = inlined_call_operand.vmem [shape: bf16[32,32], index: 3, kind: input, shape index: {}]   ;;  %s814_s4 = inlined_call_operand.vmem [shape: f32[2,1,16], index: 4, kind: output, shape index: {}]  }
   0x1   :  { %s742_s17 = smov 0  }
   0x2 LB: > { %s26_s18 = sadd.s32 1, %s705_s16  ;;  %p595_p0 = scmp.ge.s32.totalorder %s709_s17, 1  ;;  %s709_s17 = sphi %s742_s17, %s14_s17   ;;  %s705_s16 = sphi %s740_s16, %s816_s16   ;;  %s701_s15 = sphi %s738_s15, %s815_s15  }
   0x3   : > { %p28_p1 = scmp.ge.s32.totalorder %s26_s18, 2  ;;  %p189_p2 = scmp.lt.s32.totalorder %s709_s17, 3 }
   0x5   : > { %s818_s18 = smov (%p28_p1, %s26_s18), 0  ;;  %p190_p3 = pnand %p595_p0, %p189_p2 }
   0x6   : > { %p221_p4 = scmp.lt.s32.totalorder (!%p190_p3), %s701_s15, 1  ;;  %vm262_vm0 = vcmask (!%p190_p3), 261120   ;;  %v675_v0 = vld [vmem:[%s812_s2] sm:$0xff] (!%p190_p3)   ;;  %v676_v14 = vld [vmem:[%s812_s2 + $0x8] sm:$0xff] (!%p190_p3)   ;;  %vm323_vm1 = vcmask (!%p190_p3), 122880   ;;  %v711_v16 = vmov (!%p190_p3), 0.0  }
   0x7   : > { %193 = sbr.rel (%p190_p3) target bundleno = 898 (0x382), region = 36  ;;  %636 = vmatprep.mubr.msk.bf16.mxu1 (!%p190_p3), %vm262_vm0, %v675_v0  ;;  %v677_v1 = vld [vmem:[%s813_s3] sm:$0xff] (!%p190_p3)   ;;  %v678_v15 = vld [vmem:[%s813_s3 + $0x8] sm:$0xff] (!%p190_p3)   ;;  %vm712_vm2 = vmmov (!%p190_p3), 0   ;;  %vm320_vm3 = vcmask (!%p190_p3), 130048  }
   0x8   : > { %628 = vmatprep.mubr.msk.bf16.mxu0 (!%p190_p3), %vm262_vm0, %v677_v1 }
   0xe   : > { %s820_s15 = smov (!%p221_p4, %s701_s15), 1 }
   0xf   : > { %s611_s23 = sshll.u32 %s820_s15, 5  ;;  %s785_s10 = scalar_lea.vmem %s814_s4, %s820_s15 }
  0x10   : > { %s228_s26 = scalar_lea.vmem %s810_s0, %s611_s23  ;;  %s233_s29 = scalar_lea.vmem %s811_s1, %s611_s23  ;;  %324 = vst.msk [vmem:[%s785_s10] sm:$0x1] %vm323_vm1, %v711_v16 }
  0x11   : > { %v329_v2 = vld [vmem:[%s228_s26] sm:$0xff]  ;;  %v330_v3 = vld [vmem:[%s228_s26 + $0x8] sm:$0xff]  ;;  %v331_v4 = vld [vmem:[%s228_s26 + $0x10] sm:$0xff] }
  0x12   : > { %v333_v5 = vpack.c.bf16 %v330_v3, %v329_v2  ;;  %v332_v6 = vld [vmem:[%s228_s26 + $0x18] sm:$0xff]  ;;  %v246_v7 = vld [vmem:[%s233_s29] sm:$0xff]  ;;  %v247_v8 = vld [vmem:[%s233_s29 + $0x8] sm:$0xff] }
  0x13   : > { %v334_v9 = vpack.c.bf16 %v332_v6, %v331_v4  ;;  %v250_v10 = vpack.c.bf16 %v247_v8, %v246_v7  ;;  %v248_v11 = vld [vmem:[%s233_s29 + $0x10] sm:$0xff]  ;;  %v249_v12 = vld [vmem:[%s233_s29 + $0x18] sm:$0xff] }
  0x14   : > { %632 = vmatprep.subr.bf16.mxu1 %v333_v5  ;;  %v251_v13 = vpack.c.bf16 %v249_v12, %v248_v11 }
  0x15   : > { %633 = vmatpush3.bf16.msra.mxu1 %v333_v5  ;;  %624 = vmatprep.subr.bf16.mxu0 %v250_v10 }
  0x16   : > { %634 = vmatprep.subr.bf16.mxu1 %v334_v9  ;;  %625 = vmatpush3.bf16.msra.mxu0 %v250_v10 }
  0x17   : > { %626 = vmatprep.subr.bf16.mxu0 %v251_v13  ;;  %v505_v0 = vld [vmem:[%s785_s10] sm:$0x1] }
  0x19   : > { %635 = vmatpush3.bf16.msra.mxu1 %v334_v9 }
  0x1a   : > { %627 = vmatpush3.bf16.msra.mxu0 %v251_v13 }
  0x1b   : > { %640 = vmatprep.subr.bf16.mxu0 %v711_v16 }
  0x1c   : > { %637 = vmatmul.mubr.msk.bf16.vlgmr.msra.gmra.mrb[0].mxu1 %vm262_vm0, %v676_v14 }
  0x1d   : > { %629 = vmatmul.mubr.msk.bf16.vlgmr.msra.gmra.mrb[0].mxu0 %vm262_vm0, %v678_v15 }
  0x1e   : > { %644 = vmatprep.mubr.msk.bf16.mxu0 %vm712_vm2, %v711_v16 }
  0xef   : > { %v638_v17 = vpop.f32.mrb[0].mxu1 }
  0xf0   : > { %v386_v18 = vpop.f32.mrb[1].mxu1  ;;  %v630_v19 = vpop.f32.mrb[0].mxu0 }
  0xf1   : > { %v639_v20 = vpop.f32.mrb[2].mxu1  ;;  %v303_v21 = vpop.f32.mrb[1].mxu0 }
  0xf2   : > { %v402_v22 = vpack.c.bf16 %v639_v20, %v638_v17  ;;  %v389_v23 = vpop.f32.mrb[3].mxu1  ;;  %v631_v24 = vpop.f32.mrb[2].mxu0 }
  0xf3   : > { %v401_v25 = vpack.c.bf16 %v389_v23, %v386_v18  ;;  %v319_v26 = vpack.c.bf16 %v631_v24, %v630_v19  ;;  %v306_v27 = vpop.f32.mrb[3].mxu0 }
  0xf4   : > { %v318_v28 = vpack.c.bf16 %v306_v27, %v303_v21 }
  0xf5   : > { %405 = vxpose.xlu0.c.b16.start [1/2] (short) (narrow) %v401_v25, 16  ;;  %322 = vst.msk [vmem:[#allocation2 + $0x8] sm:$0xff] %vm320_vm3, %v319_v26 }
  0xf6   : > { %321 = vst.msk [vmem:[#allocation2] sm:$0xff] %vm320_vm3, %v318_v28 }
  0xf9   : > { %406 = vxpose.xlu0.c.b16.end [2/2] (short) (narrow) %v402_v22, 16 }
  0xfc   : > { %v404_v30 = vld [vmem:[#allocation2 + $0x8] sm:$0xff] }
  0xfd   : > { %v403_v29 = vld [vmem:[#allocation2] sm:$0xff] }
  0xfe   : > { %641 = vmatpush3.bf16.msra.mxu0 %v403_v29 }
  0xff   : > { %642 = vmatprep.subr.bf16.mxu0 %v711_v16 }
 0x102   : > { %643 = vmatpush3.bf16.msra.mxu0 %v404_v30 }
 0x15b   : > { %v413_v31 = vpop.trf.xlu0 }
 0x15c   : > { %645 = vmatmul.mubr.msk.bf16.vlgmr.msra.gmra.mrb[4].mxu0 %vm262_vm0, %v413_v31 }
 0x22f   : > { %v458_v32 = vpop.f32.mrb[4].mxu0 }
 0x230   : > { %v465_v33 = vmul.f32 0.17677669, %v458_v32  ;;  %v646_v34 = vpop.f32.mrb[5].mxu0 }
 0x231   : > { %v461_v35 = vpop.f32.mrb[6].mxu0 }
 0x232   : > { %v466_v36 = vmul.f32 0.17677669, %v461_v35  ;;  %v647_v37 = vpop.f32.mrb[7].mxu0  ;;  %v468_v38 = vsel %vm320_vm3, %v465_v33, -inf }
 0x233   : > { %469 = vmax.xlane.f32.xlu1 %v468_v38 }
 0x234   : > { %v471_v39 = vsel %vm320_vm3, %v466_v36, -inf }
 0x237   : > { %472 = vmax.xlane.f32.xlu1 %v471_v39 }
 0x2c0   : > { %v470_v40 = vpop.xlane.xlu1 %469 }
 0x2c1   : > { %v474_v41 = vsub.f32 %v465_v33, %v470_v40 }
 0x2c3   : > { %v476_v42 = vmul.f32 1.442695, %v474_v41 }
 0x2c4   : > { %v473_v43 = vpop.xlane.xlu1 %472 }
 0x2c5   : > { %679 = vpow2.f32 %v476_v42  ;;  %v475_v44 = vsub.f32 %v466_v36, %v473_v43 }
 0x2c7   : > { %v478_v45 = vmul.f32 1.442695, %v475_v44 }
 0x2c9   : > { %681 = vpow2.f32 %v478_v45 }
 0x2cf   : > { %v680_v46 = vpop.eup %679 }
 0x2d0   : > { %v480_v47 = vsel %vm320_vm3, %v680_v46, 0.0 }
 0x2d1   : > { %481 = vadd.xlane.f32.xlu0 %v480_v47 }
 0x2d3   : > { %v682_v48 = vpop.eup %681 }
 0x2d4   : > { %v483_v49 = vsel %vm320_vm3, %v682_v48, 0.0 }
 0x2d5   : > { %484 = vadd.xlane.f32.xlu1 %v483_v49 }
 0x35e   : > { %v482_v50 = vpop.xlane.xlu0 %481 }
 0x35f   : > { %683 = vrcp.f32 %v482_v50 }
 0x362   : > { %v485_v51 = vpop.xlane.xlu1 %484 }
 0x363   : > { %685 = vrcp.f32 %v485_v51 }
 0x369   : > { %v684_v52 = vpop.eup %683 }
 0x36a   : > { %v487_v53 = vmul.f32 %v684_v52, %v680_v46 }
 0x36c   : > { %v506_v56 = vsel %vm320_vm3, %v487_v53, 0.0 }
 0x36d   : > { %v686_v54 = vpop.eup %685 }
 0x36e   : > { %v489_v55 = vmul.f32 %v686_v54, %v682_v48 }
 0x370   : > { %v507_v57 = vsel %vm320_vm3, %v489_v55, 0.0 }
 0x371   : > { %v508_v58 = vadd.f32 %v507_v57, %v506_v56 }
 0x373   : > { %v509_v59 = vrot.slane %v508_v58, 4 }
 0x375   : > { %v510_v60 = vadd.f32 %v509_v59, %v508_v58 }
 0x377   : > { %v511_v61 = vrot.slane %v510_v60, 2 }
 0x379   : > { %v512_v62 = vadd.f32 %v511_v61, %v510_v60 }
 0x37b   : > { %v513_v63 = vrot.slane %v512_v62, 1 }
 0x37d   : > { %v514_v1 = vadd.f32 %v513_v63, %v512_v62 }
 0x37f   : > { %v515_v2 = vadd.f32 %v514_v1, %v505_v0 }
 0x381   : > { %517 = vst.msk [vmem:[%s785_s10] sm:$0x1] %vm323_vm1, %v515_v2 }
 0x382 PF: > { %s14_s17 = sadd.s32 1, %s709_s17   ;;  %s815_s15 = smov %s705_s16 }
 0x383   : > { %p11_p5 = scmp.ge.s32.totalorder %s14_s17, 4   ;;  %s816_s16 = smov %s818_s18 }
 0x385   :  { %13 = sbr.rel (!%p11_p5) target bundleno = 2 (0x2), region = 73 }

// kernel: model_forward.8
= control target key start
LH: loop header
LB: loop body
LE: loop exit
PB: predicated region body
PF: predicated region fallthrough
CT: control target
= control target key end

     0   :  { %s1163_s27 = smov 0   ;;  %s1165_s28 = smov 0   ;;  %s1256_s0 = inlined_call_operand.vmem [shape: f32[2,3,16], index: 0, kind: input, shape index: {}]   ;;  %s1257_s1 = inlined_call_operand.vmem [shape: bf16[8,3], index: 1, kind: input, shape index: {}]   ;;  %s1258_s2 = inlined_call_operand.vmem [shape: bf16[32,8], index: 2, kind: input, shape index: {}]   ;;  %s1259_s3 = inlined_call_operand.vmem [shape: bf16[32,32], index: 3, kind: input, shape index: {}]   ;;  %s1260_s4 = inlined_call_operand.vmem [shape: bf16[32,32], index: 4, kind: input, shape index: {}]   ;;  %s1261_s5 = inlined_call_operand.vmem [shape: bf16[32,32], index: 5, kind: input, shape index: {}]   ;;  %s1262_s6 = inlined_call_operand.vmem [shape: bf16[32,32], index: 6, kind: input, shape index: {}]   ;;  %s1263_s7 = inlined_call_operand.vmem [shape: f32[2,32,16], index: 7, kind: output, shape index: {0}]   ;;  %s1264_s8 = inlined_call_operand.vmem [shape: f32[2,32,16], index: 8, kind: output, shape index: {1}]  }
   0x1   :  { %s1167_s29 = smov 0  }
   0x2 LB: > { %s31_s30 = sadd.s32 1, %s1109_s28  ;;  %p957_p0 = scmp.ge.s32.totalorder %s1113_s29, 1  ;;  %s1113_s29 = sphi %s1167_s29, %s19_s29   ;;  %s1109_s28 = sphi %s1165_s28, %s1266_s28   ;;  %s1105_s27 = sphi %s1163_s27, %s1265_s27  }
   0x3   : > { %p33_p1 = scmp.ge.s32.totalorder %s31_s30, 2  ;;  %p285_p2 = scmp.lt.s32.totalorder %s1113_s29, 3 }
   0x5   : > { %s1268_s30 = smov (%p33_p1, %s31_s30), 0  ;;  %p286_p3 = pnand %p957_p0, %p285_p2 }
   0x6   : > { %p332_p4 = scmp.lt.s32.totalorder (!%p286_p3), %s1105_s27, 1  ;;  %vm363_vm0 = vcmask (!%p286_p3), 1040384   ;;  %v1115_v0 = vmov (!%p286_p3), 0.0   ;;  %vm364_vm1 = vcmask (!%p286_p3), 1041408   ;;  %v1116_v1 = vmov (!%p286_p3), 65535   ;;  %v1081_v8 = vld [vmem:[%s1258_s2] sm:$0xff] (!%p286_p3)  }
   0x7   : > { %289 = sbr.rel (%p286_p3) target bundleno = 1375 (0x55f), region = 48  ;;  %1009 = vmatprep.subr.bf16.mxu0 (!%p286_p3), %v1115_v0  ;;  %v365_v2 = vsel (!%p286_p3), %vm363_vm0, 4294967295, %v1116_v1  ;;  %vm1117_vm2 = vmmov (!%p286_p3), 0   ;;  %v358_v7 = vld [vmem:[%s1257_s1] sm:$0xf] (!%p286_p3)  ;;  %vm359_vm3 = vcmask (!%p286_p3), 23552  }
   0x8   : > { %1011 = vmatprep.mubr.msk.bf16.mxu0 (!%p286_p3), %vm1117_vm2, %v1115_v0  ;;  %v366_v3 = vsel (!%p286_p3), %vm364_vm1, %v365_v2, 0  ;;  %vm428_vm4 = vcmask (!%p286_p3), 64512   ;;  %vm435_vm6 = vcmask (!%p286_p3), 1043456   ;;  %v1082_v17 = vld [vmem:[%s1258_s2 + $0x8] sm:$0xff] (!%p286_p3)   ;;  %v1083_v18 = vld [vmem:[%s1259_s3] sm:$0xff] (!%p286_p3)   ;;  %vm521_vm7 = vcmask (!%p286_p3), 261120  }
   0x9   : > { %1017 = vmatprep.mubr.msk.bf16.mxu1 (!%p286_p3), %vm428_vm4, %v1081_v8  ;;  %vm500_vm9 = vcmask (!%p286_p3), 130048   ;;  %v1084_v33 = vld [vmem:[%s1259_s3 + $0x8] sm:$0xff] (!%p286_p3)   ;;  %v1085_v34 = vld [vmem:[%s1260_s4] sm:$0xff] (!%p286_p3)  }
   0xa   : > { %v1086_v49 = vld [vmem:[%s1260_s4 + $0x8] sm:$0xff] (!%p286_p3)   ;;  %v1087_v50 = vld [vmem:[%s1261_s5] sm:$0xff] (!%p286_p3)  }
   0xb   : > { %v1088_v61 = vld [vmem:[%s1261_s5 + $0x8] sm:$0xff] (!%p286_p3)   ;;  %v1089_v62 = vld [vmem:[%s1262_s6] sm:$0xff] (!%p286_p3)  }
   0xe   : > { %s1270_s27 = smov (!%p332_p4, %s1105_s27), 1 }
   0xf   : > { %s958_s9 = sshll.u32 %s1270_s27, 2  ;;  %s986_s21 = sshll.u32 %s1270_s27, 5 }
  0x10   : > { %s338_s12 = scalar_lea.vmem %s1256_s0, %s958_s9  ;;  %s346_s24 = scalar_lea.vmem %s1263_s7, %s986_s21 }
  0x11   : > { %v356_v4 = vld [vmem:[%s338_s12] sm:$0x7] }
  0x12   : > { %v357_v5 = vpack.c.bf16 %v356_v4, %v356_v4 }
  0x14   : > { %v368_v6 = vand.u32 %v366_v3, %v357_v5 }
  0x16   : > { %1010 = vmatpush3.bf16.msra.mxu0 %v368_v6 }
  0x19   : > { %1012 = vmatmul.mubr.msk.bf16.vlgmr.msra.gmra.mrb[0].mxu0 %vm359_vm3, %v358_v7 }
  0x1a   : > { %1025 = vmatprep.mubr.msk.bf16.mxu0 %vm521_vm7, %v1083_v18 }
  0xec   : > { %v404_v9 = vpop.f32.mrb[0].mxu0 }
  0xed   : > { %vm410_vm5 = vcmp.ge.f32.partialorder %v404_v9, 0.0  ;;  %v411_v10 = vmul.f32 0.2, %v404_v9  ;;  %v1013_v11 = vpop.f32.mrb[1].mxu0 }
  0xee   : > { %v407_v12 = vpop.f32.mrb[2].mxu0 }
  0xef   : > { %v1014_v13 = vpop.f32.mrb[3].mxu0  ;;  %v412_v14 = vsel %vm410_vm5, %v404_v9, %v411_v10 }
  0xf0   : > { %v417_v15 = vpack.c.bf16 %v412_v14, %v412_v14  ;;  %v1090_v13 = vld [vmem:[%s1262_s6 + $0x8] sm:$0xff]  }
  0xf2   : > { %1053 = vmatprep.subr.msk.bf16.mxu1 %vm435_vm6, %v417_v15  ;;  %v437_v16 = vsel %vm435_vm6, %v417_v15, 0 }
  0xf3   : > { %1016 = vmatpush3.bf16.msra.mxu1 %v437_v16 }
  0xf6   : > { %1018 = vmatmul.mubr.msk.bf16.vlgmr.msra.gmra.mrb[0].mxu1 %vm428_vm4, %v1082_v17 }
  0xf7   : > { %1033 = vmatprep.mubr.msk.bf16.mxu1 %vm521_vm7, %v1085_v34 }
 0x1c9   : > { %v1019_v19 = vpop.f32.mrb[0].mxu1 }
 0x1ca   : > { %vm490_vm8 = vcmp.ge.f32.partialorder %v1019_v19, 0.0  ;;  %v494_v20 = vmul.f32 0.2, %v1019_v19  ;;  %v473_v21 = vpop.f32.mrb[1].mxu1 }
 0x1cb   : > { %vm488_vm10 = vcmp.ge.f32.partialorder %v473_v21, 0.0  ;;  %v492_v22 = vmul.f32 0.2, %v473_v21  ;;  %v1020_v23 = vpop.f32.mrb[2].mxu1 }
 0x1cc   : > { %v498_v24 = vsel %vm490_vm8, %v1019_v19, %v494_v20  ;;  %vm491_vm11 = vcmp.ge.f32.partialorder %v1020_v23, 0.0  ;;  %v495_v25 = vmul.f32 0.2, %v1020_v23  ;;  %v476_v26 = vpop.f32.mrb[3].mxu1 }
 0x1cd   : > { %503 = vst.msk [vmem:[%s346_s24 + $0x10] sm:$0xff] %vm500_vm9, %v498_v24  ;;  %v496_v27 = vsel %vm488_vm10, %v473_v21, %v492_v22  ;;  %vm489_vm12 = vcmp.ge.f32.partialorder %v476_v26, 0.0  ;;  %v493_v28 = vmul.f32 0.2, %v476_v26 }
 0x1ce   : > { %501 = vst.msk [vmem:[%s346_s24] sm:$0xff] %vm500_vm9, %v496_v27  ;;  %v499_v29 = vsel %vm491_vm11, %v1020_v23, %v495_v25 }
 0x1cf   : > { %504 = vst.msk [vmem:[%s346_s24 + $0x18] sm:$0xff] %vm500_vm9, %v499_v29  ;;  %v497_v30 = vsel %vm489_vm12, %v476_v26, %v493_v28  ;;  %v510_v32 = vpack.c.bf16 %v499_v29, %v498_v24 }
 0x1d0   : > { %502 = vst.msk [vmem:[%s346_s24 + $0x8] sm:$0xff] %vm500_vm9, %v497_v30  ;;  %v509_v31 = vpack.c.bf16 %v497_v30, %v496_v27  ;;  %s354_s24 = scalar_lea.vmem %s1264_s8, %s986_s21 }
 0x1d2   : > { %1021 = vmatprep.subr.bf16.mxu0 %v509_v31 }
 0x1d3   : > { %1022 = vmatpush3.bf16.msra.mxu0 %v509_v31 }
 0x1d4   : > { %1023 = vmatprep.subr.bf16.mxu0 %v510_v32 }
 0x1d7   : > { %1024 = vmatpush3.bf16.msra.mxu0 %v510_v32 }
 0x1da   : > { %1026 = vmatmul.mubr.msk.bf16.vlgmr.msra.gmra.mrb[4].mxu0 %vm521_vm7, %v1084_v33 }
 0x1db   : > { %1041 = vmatprep.mubr.msk.bf16.mxu0 %vm521_vm7, %v1087_v50 }
 0x2ad   : > { %v1027_v35 = vpop.f32.mrb[4].mxu0 }
 0x2ae   : > { %v583_v36 = vmul.f32 0.2, %v1027_v35  ;;  %v562_v37 = vpop.f32.mrb[5].mxu0  ;;  %vm579_vm13 = vcmp.ge.f32.partialorder %v1027_v35, 0.0 }
 0x2af   : > { %v581_v38 = vmul.f32 0.2, %v562_v37  ;;  %v1028_v39 = vpop.f32.mrb[6].mxu0  ;;  %vm577_vm14 = vcmp.ge.f32.partialorder %v562_v37, 0.0 }
 0x2b0   : > { %vm580_vm15 = vcmp.ge.f32.partialorder %v1028_v39, 0.0  ;;  %v584_v40 = vmul.f32 0.2, %v1028_v39  ;;  %v565_v41 = vpop.f32.mrb[7].mxu0  ;;  %v587_v43 = vsel %vm579_vm13, %v1027_v35, %v583_v36 }
 0x2b1   : > { %vm578_vm0 = vcmp.ge.f32.partialorder %v565_v41, 0.0  ;;  %v582_v42 = vmul.f32 0.2, %v565_v41  ;;  %v585_v45 = vsel %vm577_vm14, %v562_v37, %v581_v38 }
 0x2b2   : > { %v588_v44 = vsel %vm580_vm15, %v1028_v39, %v584_v40 }
 0x2b3   : > { %v586_v46 = vsel %vm578_vm0, %v565_v41, %v582_v42  ;;  %v594_v47 = vpack.c.bf16 %v588_v44, %v587_v43 }
 0x2b4   : > { %v593_v48 = vpack.c.bf16 %v586_v46, %v585_v45 }
 0x2b6   : > { %1029 = vmatprep.subr.bf16.mxu1 %v593_v48 }
 0x2b7   : > { %1030 = vmatpush3.bf16.msra.mxu1 %v593_v48 }
 0x2b8   : > { %1031 = vmatprep.subr.bf16.mxu1 %v594_v47 }
 0x2bb   : > { %1032 = vmatpush3.bf16.msra.mxu1 %v594_v47 }
 0x2be   : > { %1034 = vmatmul.mubr.msk.bf16.vlgmr.msra.gmra.mrb[4].mxu1 %vm521_vm7, %v1086_v49 }
 0x2bf   : > { %1049 = vmatprep.mubr.msk.bf16.mxu1 %vm521_vm7, %v1089_v62 }
 0x391   : > { %v1035_v51 = vpop.f32.mrb[4].mxu1 }
 0x392   : > { %v645_v52 = vpop.f32.mrb[5].mxu1  ;;  %v662_v58 = vadd.f32 %v1035_v51, %v498_v24 }
 0x393   : > { %v1036_v53 = vpop.f32.mrb[6].mxu1  ;;  %v660_v55 = vadd.f32 %v645_v52, %v496_v27 }
 0x394   : > { %v648_v54 = vpop.f32.mrb[7].mxu1  ;;  %v663_v56 = vadd.f32 %v1036_v53, %v499_v29 }
 0x395   : > { %v661_v57 = vadd.f32 %v648_v54, %v497_v30 }
 0x396   : > { %v669_v60 = vpack.c.bf16 %v663_v56, %v662_v58 }
 0x397   : > { %v668_v59 = vpack.c.bf16 %v661_v57, %v660_v55 }
 0x399   : > { %1037 = vmatprep.subr.bf16.mxu0 %v668_v59 }
 0x39a   : > { %1038 = vmatpush3.bf16.msra.mxu0 %v668_v59 }
 0x39b   : > { %1039 = vmatprep.subr.bf16.mxu0 %v669_v60 }
 0x39e   : > { %1040 = vmatpush3.bf16.msra.mxu0 %v669_v60 }
 0x3a1   : > { %1042 = vmatmul.mubr.msk.bf16.vlgmr.msra.gmra.mrb[8].mxu0 %vm521_vm7, %v1088_v61 }
 0x474   : > { %v1043_v63 = vpop.f32.mrb[8].mxu0 }
 0x475   : > { %v741_v0 = vmul.f32 0.2, %v1043_v63  ;;  %v720_v1 = vpop.f32.mrb[9].mxu0  ;;  %vm737_vm1 = vcmp.ge.f32.partialorder %v1043_v63, 0.0 }
 0x476   : > { %v739_v2 = vmul.f32 0.2, %v720_v1  ;;  %v1044_v3 = vpop.f32.mrb[10].mxu0  ;;  %vm735_vm2 = vcmp.ge.f32.partialorder %v720_v1, 0.0 }
 0x477   : > { %vm738_vm3 = vcmp.ge.f32.partialorder %v1044_v3, 0.0  ;;  %v742_v4 = vmul.f32 0.2, %v1044_v3  ;;  %v723_v5 = vpop.f32.mrb[11].mxu0  ;;  %v745_v7 = vsel %vm737_vm1, %v1043_v63, %v741_v0 }
 0x478   : > { %vm736_vm4 = vcmp.ge.f32.partialorder %v723_v5, 0.0  ;;  %v740_v6 = vmul.f32 0.2, %v723_v5  ;;  %v743_v9 = vsel %vm735_vm2, %v720_v1, %v739_v2 }
 0x479   : > { %v746_v8 = vsel %vm738_vm3, %v1044_v3, %v742_v4 }
 0x47a   : > { %v744_v10 = vsel %vm736_vm4, %v723_v5, %v740_v6  ;;  %v752_v11 = vpack.c.bf16 %v746_v8, %v745_v7 }
 0x47b   : > { %v751_v12 = vpack.c.bf16 %v744_v10, %v743_v9 }
 0x47d   : > { %1045 = vmatprep.subr.bf16.mxu1 %v751_v12 }
 0x47e   : > { %1046 = vmatpush3.bf16.msra.mxu1 %v751_v12 }
 0x47f   : > { %1047 = vmatprep.subr.bf16.mxu1 %v752_v11 }
 0x482   : > { %1048 = vmatpush3.bf16.msra.mxu1 %v752_v11 }
 0x485   : > { %1050 = vmatmul.mubr.msk.bf16.vlgmr.msra.gmra.mrb[8].mxu1 %vm521_vm7, %v1090_v13 }
 0x558   : > { %v1051_v14 = vpop.f32.mrb[8].mxu1 }
 0x559   : > { %v820_v15 = vadd.f32 %v1051_v14, %v662_v58  ;;  %v803_v16 = vpop.f32.mrb[9].mxu1 }
 0x55a   : > { %v818_v17 = vadd.f32 %v803_v16, %v660_v55  ;;  %v1052_v18 = vpop.f32.mrb[10].mxu1 }
 0x55b   : > { %824 = vst.msk [vmem:[%s354_s24 + $0x10] sm:$0xff] %vm500_vm9, %v820_v15  ;;  %v821_v19 = vadd.f32 %v1052_v18, %v663_v56  ;;  %v806_v20 = vpop.f32.mrb[11].mxu1 }
 0x55c   : > { %822 = vst.msk [vmem:[%s354_s24] sm:$0xff] %vm500_vm9, %v818_v17  ;;  %v819_v21 = vadd.f32 %v806_v20, %v661_v57 }
 0x55d   : > { %825 = vst.msk [vmem:[%s354_s24 + $0x18] sm:$0xff] %vm500_vm9, %v821_v19 }
 0x55e   : > { %823 = vst.msk [vmem:[%s354_s24 + $0x8] sm:$0xff] %vm500_vm9, %v819_v21 }
 0x55f PF: > { %s19_s29 = sadd.s32 1, %s1113_s29   ;;  %s1265_s27 = smov %s1109_s28 }
 0x560   : > { %p16_p5 = scmp.ge.s32.totalorder %s19_s29, 4   ;;  %s1266_s28 = smov %s1268_s30 }
 0x562   :  { %18 = sbr.rel (!%p16_p5) target bundleno = 2 (0x2), region = 90 }

// kernel: model_forward.9
= control target key start
LH: loop header
LB: loop body
LE: loop exit
PB: predicated region body
PF: predicated region fallthrough
CT: control target
= control target key end

     0   :  { %14 = vsyncpa [#allocation3], 0  ;;  %s1457_s0 = inlined_call_operand.vmem [shape: f32[2,3,16], index: 0, kind: input, shape index: {}]   ;;  %s1458_s1 = inlined_call_operand.vmem [shape: bf16[8,3], index: 1, kind: input, shape index: {}]   ;;  %s1459_s2 = inlined_call_operand.vmem [shape: bf16[32,8], index: 2, kind: input, shape index: {}]   ;;  %s1460_s3 = inlined_call_operand.vmem [shape: bf16[32,32], index: 3, kind: input, shape index: {}]   ;;  %s1461_s4 = inlined_call_operand.vmem [shape: bf16[32,32], index: 4, kind: input, shape index: {}]   ;;  %s1462_s5 = inlined_call_operand.vmem [shape: bf16[32,32], index: 5, kind: input, shape index: {}]   ;;  %s1463_s6 = inlined_call_operand.vmem [shape: bf16[32,32], index: 6, kind: input, shape index: {}]   ;;  %s1464_s7 = inlined_call_operand.hbm [shape: f32[2,32,16], index: 7, kind: output, shape index: {0}]   ;;  %s1465_s8 = inlined_call_operand.vmem [shape: f32[2,32,16], index: 8, kind: output, shape index: {1}]  }
   0x1   :  { %16 = vsyncpa [#allocation3 + $0x1], 0  ;;  %s1259_s27 = smov 0   ;;  %s1261_s28 = smov 0  }
   0x2   :  { %s1263_s29 = smov 0   ;;  %s1265_s30 = smov 0  }
   0x3   :  { %s1267_s9 = smov 0   ;;  %s1269_s10 = smov 0  }
   0x4 LB: > { %s955_s11 = sadd.s32 4294967295, %s1206_s10   ;;  %s956_s12 = sadd.s32 4294967294, %s1206_s10   ;;  %s1206_s10 = sphi %s1269_s10, %s22_s10   ;;  %s1202_s9 = sphi %s1267_s9, %s1472_s9   ;;  %s1198_s30 = sphi %s1265_s30, %s1471_s30   ;;  %s1194_s29 = sphi %s1263_s29, %s1470_s29   ;;  %s1190_s28 = sphi %s1261_s28, %s1469_s28   ;;  %s1186_s27 = sphi %s1259_s27, %s1468_s27  }
   0x5   : > { %s34_s13 = sadd.s32 1, %s1202_s9  ;;  %s197_s14 = sadd.s32 1, %s1194_s29 }
   0x6   : > { %p36_p0 = scmp.ge.s32.totalorder %s34_s13, 2  ;;  %p207_p1 = scmp.ne.s32.totalorder %s1194_s29, %s1190_s28 }
   0x7   : > { %p208_p2 = scmp.eq.s32.totalorder %s955_s11, 1  ;;  %p213_p3 = scmp.ne.s32.totalorder %s1190_s28, %s1186_s27 }
   0x8   : > { %s1474_s13 = smov (%p36_p0, %s34_s13), 0  ;;  %p214_p5 = scmp.eq.s32.totalorder %s956_s12, 1 }
   0x9   : > { %p1299_p4 = por %p208_p2, %p207_p1  ;;  %s192_s16 = ssub.s32 %s1202_s9, %s1474_s13 }
   0xa   : > { %p959_p6 = scmp.ge.s32.totalorder %s1206_s10, 1  ;;  %p195_p7 = scmp.eq.s32.totalorder %s192_s16, 0 }
   0xb   : > { %p1306_p8 = por %p214_p5, %p213_p3  ;;  %p288_p9 = scmp.lt.s32.totalorder %s1206_s10, 3 }
   0xc   : > { %s1312_s18 = scalar_select %p195_p7, %s1194_s29, %s197_s14  }
   0xd   : > { %p289_p10 = pnand %p959_p6, %p288_p9 }
   0xe   : > { %p332_p11 = scmp.lt.s32.totalorder (!%p289_p10), %s1198_s30, 1  ;;  %vm355_vm0 = vcmask (!%p289_p10), 1040384   ;;  %v1208_v0 = vmov (!%p289_p10), 0.0   ;;  %vm356_vm1 = vcmask (!%p289_p10), 1041408   ;;  %v1209_v1 = vmov (!%p289_p10), 65535   ;;  %v1118_v8 = vld [vmem:[%s1459_s2] sm:$0xff] (!%p289_p10)  }
   0xf   : > { %292 = sbr.rel (%p289_p10) target bundleno = 1384 (0x568), region = 48  ;;  %1013 = vmatprep.subr.bf16.mxu0 (!%p289_p10), %v1208_v0  ;;  %v357_v2 = vsel (!%p289_p10), %vm355_vm0, 4294967295, %v1209_v1  ;;  %vm1210_vm2 = vmmov (!%p289_p10), 0   ;;  %v350_v7 = vld [vmem:[%s1458_s1] sm:$0xf] (!%p289_p10)  ;;  %vm351_vm3 = vcmask (!%p289_p10), 23552  }
  0x10   : > { %1015 = vmatprep.mubr.msk.bf16.mxu0 (!%p289_p10), %vm1210_vm2, %v1208_v0  ;;  %v358_v3 = vsel (!%p289_p10), %vm356_vm1, %v357_v2, 0  ;;  %vm420_vm4 = vcmask (!%p289_p10), 64512   ;;  %vm427_vm6 = vcmask (!%p289_p10), 1043456   ;;  %v1119_v17 = vld [vmem:[%s1459_s2 + $0x8] sm:$0xff] (!%p289_p10)   ;;  %v1120_v18 = vld [vmem:[%s1460_s3] sm:$0xff] (!%p289_p10)   ;;  %vm513_vm7 = vcmask (!%p289_p10), 261120  }
  0x11   : > { %1021 = vmatprep.mubr.msk.bf16.mxu1 (!%p289_p10), %vm420_vm4, %v1118_v8  ;;  %s319_s21 = sand.u32 (!%p289_p10), 1, %s1190_s28   ;;  %vm492_vm9 = vcmask (!%p289_p10), 130048   ;;  %v1121_v33 = vld [vmem:[%s1460_s3 + $0x8] sm:$0xff] (!%p289_p10)   ;;  %v1122_v34 = vld [vmem:[%s1461_s4] sm:$0xff] (!%p289_p10)   ;;  %s991_s16 = sshll.u32 (!%p289_p10), %s1198_s30, 9 }
  0x12   : > { %s960_s22 = sshll.u32 (!%p289_p10), %s319_s21, 5  ;;  %v1123_v49 = vld [vmem:[%s1461_s4 + $0x8] sm:$0xff] (!%p289_p10)   ;;  %v1124_v50 = vld [vmem:[%s1462_s5] sm:$0xff] (!%p289_p10)   ;;  %s1395_s24 = scalar_lea.hbm (!%p289_p10), %s1464_s7, %s991_s16 }
  0x13   : > { %v1125_v61 = vld [vmem:[%s1462_s5 + $0x8] sm:$0xff] (!%p289_p10)   ;;  %v1126_v62 = vld [vmem:[%s1463_s6] sm:$0xff] (!%p289_p10)   ;;  %s1399_s25 = scalar_lea.sflag (!%p289_p10), [#allocation3], %s319_s21 }
  0x16   : > { %s1316_s19 = scalar_select %p332_p11, %s1198_s30, 1 }
  0x18   : > { %s961_s20 = sshll.u32 %s1316_s19, 2 }
  0x19   : > { %s338_s23 = scalar_lea.vmem %s1457_s0, %s961_s20 }
  0x1a   : > { %v348_v4 = vld [vmem:[%s338_s23] sm:$0x7]  ;;  %s1338_s23 = scalar_lea.vmem [#allocation2], %s960_s22 }
  0x1b   : > { %v349_v5 = vpack.c.bf16 %v348_v4, %v348_v4  ;;  %s841_s14 = sshll.u32 %s1338_s23, 4  ;;  %s1389_s14 = int_to_ptr.vmem [resolvable:$true] %s841_s14 }
  0x1c   : > { %s1128_s26 = scalar_lea.vmem %s1389_s14, 512 }
  0x1d   : > { %v360_v6 = vand.u32 %v358_v3, %v349_v5  ;;  %p1129_p12 = scmp.ne.s32.totalorder %s1389_s14, %s1128_s26 }
  0x1f   : > { %1014 = vmatpush3.bf16.msra.mxu0 %v360_v6  ;;  %p1130_p13 = pnand %p1129_p12, %p1299_p4 }
  0x21   : > { %p1131_p0 = pneg %p1130_p13 }
  0x22   : > { %1016 = vmatmul.mubr.msk.bf16.vlgmr.msra.gmra.mrb[0].mxu0 %vm351_vm3, %v350_v7 }
  0x23   : > { %1029 = vmatprep.mubr.msk.bf16.mxu0 %vm513_vm7, %v1120_v18 }
  0xf5   : > { %v396_v9 = vpop.f32.mrb[0].mxu0 }
  0xf6   : > { %vm402_vm5 = vcmp.ge.f32.partialorder %v396_v9, 0.0  ;;  %v403_v10 = vmul.f32 0.2, %v396_v9  ;;  %v1017_v11 = vpop.f32.mrb[1].mxu0 }
  0xf7   : > { %v399_v12 = vpop.f32.mrb[2].mxu0 }
  0xf8   : > { %v1018_v13 = vpop.f32.mrb[3].mxu0  ;;  %v404_v14 = vsel %vm402_vm5, %v396_v9, %v403_v10 }
  0xf9   : > { %v409_v15 = vpack.c.bf16 %v404_v14, %v404_v14  ;;  %v1127_v13 = vld [vmem:[%s1463_s6 + $0x8] sm:$0xff]  }
  0xfb   : > { %1057 = vmatprep.subr.msk.bf16.mxu1 %vm427_vm6, %v409_v15  ;;  %v429_v16 = vsel %vm427_vm6, %v409_v15, 0 }
  0xfc   : > { %1020 = vmatpush3.bf16.msra.mxu1 %v429_v16 }
  0xff   : > { %1022 = vmatmul.mubr.msk.bf16.vlgmr.msra.gmra.mrb[0].mxu1 %vm420_vm4, %v1119_v17 }
 0x100   : > { %1037 = vmatprep.mubr.msk.bf16.mxu1 %vm513_vm7, %v1122_v34 }
 0x1d2   : > { %v1023_v19 = vpop.f32.mrb[0].mxu1 }
 0x1d3   : > { %vm482_vm8 = vcmp.ge.f32.partialorder %v1023_v19, 0.0  ;;  %v486_v20 = vmul.f32 0.2, %v1023_v19  ;;  %v465_v21 = vpop.f32.mrb[1].mxu1 }
 0x1d4   : > { %vm480_vm10 = vcmp.ge.f32.partialorder %v465_v21, 0.0  ;;  %v484_v22 = vmul.f32 0.2, %v465_v21  ;;  %v1024_v23 = vpop.f32.mrb[2].mxu1 }
 0x1d5   : > { %v490_v24 = vsel %vm482_vm8, %v1023_v19, %v486_v20  ;;  %vm483_vm11 = vcmp.ge.f32.partialorder %v1024_v23, 0.0  ;;  %v487_v25 = vmul.f32 0.2, %v1024_v23  ;;  %v468_v26 = vpop.f32.mrb[3].mxu1 }
 0x1d6   : > { %495 = vst.msk [vmem:[%s1338_s23 + $0x10] sm:$0xff] %vm492_vm9, %v490_v24  ;;  %v488_v27 = vsel %vm480_vm10, %v465_v21, %v484_v22  ;;  %vm481_vm12 = vcmp.ge.f32.partialorder %v468_v26, 0.0  ;;  %v485_v28 = vmul.f32 0.2, %v468_v26 }
 0x1d7   : > { %493 = vst.msk [vmem:[%s1338_s23] sm:$0xff] %vm492_vm9, %v488_v27  ;;  %v491_v29 = vsel %vm483_vm11, %v1024_v23, %v487_v25 }
 0x1d8   : > { %496 = vst.msk [vmem:[%s1338_s23 + $0x18] sm:$0xff] %vm492_vm9, %v491_v29  ;;  %v489_v30 = vsel %vm481_vm12, %v468_v26, %v485_v28  ;;  %v502_v32 = vpack.c.bf16 %v491_v29, %v490_v24 }
 0x1d9   : > { %494 = vst.msk [vmem:[%s1338_s23 + $0x8] sm:$0xff] %vm492_vm9, %v489_v30  ;;  %v501_v31 = vpack.c.bf16 %v489_v30, %v488_v27  ;;  %s1211_s23 = smov [#allocation2]  }
 0x1da   : > { %s1132_s11 = sshll.u32 %s1211_s23, 4  ;;  %s1133_s11 = int_to_ptr.vmem [resolvable:$false] %s1132_s11 }
 0x1db   : > { %1025 = vmatprep.subr.bf16.mxu0 %v501_v31  ;;  %s1134_s12 = scalar_lea.vmem %s1133_s11, 1024  ;;  %p1135_p1 = scmp.lt.s32.totalorder %s1389_s14, %s1133_s11 }
 0x1dc   : > { %1026 = vmatpush3.bf16.msra.mxu0 %v501_v31  ;;  %p1136_p2 = scmp.lt.s32.totalorder %s1134_s12, %s1128_s26 }
 0x1dd   : > { %1027 = vmatprep.subr.bf16.mxu0 %v502_v32 }
 0x1de   : > { %p1137_p3 = por %p1136_p2, %p1135_p1 }
 0x1e0   : > { %1028 = vmatpush3.bf16.msra.mxu0 %v502_v32  ;;  %p1138_p5 = pnand %p1137_p3, %p1131_p0 }
 0x1e3   : > { %1030 = vmatmul.mubr.msk.bf16.vlgmr.msra.gmra.mrb[4].mxu0 %vm513_vm7, %v1121_v33 }
 0x1e4   : > { %1045 = vmatprep.mubr.msk.bf16.mxu0 %vm513_vm7, %v1124_v50 }
 0x2b6   : > { %v1031_v35 = vpop.f32.mrb[4].mxu0 }
 0x2b7   : > { %v575_v36 = vmul.f32 0.2, %v1031_v35  ;;  %v554_v37 = vpop.f32.mrb[5].mxu0  ;;  %vm571_vm13 = vcmp.ge.f32.partialorder %v1031_v35, 0.0 }
 0x2b8   : > { %v573_v38 = vmul.f32 0.2, %v554_v37  ;;  %v1032_v39 = vpop.f32.mrb[6].mxu0  ;;  %vm569_vm14 = vcmp.ge.f32.partialorder %v554_v37, 0.0 }
 0x2b9   : > { %vm572_vm15 = vcmp.ge.f32.partialorder %v1032_v39, 0.0  ;;  %v576_v40 = vmul.f32 0.2, %v1032_v39  ;;  %v557_v41 = vpop.f32.mrb[7].mxu0  ;;  %v579_v43 = vsel %vm571_vm13, %v1031_v35, %v575_v36 }
 0x2ba   : > { %vm570_vm0 = vcmp.ge.f32.partialorder %v557_v41, 0.0  ;;  %v574_v42 = vmul.f32 0.2, %v557_v41  ;;  %v577_v45 = vsel %vm569_vm14, %v554_v37, %v573_v38 }
 0x2bb   : > { %v580_v44 = vsel %vm572_vm15, %v1032_v39, %v576_v40 }
 0x2bc   : > { %v578_v46 = vsel %vm570_vm0, %v557_v41, %v574_v42  ;;  %v586_v47 = vpack.c.bf16 %v580_v44, %v579_v43 }
 0x2bd   : > { %v585_v48 = vpack.c.bf16 %v578_v46, %v577_v45 }
 0x2bf   : > { %1033 = vmatprep.subr.bf16.mxu1 %v585_v48 }
 0x2c0   : > { %1034 = vmatpush3.bf16.msra.mxu1 %v585_v48 }
 0x2c1   : > { %1035 = vmatprep.subr.bf16.mxu1 %v586_v47 }
 0x2c4   : > { %1036 = vmatpush3.bf16.msra.mxu1 %v586_v47 }
 0x2c7   : > { %1038 = vmatmul.mubr.msk.bf16.vlgmr.msra.gmra.mrb[4].mxu1 %vm513_vm7, %v1123_v49 }
 0x2c8   : > { %1053 = vmatprep.mubr.msk.bf16.mxu1 %vm513_vm7, %v1126_v62 }
 0x39a   : > { %v1039_v51 = vpop.f32.mrb[4].mxu1 }
 0x39b   : > { %v637_v52 = vpop.f32.mrb[5].mxu1  ;;  %v1370_v58 = vadd.f32 %v1039_v51, %v490_v24 }
 0x39c   : > { %v1040_v53 = vpop.f32.mrb[6].mxu1  ;;  %v1364_v55 = vadd.f32 %v637_v52, %v488_v27 }
 0x39d   : > { %v640_v54 = vpop.f32.mrb[7].mxu1  ;;  %v1366_v56 = vadd.f32 %v1040_v53, %v491_v29 }
 0x39e   : > { %v1368_v57 = vadd.f32 %v640_v54, %v489_v30 }
 0x39f   : > { %v661_v60 = vpack.c.bf16 %v1366_v56, %v1370_v58 }
 0x3a0   : > { %v660_v59 = vpack.c.bf16 %v1368_v57, %v1364_v55 }
 0x3a2   : > { %1041 = vmatprep.subr.bf16.mxu0 %v660_v59 }
 0x3a3   : > { %1042 = vmatpush3.bf16.msra.mxu0 %v660_v59 }
 0x3a4   : > { %1043 = vmatprep.subr.bf16.mxu0 %v661_v60 }
 0x3a7   : > { %1044 = vmatpush3.bf16.msra.mxu0 %v661_v60 }
 0x3aa   : > { %1046 = vmatmul.mubr.msk.bf16.vlgmr.msra.gmra.mrb[8].mxu0 %vm513_vm7, %v1125_v61 }
 0x47d   : > { %v1047_v63 = vpop.f32.mrb[8].mxu0 }
 0x47e   : > { %v733_v0 = vmul.f32 0.2, %v1047_v63  ;;  %v712_v1 = vpop.f32.mrb[9].mxu0  ;;  %vm729_vm1 = vcmp.ge.f32.partialorder %v1047_v63, 0.0 }
 0x47f   : > { %v731_v2 = vmul.f32 0.2, %v712_v1  ;;  %v1048_v3 = vpop.f32.mrb[10].mxu0  ;;  %vm727_vm2 = vcmp.ge.f32.partialorder %v712_v1, 0.0 }
 0x480   : > { %vm730_vm3 = vcmp.ge.f32.partialorder %v1048_v3, 0.0  ;;  %v734_v4 = vmul.f32 0.2, %v1048_v3  ;;  %v715_v5 = vpop.f32.mrb[11].mxu0  ;;  %v737_v7 = vsel %vm729_vm1, %v1047_v63, %v733_v0 }
 0x481   : > { %vm728_vm4 = vcmp.ge.f32.partialorder %v715_v5, 0.0  ;;  %v732_v6 = vmul.f32 0.2, %v715_v5  ;;  %v735_v9 = vsel %vm727_vm2, %v712_v1, %v731_v2 }
 0x482   : > { %v738_v8 = vsel %vm730_vm3, %v1048_v3, %v734_v4 }
 0x483   : > { %v736_v10 = vsel %vm728_vm4, %v715_v5, %v732_v6  ;;  %v744_v11 = vpack.c.bf16 %v738_v8, %v737_v7 }
 0x484   : > { %v743_v12 = vpack.c.bf16 %v736_v10, %v735_v9 }
 0x486   : > { %1049 = vmatprep.subr.bf16.mxu1 %v743_v12 }
 0x487   : > { %1050 = vmatpush3.bf16.msra.mxu1 %v743_v12 }
 0x488   : > { %1051 = vmatprep.subr.bf16.mxu1 %v744_v11 }
 0x48b   : > { %1052 = vmatpush3.bf16.msra.mxu1 %v744_v11 }
 0x48e   : > { %1054 = vmatmul.mubr.msk.bf16.vlgmr.msra.gmra.mrb[8].mxu1 %vm513_vm7, %v1127_v13 }
 0x48f   : > { %1141 = shalt.err (!%p1138_p5)
}
 0x490   : > { %s1142_s30 = scalar_lea.hbm %s1395_s24, 512  ;;  %s1146_s20 = scalar_lea.hbm %s1464_s7, 1024 }
 0x491   : > { %p1143_p6 = scmp.ne.s32.totalorder %s1395_s24, %s1142_s30  ;;  %p1147_p10 = scmp.lt.u32.totalorder %s1395_s24, %s1464_s7 }
 0x492   : > { %p1148_p11 = scmp.lt.u32.totalorder %s1146_s20, %s1142_s30  ;;  %p1150_p13 = scmp.lt.u32.totalorder %s1142_s30, %s1395_s24 }
 0x493   : > { %p1144_p7 = pnand %p1143_p6, %p1299_p4 }
 0x494   : > { %p1149_p12 = por %p1148_p11, %p1147_p10 }
 0x495   : > { %p1145_p9 = pneg %p1144_p7 }
 0x496   : > { %p1151_p0 = por %p1150_p13, %p1149_p12 }
 0x498   : > { %p1152_p1 = pnand %p1151_p0, %p1145_p9 }
 0x49a   : > { %1155 = shalt.err (!%p1152_p1)
}
 0x49b   : > { %s1212_s26 = smov 128   ;;  %s1213_s11 = smov 8  }
 0x49c   : > { %1058 = dma.vmem_to_hbm [thread:$0]  (%p1299_p4), %s1389_s14, 512, %s1395_s24, %s1399_s25, %s1212_s26, %s1212_s26, %s1213_s11  }
 0x49d   : > { %s990_s12 = sshll.u32 %s1316_s19, 5 }
 0x49e   : > { %s346_s22 = scalar_lea.vmem %s1465_s8, %s990_s12 }
 0x561   : > { %v1055_v14 = vpop.f32.mrb[8].mxu1 }
 0x562   : > { %v812_v15 = vadd.f32 %v1055_v14, %v1370_v58  ;;  %v795_v16 = vpop.f32.mrb[9].mxu1 }
 0x563   : > { %v810_v17 = vadd.f32 %v795_v16, %v1364_v55  ;;  %v1056_v18 = vpop.f32.mrb[10].mxu1 }
 0x564   : > { %816 = vst.msk [vmem:[%s346_s22 + $0x10] sm:$0xff] %vm492_vm9, %v812_v15  ;;  %v813_v19 = vadd.f32 %v1056_v18, %v1366_v56  ;;  %v798_v20 = vpop.f32.mrb[11].mxu1 }
 0x565   : > { %814 = vst.msk [vmem:[%s346_s22] sm:$0xff] %vm492_vm9, %v810_v17  ;;  %v811_v21 = vadd.f32 %v798_v20, %v1368_v57 }
 0x566   : > { %817 = vst.msk [vmem:[%s346_s22 + $0x18] sm:$0xff] %vm492_vm9, %v813_v19 }
 0x567   : > { %815 = vst.msk [vmem:[%s346_s22 + $0x8] sm:$0xff] %vm492_vm9, %v811_v21 }
 0x568 PF: > { %p1064_p4 = scmp.ge.s32.totalorder %s1206_s10, 2  ;;  %s859_s15 = sand.u32 1, %s1186_s27  }
 0x569   : > { %s860_s19 = scalar_lea.sflag [#allocation3], %s859_s15 }
 0x56a   : > { %p1061_p2 = pnand %p1064_p4, %p1306_p8 }
 0x56c   : > { %1181 = dma.done.wait (!%p1061_p2), %s860_s19, 512  }
 0x56d   : > { %1183 = vsyncadd (!%p1061_p2), %s860_s19, 4294966784  ;;  %s22_s10 = sadd.s32 1, %s1206_s10   ;;  %s1468_s27 = smov %s1190_s28 }
 0x56e   : > { %p19_p3 = scmp.ge.s32.totalorder %s22_s10, 4   ;;  %s1469_s28 = smov %s1194_s29 }
 0x56f   : > { %s1470_s29 = smov %s1312_s18  ;;  %s1471_s30 = smov %s1202_s9 }
 0x570   : > { %s1472_s9 = smov %s1474_s13  ;;  %21 = sbr.rel (!%p19_p3) target bundleno = 4 (0x4), region = 95 }
 0x577   :  { %876 = vsyncpa [#allocation3], 1 }
 0x578   :  { %878 = vsyncpa [#allocation3 + $0x1], 1 }

// kernel: model_forward.11
= control target key start
LH: loop header
LB: loop body
LE: loop exit
PB: predicated region body
PF: predicated region fallthrough
CT: control target
= control target key end

     0   :  { %s929_s18 = smov 0   ;;  %s931_s19 = smov 0   ;;  %s1005_s0 = inlined_call_operand.vmem [shape: f32[2,32,8], index: 0, kind: input, shape index: {}]   ;;  %s1006_s1 = inlined_call_operand.vmem [shape: f32[2,32,16], index: 1, kind: input, shape index: {}]   ;;  %s1007_s2 = inlined_call_operand.vmem [shape: bf16[32,32], index: 2, kind: input, shape index: {}]   ;;  %s1008_s3 = inlined_call_operand.vmem [shape: bf16[32,32], index: 3, kind: input, shape index: {}]   ;;  %s1009_s4 = inlined_call_operand.vmem [shape: bf16[32,32], index: 4, kind: input, shape index: {}]   ;;  %s1010_s5 = inlined_call_operand.vmem [shape: f32[2,32,8], index: 5, kind: output, shape index: {}]  }
   0x1   :  { %s933_s20 = smov 0  }
   0x2 LB: > { %s27_s21 = sadd.s32 1, %s891_s19  ;;  %p752_p0 = scmp.ge.s32.totalorder %s895_s20, 1  ;;  %s895_s20 = sphi %s933_s20, %s15_s20   ;;  %s891_s19 = sphi %s931_s19, %s1012_s19   ;;  %s887_s18 = sphi %s929_s18, %s1011_s18  }
   0x3   : > { %p29_p1 = scmp.ge.s32.totalorder %s27_s21, 2  ;;  %p216_p2 = scmp.lt.s32.totalorder %s895_s20, 3 }
   0x5   : > { %s1014_s21 = smov (%p29_p1, %s27_s21), 0  ;;  %p217_p3 = pnand %p752_p0, %p216_p2 }
   0x6   : > { %p255_p4 = scmp.lt.s32.totalorder (!%p217_p3), %s887_s18, 1  ;;  %v863_v0 = vld [vmem:[%s1008_s3] sm:$0xff] (!%p217_p3)   ;;  %vm301_vm0 = vcmask (!%p217_p3), 261120   ;;  %v864_v12 = vld [vmem:[%s1008_s3 + $0x8] sm:$0xff] (!%p217_p3)   ;;  %v897_v18 = vmov (!%p217_p3), 0.0   ;;  %vm898_vm1 = vmmov (!%p217_p3), 0  }
   0x7   : > { %220 = sbr.rel (%p217_p3) target bundleno = 1110 (0x456), region = 40  ;;  %801 = vmatprep.mubr.msk.bf16.mxu0 (!%p217_p3), %vm301_vm0, %v863_v0  ;;  %v865_v13 = vld [vmem:[%s1007_s2] sm:$0xff] (!%p217_p3)   ;;  %v866_v15 = vld [vmem:[%s1007_s2 + $0x8] sm:$0xff] (!%p217_p3)   ;;  %vm359_vm2 = vcmask (!%p217_p3), 130048   ;;  %vm648_vm3 = vcmask (!%p217_p3), 64512  }
   0x8   : > { %v867_v16 = vld [vmem:[%s1009_s4] sm:$0xff] (!%p217_p3)   ;;  %v868_v17 = vld [vmem:[%s1009_s4 + $0x8] sm:$0xff] (!%p217_p3)  }
   0x9   : > { %809 = vmatprep.mubr.msk.bf16.mxu1 (!%p217_p3), %vm301_vm0, %v867_v16 }
   0xe   : > { %s1016_s18 = smov (!%p255_p4, %s887_s18), 1 }
   0xf   : > { %s951_s24 = sshll.u32 %s1016_s18, 5 }
  0x10   : > { %s267_s27 = scalar_lea.vmem %s1006_s1, %s951_s24  ;;  %s262_s30 = scalar_lea.vmem %s1005_s0, %s951_s24 }
  0x11   : > { %v281_v1 = vld [vmem:[%s267_s27] sm:$0xff]  ;;  %v282_v2 = vld [vmem:[%s267_s27 + $0x8] sm:$0xff]  ;;  %v283_v3 = vld [vmem:[%s267_s27 + $0x10] sm:$0xff]  ;;  %s275_s18 = scalar_lea.vmem %s1010_s5, %s951_s24 }
  0x12   : > { %v285_v4 = vpack.c.bf16 %v282_v2, %v281_v1  ;;  %v284_v5 = vld [vmem:[%s267_s27 + $0x18] sm:$0xff]  ;;  %v439_v7 = vld [vmem:[%s262_s30] sm:$0xff]  ;;  %v440_v8 = vld [vmem:[%s262_s30 + $0x8] sm:$0xff] }
  0x13   : > { %v286_v6 = vpack.c.bf16 %v284_v5, %v283_v3  ;;  %v443_v9 = vpack.c.bf16 %v440_v8, %v439_v7  ;;  %v441_v10 = vld [vmem:[%s262_s30 + $0x10] sm:$0xff]  ;;  %v442_v11 = vld [vmem:[%s262_s30 + $0x18] sm:$0xff] }
  0x14   : > { %797 = vmatprep.subr.bf16.mxu0 %v285_v4  ;;  %805 = vmatprep.subr.bf16.mxu1 %v285_v4  ;;  %v444_v14 = vpack.c.bf16 %v442_v11, %v441_v10 }
  0x15   : > { %798 = vmatpush3.bf16.msra.mxu0 %v285_v4  ;;  %806 = vmatpush3.bf16.msra.mxu1 %v285_v4 }
  0x16   : > { %799 = vmatprep.subr.bf16.mxu0 %v286_v6  ;;  %807 = vmatprep.subr.bf16.mxu1 %v286_v6 }
  0x19   : > { %800 = vmatpush3.bf16.msra.mxu0 %v286_v6  ;;  %808 = vmatpush3.bf16.msra.mxu1 %v286_v6 }
  0x1a   : > { %813 = vmatprep.subr.bf16.mxu0 %v443_v9  ;;  %821 = vmatprep.subr.bf16.mxu1 %v897_v18 }
  0x1c   : > { %802 = vmatmul.mubr.msk.bf16.vlgmr.msra.gmra.mrb[0].mxu0 %vm301_vm0, %v864_v12  ;;  %810 = vmatmul.mubr.msk.bf16.vlgmr.msra.gmra.mrb[0].mxu1 %vm301_vm0, %v868_v17 }
  0x1d   : > { %814 = vmatpush3.bf16.msra.mxu0 %v443_v9  ;;  %817 = vmatprep.mubr.msk.bf16.mxu0 %vm301_vm0, %v865_v13 }
  0x1e   : > { %815 = vmatprep.subr.bf16.mxu0 %v444_v14  ;;  %825 = vmatprep.mubr.msk.bf16.mxu1 %vm898_vm1, %v897_v18 }
  0x21   : > { %816 = vmatpush3.bf16.msra.mxu0 %v444_v14 }
  0x24   : > { %818 = vmatmul.mubr.msk.bf16.vlgmr.msra.gmra.mrb[4].mxu0 %vm301_vm0, %v866_v15 }
  0xef   : > { %v803_v19 = vpop.f32.mrb[0].mxu0  ;;  %v811_v33 = vpop.f32.mrb[0].mxu1 }
  0xf0   : > { %v342_v20 = vpop.f32.mrb[1].mxu0  ;;  %v416_v34 = vpop.f32.mrb[1].mxu1 }
  0xf1   : > { %v804_v21 = vpop.f32.mrb[2].mxu0  ;;  %v812_v35 = vpop.f32.mrb[2].mxu1 }
  0xf2   : > { %v358_v22 = vpack.c.bf16 %v804_v21, %v803_v19  ;;  %v345_v23 = vpop.f32.mrb[3].mxu0  ;;  %v432_v36 = vpack.c.bf16 %v812_v35, %v811_v33  ;;  %v419_v37 = vpop.f32.mrb[3].mxu1 }
  0xf3   : > { %v357_v24 = vpack.c.bf16 %v345_v23, %v342_v20  ;;  %v431_v38 = vpack.c.bf16 %v419_v37, %v416_v34 }
  0xf4   : > { %361 = vst.msk [vmem:[#allocation2 + $0x8] sm:$0xff] %vm359_vm2, %v358_v22  ;;  %434 = vst.msk [vmem:[#allocation3 + $0x8] sm:$0xff] %vm359_vm2, %v432_v36 }
  0xf5   : > { %360 = vst.msk [vmem:[#allocation2] sm:$0xff] %vm359_vm2, %v357_v24  ;;  %433 = vst.msk [vmem:[#allocation3] sm:$0xff] %vm359_vm2, %v431_v38 }
  0xf7   : > { %v819_v25 = vpop.f32.mrb[4].mxu0 }
  0xf8   : > { %v496_v26 = vpop.f32.mrb[5].mxu0 }
  0xf9   : > { %v820_v27 = vpop.f32.mrb[6].mxu0 }
  0xfa   : > { %v512_v28 = vpack.c.bf16 %v820_v27, %v819_v25  ;;  %v499_v29 = vpop.f32.mrb[7].mxu0 }
  0xfb   : > { %v511_v30 = vpack.c.bf16 %v499_v29, %v496_v26  ;;  %v514_v32 = vld [vmem:[#allocation2 + $0x8] sm:$0xff]  ;;  %v588_v57 = vld [vmem:[#allocation3 + $0x8] sm:$0xff] }
  0xfc   : > { %v513_v31 = vld [vmem:[#allocation2] sm:$0xff]  ;;  %v587_v40 = vld [vmem:[#allocation3] sm:$0xff] }
  0xfd   : > { %822 = vmatpush3.bf16.msra.mxu1 %v513_v31  ;;  %515 = vxpose.xlu0.c.b16.start [1/2] (short) (narrow) %v511_v30, 16 }
  0xfe   : > { %823 = vmatprep.subr.bf16.mxu1 %v897_v18  ;;  %831 = vmatprep.mubr.msk.bf16.mxu0 %vm359_vm2, %v587_v40 }
 0x101   : > { %824 = vmatpush3.bf16.msra.mxu1 %v514_v32  ;;  %516 = vxpose.xlu0.c.b16.end [2/2] (short) (narrow) %v512_v28, 16 }
 0x163   : > { %v523_v39 = vpop.trf.xlu0 }
 0x164   : > { %826 = vmatmul.mubr.msk.bf16.vlgmr.msra.gmra.mrb[4].mxu1 %vm301_vm0, %v523_v39 }
 0x237   : > { %v568_v41 = vpop.f32.mrb[4].mxu1 }
 0x238   : > { %v574_v42 = vmul.f32 0.17677669, %v568_v41  ;;  %v827_v43 = vpop.f32.mrb[5].mxu1 }
 0x239   : > { %v571_v44 = vpop.f32.mrb[6].mxu1 }
 0x23a   : > { %v828_v45 = vpop.f32.mrb[7].mxu1  ;;  %v576_v46 = vsel %vm359_vm2, %v574_v42, -inf }
 0x23b   : > { %577 = vmax.xlane.f32.xlu1 %v576_v46 }
 0x2c8   : > { %v578_v47 = vpop.xlane.xlu1 %577 }
 0x2c9   : > { %v579_v48 = vsub.f32 %v574_v42, %v578_v47 }
 0x2cb   : > { %v580_v49 = vmul.f32 1.442695, %v579_v48 }
 0x2cd   : > { %869 = vpow2.f32 %v580_v49 }
 0x2d7   : > { %v870_v50 = vpop.eup %869 }
 0x2d8   : > { %v582_v51 = vsel %vm359_vm2, %v870_v50, 0.0 }
 0x2d9   : > { %583 = vadd.xlane.f32.xlu1 %v582_v51 }
 0x366   : > { %v584_v52 = vpop.xlane.xlu1 %583 }
 0x367   : > { %871 = vrcp.f32 %v584_v52 }
 0x371   : > { %v872_v53 = vpop.eup %871 }
 0x372   : > { %v586_v54 = vmul.f32 %v872_v53, %v870_v50 }
 0x374   : > { %v589_v55 = vpack.c.bf16 %v586_v54, %v586_v54 }
 0x376   : > { %835 = vmatprep.subr.msk.bf16.mxu0 %vm359_vm2, %v589_v55  ;;  %v597_v56 = vsel %vm359_vm2, %v589_v55, 0 }
 0x377   : > { %830 = vmatpush3.bf16.xpose.msra.mxu0 %v597_v56 }
 0x37e   : > { %832 = vmatmul.mubr.msk.bf16.vlgmr.msra.gmra.mrb[8].mxu0 %vm359_vm2, %v588_v57 }
 0x451   : > { %v833_v58 = vpop.f32.mrb[8].mxu0 }
 0x452   : > { %651 = vst.msk [vmem:[%s275_s18 + $0x10] sm:$0xff] %vm648_vm3, %v833_v58  ;;  %v633_v59 = vpop.f32.mrb[9].mxu0 }
 0x453   : > { %649 = vst.msk [vmem:[%s275_s18] sm:$0xff] %vm648_vm3, %v633_v59  ;;  %v834_v60 = vpop.f32.mrb[10].mxu0 }
 0x454   : > { %652 = vst.msk [vmem:[%s275_s18 + $0x18] sm:$0xff] %vm648_vm3, %v834_v60  ;;  %v636_v61 = vpop.f32.mrb[11].mxu0 }
 0x455   : > { %650 = vst.msk [vmem:[%s275_s18 + $0x8] sm:$0xff] %vm648_vm3, %v636_v61 }
 0x456 PF: > { %s15_s20 = sadd.s32 1, %s895_s20   ;;  %s1011_s18 = smov %s891_s19 }
 0x457   : > { %p12_p5 = scmp.ge.s32.totalorder %s15_s20, 4   ;;  %s1012_s19 = smov %s1014_s21 }
 0x459   :  { %14 = sbr.rel (!%p12_p5) target bundleno = 2 (0x2), region = 77 }

// kernel: model_forward.12
= control target key start
LH: loop header
LB: loop body
LE: loop exit
PB: predicated region body
PF: predicated region fallthrough
CT: control target
= control target key end

     0   :  { %s1617_s21 = smov 0   ;;  %s1619_s22 = smov 0   ;;  %s1798_s0 = inlined_call_operand.vmem [shape: f32[2,32,8], index: 0, kind: input, shape index: {}, may-alias: {0,1}]   ;;  %s1799_s1 = inlined_call_operand.vmem [shape: f32[2,32,8], index: 1, kind: input, shape index: {}, may-alias: {0,1}]   ;;  %s1800_s2 = inlined_call_operand.vmem [shape: bf16[32,32], index: 2, kind: input, shape index: {}]   ;;  %s1801_s3 = inlined_call_operand.vmem [shape: bf16[64,32], index: 3, kind: input, shape index: {}]   ;;  %s1802_s4 = inlined_call_operand.vmem [shape: bf16[64,32], index: 4, kind: input, shape index: {}]   ;;  %s1803_s5 = inlined_call_operand.vmem [shape: bf16[32,64], index: 5, kind: input, shape index: {}]   ;;  %s1804_s6 = inlined_call_operand.vmem [shape: f32[2,32,8], index: 6, kind: output, shape index: {}]  }
   0x1   :  { %s1621_s23 = smov 0  }
   0x2 LB: > { %s28_s24 = sadd.s32 1, %s1574_s22  ;;  %p1327_p0 = scmp.ge.s32.totalorder %s1578_s23, 1  ;;  %s1578_s23 = sphi %s1621_s23, %s16_s23   ;;  %s1574_s22 = sphi %s1619_s22, %s1806_s22   ;;  %s1570_s21 = sphi %s1617_s21, %s1805_s21  }
   0x3   : > { %p30_p1 = scmp.ge.s32.totalorder %s28_s24, 2  ;;  %p241_p2 = scmp.lt.s32.totalorder %s1578_s23, 3 }
   0x5   : > { %s1808_s24 = smov (%p30_p1, %s28_s24), 0  ;;  %p242_p3 = pnand %p1327_p0, %p241_p2 }
   0x6   : > { %p282_p4 = scmp.lt.s32.totalorder (!%p242_p3), %s1570_s21, 1  ;;  %vm342_vm0 = vcmask (!%p242_p3), 261120   ;;  %v1528_v0 = vld [vmem:[%s1800_s2] sm:$0xff] (!%p242_p3)   ;;  %v1529_v14 = vld [vmem:[%s1800_s2 + $0x8] sm:$0xff] (!%p242_p3)   ;;  %v1580_v16 = vmov (!%p242_p3), 0.0   ;;  %vm1581_vm1 = vmmov (!%p242_p3), 0  }
   0x7   : > { %245 = sbr.rel (%p242_p3) target bundleno = 1582 (0x62e), region = 44  ;;  %1425 = vmatprep.mubr.msk.bf16.mxu1 (!%p242_p3), %vm342_vm0, %v1528_v0  ;;  %v1530_v1 = vld [vmem:[%s1801_s3] sm:$0xff] (!%p242_p3)   ;;  %v1531_v15 = vld [vmem:[%s1801_s3 + $0x8] sm:$0xff] (!%p242_p3)   ;;  %vm420_vm2 = vcmask (!%p242_p3), 64512   ;;  %vm530_vm3 = vcmask (!%p242_p3), 1043456   ;;  %v1532_v45 = vld [vmem:[%s1801_s3 + $0x10] sm:$0xff] (!%p242_p3)  }
   0x8   : > { %1413 = vmatprep.mubr.msk.bf16.mxu0 (!%p242_p3), %vm342_vm0, %v1530_v1  ;;  %v1533_v46 = vld [vmem:[%s1801_s3 + $0x18] sm:$0xff] (!%p242_p3)   ;;  %vm1164_vm4 = vcmask (!%p242_p3), 523264  }
   0xe   : > { %s1810_s21 = smov (!%p282_p4, %s1570_s21), 1 }
   0xf   : > { %s1642_s29 = sshll.u32 %s1810_s21, 5 }
  0x10   : > { %s289_s8 = scalar_lea.vmem %s1798_s0, %s1642_s29  ;;  %s294_s11 = scalar_lea.vmem %s1799_s1, %s1642_s29 }
  0x11   : > { %v1653_v2 = vld [vmem:[%s289_s8] sm:$0xff]  ;;  %v1655_v3 = vld [vmem:[%s289_s8 + $0x8] sm:$0xff]  ;;  %v1657_v4 = vld [vmem:[%s289_s8 + $0x10] sm:$0xff]  ;;  %s302_s14 = scalar_lea.vmem %s1804_s6, %s1642_s29 }
  0x12   : > { %v437_v5 = vpack.c.bf16 %v1655_v3, %v1653_v2  ;;  %v1661_v6 = vld [vmem:[%s289_s8 + $0x18] sm:$0xff]  ;;  %v316_v7 = vld [vmem:[%s294_s11] sm:$0xff]  ;;  %v317_v8 = vld [vmem:[%s294_s11 + $0x8] sm:$0xff] }
  0x13   : > { %v438_v9 = vpack.c.bf16 %v1661_v6, %v1657_v4  ;;  %v320_v10 = vpack.c.bf16 %v317_v8, %v316_v7  ;;  %v318_v11 = vld [vmem:[%s294_s11 + $0x10] sm:$0xff]  ;;  %v319_v12 = vld [vmem:[%s294_s11 + $0x18] sm:$0xff] }
  0x14   : > { %1421 = vmatprep.subr.bf16.mxu1 %v437_v5  ;;  %v321_v13 = vpack.c.bf16 %v319_v12, %v318_v11 }
  0x15   : > { %1422 = vmatpush3.bf16.msra.mxu1 %v437_v5  ;;  %1409 = vmatprep.subr.bf16.mxu0 %v320_v10 }
  0x16   : > { %1423 = vmatprep.subr.bf16.mxu1 %v438_v9  ;;  %1410 = vmatpush3.bf16.msra.mxu0 %v320_v10 }
  0x17   : > { %1411 = vmatprep.subr.bf16.mxu0 %v321_v13 }
  0x19   : > { %1424 = vmatpush3.bf16.msra.mxu1 %v438_v9 }
  0x1a   : > { %1412 = vmatpush3.bf16.msra.mxu0 %v321_v13  ;;  %1429 = vmatprep.subr.bf16.mxu1 %v1580_v16 }
  0x1b   : > { %1435 = vmatprep.subr.bf16.mxu0 %v1580_v16 }
  0x1c   : > { %1426 = vmatmul.mubr.msk.bf16.vlgmr.msra.gmra.mrb[0].mxu1 %vm342_vm0, %v1529_v14 }
  0x1d   : > { %1414 = vmatmul.mubr.msk.bf16.vlgmr.msra.gmra.mrb[0].mxu0 %vm342_vm0, %v1531_v15  ;;  %1431 = vmatprep.mubr.msk.bf16.mxu1 %vm1581_vm1, %v1580_v16 }
  0x1e   : > { %1417 = vmatprep.mubr.msk.bf16.mxu0 %vm342_vm0, %v1532_v45 }
  0x25   : > { %1418 = vmatmul.mubr.msk.bf16.gmra.mrb[4].mxu0 %vm342_vm0, %v1533_v46 }
  0x26   : > { %1437 = vmatprep.mubr.msk.bf16.mxu0 %vm1581_vm1, %v1580_v16 }
  0xef   : > { %v1427_v17 = vpop.f32.mrb[0].mxu1 }
  0xf0   : > { %v490_v18 = vpop.f32.mrb[1].mxu1  ;;  %v759_v19 = vpack.c.bf16 %v1427_v17, %v1427_v17  ;;  %v1415_v20 = vpop.f32.mrb[0].mxu0 }
  0xf1   : > { %v1428_v21 = vpop.f32.mrb[2].mxu1  ;;  %v505_v22 = vpack.c.bf16 %v490_v18, %v490_v18  ;;  %423 = vst.msk [vmem:[#allocation2 + $0x10] sm:$0xff] %vm420_vm2, %v1415_v20  ;;  %v389_v23 = vpop.f32.mrb[1].mxu0 }
  0xf2   : > { %764 = vxpose.xlu1.c.b16.start.end [1/1] (short) (narrow) %v759_v19, 16  ;;  %v493_v24 = vpop.f32.mrb[3].mxu1  ;;  %421 = vst.msk [vmem:[#allocation2] sm:$0xff] %vm420_vm2, %v389_v23  ;;  %v1416_v25 = vpop.f32.mrb[2].mxu0  ;;  %v885_v27 = vpack.c.bf16 %v1428_v21, %v1428_v21 }
  0xf3   : > { %510 = vxpose.xlu0.c.b16.start.end [1/1] (short) (narrow) %v505_v22, 16  ;;  %424 = vst.msk [vmem:[#allocation2 + $0x18] sm:$0xff] %vm420_vm2, %v1416_v25  ;;  %v392_v26 = vpop.f32.mrb[3].mxu0  ;;  %v633_v28 = vpack.c.bf16 %v493_v24, %v493_v24 }
  0xf4   : > { %422 = vst.msk [vmem:[#allocation2 + $0x8] sm:$0xff] %vm420_vm2, %v392_v26 }
  0xf6   : > { %890 = vxpose.xlu1.c.b16.start.end [1/1] (short) (narrow) %v885_v27, 16 }
  0xf7   : > { %638 = vxpose.xlu0.c.b16.start.end [1/1] (short) (narrow) %v633_v28, 16 }
  0xf8   : > { %v760_v36 = vld [vmem:[#allocation2 + $0x10] sm:$0xff] }
  0xf9   : > { %v506_v29 = vld [vmem:[#allocation2] sm:$0xff]  ;;  %v761_v37 = vpack.c.bf16 %v760_v36, %v760_v36 }
  0xfa   : > { %v507_v30 = vpack.c.bf16 %v506_v29, %v506_v29  ;;  %v886_v40 = vld [vmem:[#allocation2 + $0x18] sm:$0xff] }
  0xfb   : > { %v634_v32 = vld [vmem:[#allocation2 + $0x8] sm:$0xff]  ;;  %v784_v39 = vsel %vm530_vm3, %v761_v37, 0  ;;  %v887_v41 = vpack.c.bf16 %v886_v40, %v886_v40 }
  0xfc   : > { %v532_v31 = vsel %vm530_vm3, %v507_v30, 0  ;;  %v635_v33 = vpack.c.bf16 %v634_v32, %v634_v32 }
  0xfd   : > { %1430 = vmatpush3.bf16.msra.mxu1 %v532_v31  ;;  %v910_v43 = vsel %vm530_vm3, %v887_v41, 0  ;;  %v1419_v31 = vpop.f32.mrb[4].mxu0 }
  0xfe   : > { %1441 = vmatprep.subr.bf16.mxu1 %v1580_v16  ;;  %v658_v35 = vsel %vm530_vm3, %v635_v33, 0  ;;  %427 = vst.msk [vmem:[#allocation2 + $0x30] sm:$0xff] %vm420_vm2, %v1419_v31  ;;  %v405_v33 = vpop.f32.mrb[5].mxu0 }
  0xff   : > { %425 = vst.msk [vmem:[#allocation2 + $0x20] sm:$0xff] %vm420_vm2, %v405_v33 }
 0x158   : > { %v772_v42 = vpop.trf.xlu1 }
 0x159   : > { %v518_v34 = vpop.trf.xlu0 }
 0x15a   : > { %1432 = vmatmul.mubr.msk.bf16.vlgmr.msra.gmra.mrb[4].mxu1 %vm420_vm2, %v518_v34  ;;  %v1420_v34 = vpop.f32.mrb[6].mxu0 }
 0x15b   : > { %1442 = vmatpush3.bf16.msra.mxu1 %v658_v35  ;;  %1443 = vmatprep.mubr.msk.bf16.mxu1 %vm1581_vm1, %v1580_v16  ;;  %428 = vst.msk [vmem:[#allocation2 + $0x38] sm:$0xff] %vm420_vm2, %v1420_v34  ;;  %v408_v35 = vpop.f32.mrb[7].mxu0 }
 0x15c   : > { %1453 = vmatprep.subr.bf16.mxu1 %v1580_v16  ;;  %v898_v44 = vpop.trf.xlu1  ;;  %426 = vst.msk [vmem:[#allocation2 + $0x28] sm:$0xff] %vm420_vm2, %v408_v35 }
 0x15d   : > { %v646_v38 = vpop.trf.xlu0 }
 0x162   : > { %1444 = vmatmul.mubr.msk.bf16.vlgmr.msra.gmra.mrb[8].mxu1 %vm420_vm2, %v646_v38 }
 0x163   : > { %1454 = vmatpush3.bf16.msra.mxu1 %v784_v39  ;;  %1455 = vmatprep.mubr.msk.bf16.mxu1 %vm1581_vm1, %v1580_v16 }
 0x164   : > { %1465 = vmatprep.subr.bf16.mxu1 %v1580_v16 }
 0x16a   : > { %1456 = vmatmul.mubr.msk.bf16.vlgmr.msra.gmra.mrb[12].mxu1 %vm420_vm2, %v772_v42 }
 0x16b   : > { %1466 = vmatpush3.bf16.msra.mxu1 %v910_v43  ;;  %1467 = vmatprep.mubr.msk.bf16.mxu1 %vm1581_vm1, %v1580_v16  ;;  %v508_v43 = vld [vmem:[#allocation2 + $0x20] sm:$0xff] }
 0x16c   : > { %v509_v45 = vpack.c.bf16 %v508_v43, %v508_v43 }
 0x172   : > { %1468 = vmatmul.mubr.msk.bf16.vlgmr.msra.gmra.mrb[16].mxu1 %vm420_vm2, %v898_v44 }
 0x22d   : > { %v568_v47 = vpop.f32.mrb[4].mxu1 }
 0x22e   : > { %v574_v48 = vmul.f32 0.35355338, %v568_v47  ;;  %v1433_v49 = vpop.f32.mrb[5].mxu1 }
 0x22f   : > { %v571_v50 = vpop.f32.mrb[6].mxu1 }
 0x230   : > { %v1434_v51 = vpop.f32.mrb[7].mxu1  ;;  %v575_v52 = vsel %vm420_vm2, %v574_v48, -inf }
 0x231   : > { %576 = vmax.xlane.f32.xlu0 %v575_v52  ;;  %v636_v51 = vld [vmem:[#allocation2 + $0x28] sm:$0xff] }
 0x235   : > { %v694_v53 = vpop.f32.mrb[8].mxu1 }
 0x236   : > { %v700_v54 = vmul.f32 0.35355338, %v694_v53  ;;  %v1445_v55 = vpop.f32.mrb[9].mxu1  ;;  %v637_v53 = vpack.c.bf16 %v636_v51, %v636_v51 }
 0x237   : > { %v697_v56 = vpop.f32.mrb[10].mxu1 }
 0x238   : > { %v701_v57 = vsel %vm420_vm2, %v700_v54, -inf  ;;  %v1446_v58 = vpop.f32.mrb[11].mxu1 }
 0x239   : > { %702 = vmax.xlane.f32.xlu1 %v701_v57  ;;  %v762_v57 = vld [vmem:[#allocation2 + $0x30] sm:$0xff] }
 0x23d   : > { %v820_v59 = vpop.f32.mrb[12].mxu1 }
 0x23e   : > { %v826_v60 = vmul.f32 0.35355338, %v820_v59  ;;  %v1457_v61 = vpop.f32.mrb[13].mxu1  ;;  %v763_v59 = vpack.c.bf16 %v762_v57, %v762_v57 }
 0x23f   : > { %v823_v62 = vpop.f32.mrb[14].mxu1 }
 0x240   : > { %v827_v63 = vsel %vm420_vm2, %v826_v60, -inf  ;;  %v1458_v0 = vpop.f32.mrb[15].mxu1  ;;  %v888_v62 = vld [vmem:[#allocation2 + $0x38] sm:$0xff] }
 0x241   : > { %828 = vmax.xlane.f32.xlu0 %v827_v63  ;;  %v889_v63 = vpack.c.bf16 %v888_v62, %v888_v62  ;;  %v1534_v0 = vld [vmem:[%s1802_s4] sm:$0xff]  }
 0x242   : > { %1481 = vmatprep.mubr.msk.bf16.mxu1 %vm342_vm0, %v1534_v0 }
 0x245   : > { %v946_v1 = vpop.f32.mrb[16].mxu1 }
 0x246   : > { %v952_v5 = vmul.f32 0.35355338, %v946_v1  ;;  %v1469_v7 = vpop.f32.mrb[17].mxu1 }
 0x247   : > { %v949_v8 = vpop.f32.mrb[18].mxu1 }
 0x248   : > { %v953_v9 = vsel %vm420_vm2, %v952_v5, -inf  ;;  %v1470_v10 = vpop.f32.mrb[19].mxu1 }
 0x249   : > { %954 = vmax.xlane.f32.xlu1 %v953_v9 }
 0x2be   : > { %v577_v11 = vpop.xlane.xlu0 %576 }
 0x2bf   : > { %v578_v12 = vsub.f32 %v574_v48, %v577_v11 }
 0x2c1   : > { %v579_v13 = vmul.f32 1.442695, %v578_v12 }
 0x2c3   : > { %1540 = vpow2.f32 %v579_v13 }
 0x2c6   : > { %v703_v14 = vpop.xlane.xlu1 %702 }
 0x2c7   : > { %v704_v15 = vsub.f32 %v700_v54, %v703_v14 }
 0x2c9   : > { %v705_v17 = vmul.f32 1.442695, %v704_v15 }
 0x2cb   : > { %1542 = vpow2.f32 %v705_v17 }
 0x2cd   : > { %v1541_v18 = vpop.eup %1540 }
 0x2ce   : > { %v829_v19 = vpop.xlane.xlu0 %828  ;;  %v581_v20 = vsel %vm420_vm2, %v1541_v18, 0.0 }
 0x2cf   : > { %v830_v21 = vsub.f32 %v826_v60, %v829_v19  ;;  %582 = vadd.xlane.f32.xlu0 %v581_v20 }
 0x2d1   : > { %v831_v22 = vmul.f32 1.442695, %v830_v21 }
 0x2d3   : > { %1544 = vpow2.f32 %v831_v22 }
 0x2d5   : > { %v1543_v23 = vpop.eup %1542 }
 0x2d6   : > { %v955_v24 = vpop.xlane.xlu1 %954  ;;  %v707_v25 = vsel %vm420_vm2, %v1543_v23, 0.0 }
 0x2d7   : > { %v956_v26 = vsub.f32 %v952_v5, %v955_v24  ;;  %708 = vadd.xlane.f32.xlu1 %v707_v25  ;;  %v1535_v25 = vld [vmem:[%s1802_s4 + $0x8] sm:$0xff]  }
 0x2d9   : > { %v957_v27 = vmul.f32 1.442695, %v956_v26  ;;  %v1538_v26 = vld [vmem:[%s1803_s5] sm:$0xff]  }
 0x2db   : > { %1546 = vpow2.f32 %v957_v27 }
 0x2dd   : > { %v1545_v28 = vpop.eup %1544 }
 0x2de   : > { %v833_v29 = vsel %vm420_vm2, %v1545_v28, 0.0 }
 0x2df   : > { %834 = vadd.xlane.f32.xlu0 %v833_v29 }
 0x2e5   : > { %v1547_v30 = vpop.eup %1546 }
 0x2e6   : > { %v959_v32 = vsel %vm420_vm2, %v1547_v30, 0.0 }
 0x2e7   : > { %960 = vadd.xlane.f32.xlu1 %v959_v32 }
 0x35c   : > { %v583_v36 = vpop.xlane.xlu0 %582 }
 0x35d   : > { %1548 = vrcp.f32 %v583_v36 }
 0x364   : > { %v709_v37 = vpop.xlane.xlu1 %708 }
 0x365   : > { %1550 = vrcp.f32 %v709_v37 }
 0x367   : > { %v1549_v38 = vpop.eup %1548 }
 0x368   : > { %v585_v39 = vmul.f32 %v1549_v38, %v1541_v18 }
 0x36a   : > { %v586_v40 = vpack.c.bf16 %v585_v39, %v585_v39 }
 0x36c   : > { %v835_v41 = vpop.xlane.xlu0 %834  ;;  %v591_v42 = vsel %vm420_vm2, %v586_v40, 0 }
 0x36d   : > { %1552 = vrcp.f32 %v835_v41  ;;  %1436 = vmatpush3.bf16.xpose.msra.mxu0 %v591_v42 }
 0x36e   : > { %1447 = vmatprep.subr.bf16.mxu0 %v1580_v16 }
 0x36f   : > { %v1551_v44 = vpop.eup %1550 }
 0x370   : > { %v711_v46 = vmul.f32 %v1551_v44, %v1543_v23 }
 0x372   : > { %v712_v47 = vpack.c.bf16 %v711_v46, %v711_v46 }
 0x374   : > { %1438 = vmatmul.mubr.msk.bf16.vlgmr.msra.gmra.mrb[8].mxu0 %vm420_vm2, %v509_v45  ;;  %v961_v48 = vpop.xlane.xlu1 %960  ;;  %v717_v49 = vsel %vm420_vm2, %v712_v47, 0 }
 0x375   : > { %1554 = vrcp.f32 %v961_v48  ;;  %1448 = vmatpush3.bf16.xpose.msra.mxu0 %v717_v49  ;;  %1449 = vmatprep.mubr.msk.bf16.mxu0 %vm1581_vm1, %v1580_v16 }
 0x376   : > { %1459 = vmatprep.subr.bf16.mxu0 %v1580_v16 }
 0x377   : > { %v1553_v50 = vpop.eup %1552 }
 0x378   : > { %v837_v52 = vmul.f32 %v1553_v50, %v1545_v28 }
 0x37a   : > { %v838_v54 = vpack.c.bf16 %v837_v52, %v837_v52 }
 0x37c   : > { %1450 = vmatmul.mubr.msk.bf16.vlgmr.msra.gmra.mrb[12].mxu0 %vm420_vm2, %v637_v53  ;;  %v843_v55 = vsel %vm420_vm2, %v838_v54, 0 }
 0x37d   : > { %1460 = vmatpush3.bf16.xpose.msra.mxu0 %v843_v55  ;;  %1461 = vmatprep.mubr.msk.bf16.mxu0 %vm1581_vm1, %v1580_v16  ;;  %v1539_v55 = vld [vmem:[%s1803_s5 + $0x8] sm:$0xff]  }
 0x37e   : > { %1471 = vmatprep.subr.bf16.mxu0 %v1580_v16 }
 0x37f   : > { %v1555_v56 = vpop.eup %1554 }
 0x380   : > { %v963_v58 = vmul.f32 %v1555_v56, %v1547_v30 }
 0x382   : > { %v964_v60 = vpack.c.bf16 %v963_v58, %v963_v58 }
 0x384   : > { %1462 = vmatmul.mubr.msk.bf16.vlgmr.msra.gmra.mrb[16].mxu0 %vm420_vm2, %v763_v59  ;;  %v969_v61 = vsel %vm420_vm2, %v964_v60, 0 }
 0x385   : > { %1472 = vmatpush3.bf16.xpose.msra.mxu0 %v969_v61  ;;  %1473 = vmatprep.mubr.msk.bf16.mxu0 %vm1581_vm1, %v1580_v16 }
 0x38c   : > { %1474 = vmatmul.mubr.msk.bf16.vlgmr.msra.gmra.mrb[20].mxu0 %vm420_vm2, %v889_v63 }
 0x38d   : > { %1497 = vmatprep.mubr.msk.bf16.mxu0 %vm1164_vm4, %v1538_v26 }
 0x447   : > { %v627_v1 = vpop.f32.mrb[8].mxu0 }
 0x448   : > { %v1439_v5 = vpop.f32.mrb[9].mxu0  ;;  %v1742_v10 = vadd.f32 %v627_v1, %v1653_v2 }
 0x449   : > { %v630_v7 = vpop.f32.mrb[10].mxu0 }
 0x44a   : > { %v1440_v8 = vpop.f32.mrb[11].mxu0 }
 0x44f   : > { %v753_v9 = vpop.f32.mrb[12].mxu0 }
 0x450   : > { %v1745_v16 = vadd.f32 %v753_v9, %v1655_v3  ;;  %v1451_v11 = vpop.f32.mrb[13].mxu0 }
 0x451   : > { %v756_v12 = vpop.f32.mrb[14].mxu0 }
 0x452   : > { %v1023_v13 = vpack.c.bf16 %v1745_v16, %v1742_v10  ;;  %v1452_v14 = vpop.f32.mrb[15].mxu0 }
 0x454   : > { %1477 = vmatprep.subr.bf16.mxu1 %v1023_v13 }
 0x455   : > { %1478 = vmatpush3.bf16.msra.mxu1 %v1023_v13 }
 0x457   : > { %v879_v15 = vpop.f32.mrb[16].mxu0 }
 0x458   : > { %v1463_v17 = vpop.f32.mrb[17].mxu0  ;;  %v1750_v21 = vadd.f32 %v879_v15, %v1657_v4  ;;  %v1536_v4 = vld [vmem:[%s1802_s4 + $0x10] sm:$0xff]  }
 0x459   : > { %v882_v18 = vpop.f32.mrb[18].mxu0 }
 0x45a   : > { %v1464_v19 = vpop.f32.mrb[19].mxu0 }
 0x45f   : > { %v1005_v20 = vpop.f32.mrb[20].mxu0 }
 0x460   : > { %v1753_v2 = vadd.f32 %v1005_v20, %v1661_v6  ;;  %v1475_v3 = vpop.f32.mrb[21].mxu0  ;;  %v1537_v6 = vld [vmem:[%s1802_s4 + $0x18] sm:$0xff]  }
 0x461   : > { %v1008_v22 = vpop.f32.mrb[22].mxu0 }
 0x462   : > { %v1024_v23 = vpack.c.bf16 %v1753_v2, %v1750_v21  ;;  %v1476_v24 = vpop.f32.mrb[23].mxu0 }
 0x464   : > { %1479 = vmatprep.subr.bf16.mxu1 %v1024_v23 }
 0x465   : > { %1480 = vmatpush3.bf16.msra.mxu1 %v1024_v23 }
 0x468   : > { %1482 = vmatmul.mubr.msk.bf16.vlgmr.msra.gmra.mrb[20].mxu1 %vm342_vm0, %v1535_v25 }
 0x469   : > { %1485 = vmatprep.mubr.msk.bf16.mxu1 %vm342_vm0, %v1536_v4 }
 0x470   : > { %1486 = vmatmul.mubr.msk.bf16.gmra.mrb[24].mxu1 %vm342_vm0, %v1537_v6 }
 0x53b   : > { %v1483_v27 = vpop.f32.mrb[20].mxu1 }
 0x53c   : > { %v1132_v28 = vmul.f32 0.2, %v1483_v27  ;;  %v1091_v29 = vpop.f32.mrb[21].mxu1  ;;  %vm1124_vm5 = vcmp.ge.f32.partialorder %v1483_v27, 0.0 }
 0x53d   : > { %v1130_v30 = vmul.f32 0.2, %v1091_v29  ;;  %v1484_v31 = vpop.f32.mrb[22].mxu1  ;;  %vm1122_vm6 = vcmp.ge.f32.partialorder %v1091_v29, 0.0 }
 0x53e   : > { %vm1125_vm7 = vcmp.ge.f32.partialorder %v1484_v31, 0.0  ;;  %v1133_v32 = vmul.f32 0.2, %v1484_v31  ;;  %v1094_v33 = vpop.f32.mrb[23].mxu1  ;;  %v1140_v35 = vsel %vm1124_vm5, %v1483_v27, %v1132_v28 }
 0x53f   : > { %vm1123_vm8 = vcmp.ge.f32.partialorder %v1094_v33, 0.0  ;;  %v1131_v34 = vmul.f32 0.2, %v1094_v33  ;;  %v1138_v37 = vsel %vm1122_vm6, %v1091_v29, %v1130_v30 }
 0x540   : > { %v1141_v36 = vsel %vm1125_vm7, %v1484_v31, %v1133_v32 }
 0x541   : > { %v1139_v38 = vsel %vm1123_vm8, %v1094_v33, %v1131_v34  ;;  %v1151_v39 = vpack.c.bf16 %v1141_v36, %v1140_v35 }
 0x542   : > { %v1150_v40 = vpack.c.bf16 %v1139_v38, %v1138_v37 }
 0x543   : > { %v1487_v41 = vpop.f32.mrb[24].mxu1 }
 0x544   : > { %v1136_v42 = vmul.f32 0.2, %v1487_v41  ;;  %v1107_v43 = vpop.f32.mrb[25].mxu1  ;;  %1489 = vmatprep.subr.bf16.mxu0 %v1150_v40  ;;  %vm1128_vm9 = vcmp.ge.f32.partialorder %v1487_v41, 0.0 }
 0x545   : > { %v1134_v44 = vmul.f32 0.2, %v1107_v43  ;;  %v1488_v45 = vpop.f32.mrb[26].mxu1  ;;  %1490 = vmatpush3.bf16.msra.mxu0 %v1150_v40  ;;  %vm1126_vm10 = vcmp.ge.f32.partialorder %v1107_v43, 0.0 }
 0x546   : > { %vm1129_vm11 = vcmp.ge.f32.partialorder %v1488_v45, 0.0  ;;  %v1137_v46 = vmul.f32 0.2, %v1488_v45  ;;  %v1110_v47 = vpop.f32.mrb[27].mxu1  ;;  %1491 = vmatprep.subr.bf16.mxu0 %v1151_v39  ;;  %v1144_v49 = vsel %vm1128_vm9, %v1487_v41, %v1136_v42 }
 0x547   : > { %vm1127_vm12 = vcmp.ge.f32.partialorder %v1110_v47, 0.0  ;;  %v1135_v48 = vmul.f32 0.2, %v1110_v47  ;;  %v1142_v51 = vsel %vm1126_vm10, %v1107_v43, %v1134_v44 }
 0x548   : > { %v1145_v50 = vsel %vm1129_vm11, %v1488_v45, %v1137_v46 }
 0x549   : > { %v1143_v52 = vsel %vm1127_vm12, %v1110_v47, %v1135_v48  ;;  %1492 = vmatpush3.bf16.msra.mxu0 %v1151_v39  ;;  %v1153_v53 = vpack.c.bf16 %v1145_v50, %v1144_v49 }
 0x54a   : > { %v1152_v54 = vpack.c.bf16 %v1143_v52, %v1142_v51 }
 0x54c   : > { %1493 = vmatprep.subr.bf16.mxu0 %v1152_v54 }
 0x54d   : > { %1494 = vmatpush3.bf16.msra.mxu0 %v1152_v54 }
 0x54e   : > { %1495 = vmatprep.subr.bf16.mxu0 %v1153_v53 }
 0x551   : > { %1496 = vmatpush3.bf16.msra.mxu0 %v1153_v53 }
 0x554   : > { %1498 = vmatmul.mubr.msk.bf16.vlgmr.msra.gmra.mrb[24].mxu0 %vm1164_vm4, %v1539_v55 }
 0x627   : > { %v1499_v56 = vpop.f32.mrb[24].mxu0 }
 0x628   : > { %v1222_v57 = vadd.f32 %v1499_v56, %v1750_v21  ;;  %v1205_v58 = vpop.f32.mrb[25].mxu0 }
 0x629   : > { %v1220_v59 = vadd.f32 %v1205_v58, %v1742_v10  ;;  %v1500_v60 = vpop.f32.mrb[26].mxu0 }
 0x62a   : > { %1226 = vst.msk [vmem:[%s302_s14 + $0x10] sm:$0xff] %vm420_vm2, %v1222_v57  ;;  %v1223_v61 = vadd.f32 %v1500_v60, %v1753_v2  ;;  %v1208_v62 = vpop.f32.mrb[27].mxu0 }
 0x62b   : > { %1224 = vst.msk [vmem:[%s302_s14] sm:$0xff] %vm420_vm2, %v1220_v59  ;;  %v1221_v63 = vadd.f32 %v1208_v62, %v1745_v16 }
 0x62c   : > { %1227 = vst.msk [vmem:[%s302_s14 + $0x18] sm:$0xff] %vm420_vm2, %v1223_v61 }
 0x62d   : > { %1225 = vst.msk [vmem:[%s302_s14 + $0x8] sm:$0xff] %vm420_vm2, %v1221_v63 }
 0x62e PF: > { %s16_s23 = sadd.s32 1, %s1578_s23   ;;  %s1805_s21 = smov %s1574_s22 }
 0x62f   : > { %p13_p5 = scmp.ge.s32.totalorder %s16_s23, 4   ;;  %s1806_s22 = smov %s1808_s24 }
 0x631   :  { %15 = sbr.rel (!%p13_p5) target bundleno = 2 (0x2), region = 81 }

// kernel: model_forward.14
= control target key start
LH: loop header
LB: loop body
LE: loop exit
PB: predicated region body
PF: predicated region fallthrough
CT: control target
= control target key end

     0   :  { %s1002_s18 = smov 0   ;;  %s1004_s19 = smov 0   ;;  %s1100_s0 = inlined_call_operand.vmem [shape: f32[2,32,16], index: 0, kind: input, shape index: {}]   ;;  %s1101_s1 = inlined_call_operand.vmem [shape: f32[2,32,8], index: 1, kind: input, shape index: {}]   ;;  %s1102_s2 = inlined_call_operand.vmem [shape: bf16[32,32], index: 2, kind: input, shape index: {}]   ;;  %s1103_s3 = inlined_call_operand.vmem [shape: bf16[64,32], index: 3, kind: input, shape index: {}]   ;;  %s1104_s4 = inlined_call_operand.vmem [shape: bf16[32,32], index: 4, kind: input, shape index: {}]   ;;  %s1105_s5 = inlined_call_operand.vmem [shape: f32[2,32,16], index: 5, kind: output, shape index: {}]  }
   0x1   :  { %s1006_s20 = smov 0  }
   0x2 LB: > { %s27_s21 = sadd.s32 1, %s964_s19  ;;  %p801_p0 = scmp.ge.s32.totalorder %s968_s20, 1  ;;  %s968_s20 = sphi %s1006_s20, %s15_s20   ;;  %s964_s19 = sphi %s1004_s19, %s1107_s19   ;;  %s960_s18 = sphi %s1002_s18, %s1106_s18  }
   0x3   : > { %p29_p1 = scmp.ge.s32.totalorder %s27_s21, 2  ;;  %p216_p2 = scmp.lt.s32.totalorder %s968_s20, 3 }
   0x5   : > { %s1109_s21 = smov (%p29_p1, %s27_s21), 0  ;;  %p217_p3 = pnand %p801_p0, %p216_p2 }
   0x6   : > { %p255_p4 = scmp.lt.s32.totalorder (!%p217_p3), %s960_s18, 1  ;;  %v930_v0 = vld [vmem:[%s1103_s3 + $0x10] sm:$0xff] (!%p217_p3)   ;;  %vm315_vm0 = vcmask (!%p217_p3), 261120   ;;  %v934_v1 = vld [vmem:[%s1103_s3] sm:$0xff] (!%p217_p3)   ;;  %v931_v13 = vld [vmem:[%s1103_s3 + $0x18] sm:$0xff] (!%p217_p3)   ;;  %v970_v18 = vmov (!%p217_p3), 0.0  }
   0x7   : > { %220 = sbr.rel (%p217_p3) target bundleno = 1126 (0x466), region = 40  ;;  %860 = vmatprep.mubr.msk.bf16.mxu1 (!%p217_p3), %vm315_vm0, %v930_v0  ;;  %856 = vmatprep.mubr.msk.bf16.mxu0 (!%p217_p3), %vm315_vm0, %v934_v1  ;;  %v935_v14 = vld [vmem:[%s1103_s3 + $0x8] sm:$0xff] (!%p217_p3)   ;;  %v932_v15 = vld [vmem:[%s1102_s2] sm:$0xff] (!%p217_p3)   ;;  %vm971_vm1 = vmmov (!%p217_p3), 0   ;;  %vm397_vm2 = vcmask (!%p217_p3), 64512   ;;  %vm697_vm3 = vcmask (!%p217_p3), 130048  }
   0x8   : > { %v933_v17 = vld [vmem:[%s1102_s2 + $0x8] sm:$0xff] (!%p217_p3)  }
   0xe   : > { %s1111_s18 = smov (!%p255_p4, %s960_s18), 1 }
   0xf   : > { %s1024_s24 = sshll.u32 %s1111_s18, 5 }
  0x10   : > { %s267_s29 = scalar_lea.vmem %s1101_s1, %s1024_s24  ;;  %s262_s7 = scalar_lea.vmem %s1100_s0, %s1024_s24 }
  0x11   : > { %v289_v2 = vld [vmem:[%s267_s29] sm:$0xff]  ;;  %v290_v3 = vld [vmem:[%s267_s29 + $0x8] sm:$0xff]  ;;  %v291_v4 = vld [vmem:[%s267_s29 + $0x10] sm:$0xff]  ;;  %s275_s26 = scalar_lea.vmem %s1105_s5, %s1024_s24 }
  0x12   : > { %v293_v5 = vpack.c.bf16 %v290_v3, %v289_v2  ;;  %v292_v6 = vld [vmem:[%s267_s29 + $0x18] sm:$0xff]  ;;  %v402_v8 = vld [vmem:[%s262_s7] sm:$0xff]  ;;  %v403_v9 = vld [vmem:[%s262_s7 + $0x8] sm:$0xff] }
  0x13   : > { %v294_v7 = vpack.c.bf16 %v292_v6, %v291_v4  ;;  %v1038_v10 = vpack.c.bf16 %v403_v9, %v402_v8  ;;  %v404_v11 = vld [vmem:[%s262_s7 + $0x10] sm:$0xff]  ;;  %v405_v12 = vld [vmem:[%s262_s7 + $0x18] sm:$0xff]  ;;  %v936_v3 = vld [vmem:[%s1104_s4] sm:$0xff]  }
  0x14   : > { %894 = vmatprep.subr.bf16.mxu1 %v293_v5  ;;  %852 = vmatprep.subr.bf16.mxu0 %v293_v5  ;;  %v1050_v16 = vpack.c.bf16 %v405_v12, %v404_v11 }
  0x15   : > { %896 = vmatpush3.bf16.msra.mxu1 %v293_v5  ;;  %853 = vmatpush3.bf16.msra.mxu0 %v293_v5  ;;  %v937_v5 = vld [vmem:[%s1104_s4 + $0x8] sm:$0xff]  }
  0x16   : > { %895 = vmatprep.subr.bf16.mxu1 %v294_v7  ;;  %854 = vmatprep.subr.bf16.mxu0 %v294_v7 }
  0x19   : > { %897 = vmatpush3.bf16.msra.mxu1 %v294_v7  ;;  %855 = vmatpush3.bf16.msra.mxu0 %v294_v7 }
  0x1a   : > { %864 = vmatprep.subr.bf16.mxu1 %v1038_v10 }
  0x1c   : > { %861 = vmatmul.mubr.msk.bf16.vlgmr.msra.gmra.mrb[0].mxu1 %vm315_vm0, %v931_v13  ;;  %857 = vmatmul.mubr.msk.bf16.vlgmr.msra.gmra.mrb[0].mxu0 %vm315_vm0, %v935_v14 }
  0x1d   : > { %865 = vmatpush3.bf16.msra.mxu1 %v1038_v10  ;;  %868 = vmatprep.mubr.msk.bf16.mxu1 %vm315_vm0, %v932_v15 }
  0x1e   : > { %866 = vmatprep.subr.bf16.mxu1 %v1050_v16 }
  0x21   : > { %867 = vmatpush3.bf16.msra.mxu1 %v1050_v16 }
  0x22   : > { %872 = vmatprep.subr.bf16.mxu1 %v970_v18 }
  0x24   : > { %869 = vmatmul.mubr.msk.bf16.vlgmr.msra.gmra.mrb[4].mxu1 %vm315_vm0, %v933_v17 }
  0x25   : > { %876 = vmatprep.mubr.msk.bf16.mxu1 %vm971_vm1, %v970_v18 }
  0xef   : > { %v862_v19 = vpop.f32.mrb[0].mxu1  ;;  %v858_v20 = vpop.f32.mrb[0].mxu0 }
  0xf0   : > { %v378_v21 = vpop.f32.mrb[1].mxu1  ;;  %v362_v22 = vpop.f32.mrb[1].mxu0 }
  0xf1   : > { %v863_v23 = vpop.f32.mrb[2].mxu1  ;;  %v859_v24 = vpop.f32.mrb[2].mxu0 }
  0xf2   : > { %v396_v25 = vpack.c.bf16 %v863_v23, %v862_v19  ;;  %v381_v26 = vpop.f32.mrb[3].mxu1  ;;  %v394_v27 = vpack.c.bf16 %v859_v24, %v858_v20  ;;  %v365_v28 = vpop.f32.mrb[3].mxu0 }
  0xf3   : > { %v395_v29 = vpack.c.bf16 %v381_v26, %v378_v21  ;;  %v393_v30 = vpack.c.bf16 %v365_v28, %v362_v22 }
  0xf4   : > { %401 = vst.msk [vmem:[#allocation2 + $0x18] sm:$0xff] %vm397_vm2, %v396_v25  ;;  %399 = vst.msk [vmem:[#allocation2 + $0x8] sm:$0xff] %vm397_vm2, %v394_v27 }
  0xf5   : > { %400 = vst.msk [vmem:[#allocation2 + $0x10] sm:$0xff] %vm397_vm2, %v395_v29  ;;  %398 = vst.msk [vmem:[#allocation2] sm:$0xff] %vm397_vm2, %v393_v30 }
  0xf7   : > { %v870_v31 = vpop.f32.mrb[4].mxu1 }
  0xf8   : > { %v463_v32 = vpop.f32.mrb[5].mxu1 }
  0xf9   : > { %v871_v33 = vpop.f32.mrb[6].mxu1 }
  0xfa   : > { %v483_v34 = vpack.c.bf16 %v871_v33, %v870_v31  ;;  %v466_v35 = vpop.f32.mrb[7].mxu1 }
  0xfb   : > { %v482_v36 = vpack.c.bf16 %v466_v35, %v463_v32  ;;  %v479_v39 = vld [vmem:[#allocation2 + $0x8] sm:$0xff]  ;;  %v481_v4 = vld [vmem:[#allocation2 + $0x18] sm:$0xff] }
  0xfc   : > { %v480_v37 = vld [vmem:[#allocation2 + $0x10] sm:$0xff]  ;;  %v478_v38 = vld [vmem:[#allocation2] sm:$0xff] }
  0xfd   : > { %882 = vmatprep.mubr.msk.bf16.mxu0 %vm397_vm2, %v480_v37  ;;  %484 = vxpose.xlu0.c.b16.start [1/2] (short) (narrow) %v482_v36, 16 }
  0xfe   : > { %873 = vmatpush3.bf16.msra.mxu1 %v478_v38 }
  0xff   : > { %874 = vmatprep.subr.bf16.mxu1 %v970_v18 }
 0x101   : > { %485 = vxpose.xlu0.c.b16.end [2/2] (short) (narrow) %v483_v34, 16 }
 0x102   : > { %875 = vmatpush3.bf16.msra.mxu1 %v479_v39 }
 0x163   : > { %v492_v40 = vpop.trf.xlu0 }
 0x164   : > { %877 = vmatmul.mubr.msk.bf16.vlgmr.msra.gmra.mrb[8].mxu1 %vm315_vm0, %v492_v40 }
 0x237   : > { %v537_v41 = vpop.f32.mrb[8].mxu1 }
 0x238   : > { %v544_v42 = vmul.f32 0.17677669, %v537_v41  ;;  %v878_v43 = vpop.f32.mrb[9].mxu1 }
 0x239   : > { %v540_v44 = vpop.f32.mrb[10].mxu1 }
 0x23a   : > { %v545_v45 = vmul.f32 0.17677669, %v540_v44  ;;  %v879_v46 = vpop.f32.mrb[11].mxu1  ;;  %v547_v47 = vsel %vm397_vm2, %v544_v42, -inf }
 0x23b   : > { %548 = vmax.xlane.f32.xlu1 %v547_v47 }
 0x23c   : > { %v550_v48 = vsel %vm397_vm2, %v545_v45, -inf }
 0x23f   : > { %551 = vmax.xlane.f32.xlu1 %v550_v48 }
 0x2c8   : > { %v549_v49 = vpop.xlane.xlu1 %548 }
 0x2c9   : > { %v553_v50 = vsub.f32 %v544_v42, %v549_v49 }
 0x2cb   : > { %v555_v51 = vmul.f32 1.442695, %v553_v50 }
 0x2cc   : > { %v552_v52 = vpop.xlane.xlu1 %551 }
 0x2cd   : > { %938 = vpow2.f32 %v555_v51  ;;  %v554_v53 = vsub.f32 %v545_v45, %v552_v52 }
 0x2cf   : > { %v557_v54 = vmul.f32 1.442695, %v554_v53 }
 0x2d1   : > { %940 = vpow2.f32 %v557_v54 }
 0x2d7   : > { %v939_v55 = vpop.eup %938 }
 0x2d8   : > { %v559_v56 = vsel %vm397_vm2, %v939_v55, 0.0 }
 0x2d9   : > { %560 = vadd.xlane.f32.xlu0 %v559_v56 }
 0x2db   : > { %v941_v57 = vpop.eup %940 }
 0x2dc   : > { %v562_v58 = vsel %vm397_vm2, %v941_v57, 0.0 }
 0x2dd   : > { %563 = vadd.xlane.f32.xlu1 %v562_v58 }
 0x366   : > { %v561_v59 = vpop.xlane.xlu0 %560 }
 0x367   : > { %942 = vrcp.f32 %v561_v59 }
 0x36a   : > { %v564_v60 = vpop.xlane.xlu1 %563 }
 0x36b   : > { %944 = vrcp.f32 %v564_v60 }
 0x371   : > { %v943_v61 = vpop.eup %942 }
 0x372   : > { %v567_v63 = vmul.f32 %v943_v61, %v939_v55 }
 0x375   : > { %v945_v62 = vpop.eup %944 }
 0x376   : > { %v568_v0 = vmul.f32 %v945_v62, %v941_v57 }
 0x378   : > { %v569_v1 = vpack.c.bf16 %v568_v0, %v567_v63 }
 0x37a   : > { %902 = vmatprep.subr.msk.bf16.mxu0 %vm397_vm2, %v569_v1  ;;  %v577_v2 = vsel %vm397_vm2, %v569_v1, 0 }
 0x37b   : > { %881 = vmatpush3.bf16.xpose.msra.mxu0 %v577_v2 }
 0x37c   : > { %886 = vmatprep.subr.bf16.mxu0 %v1038_v10 }
 0x382   : > { %883 = vmatmul.mubr.msk.bf16.vlgmr.msra.gmra.mrb[4].mxu0 %vm397_vm2, %v481_v4 }
 0x383   : > { %887 = vmatpush3.bf16.msra.mxu0 %v1038_v10  ;;  %890 = vmatprep.mubr.msk.bf16.mxu0 %vm315_vm0, %v936_v3 }
 0x384   : > { %888 = vmatprep.subr.bf16.mxu0 %v1050_v16 }
 0x387   : > { %889 = vmatpush3.bf16.msra.mxu0 %v1050_v16 }
 0x38e   : > { %891 = vmatmul.mubr.msk.bf16.vlgmr.msra.gmra.mrb[4].mxu0 %vm315_vm0, %v937_v5 }
 0x461   : > { %v892_v6 = vpop.f32.mrb[4].mxu0 }
 0x462   : > { %700 = vst.msk [vmem:[%s275_s26 + $0x10] sm:$0xff] %vm697_vm3, %v892_v6  ;;  %v682_v7 = vpop.f32.mrb[5].mxu0 }
 0x463   : > { %698 = vst.msk [vmem:[%s275_s26] sm:$0xff] %vm697_vm3, %v682_v7  ;;  %v893_v8 = vpop.f32.mrb[6].mxu0 }
 0x464   : > { %701 = vst.msk [vmem:[%s275_s26 + $0x18] sm:$0xff] %vm697_vm3, %v893_v8  ;;  %v685_v9 = vpop.f32.mrb[7].mxu0 }
 0x465   : > { %699 = vst.msk [vmem:[%s275_s26 + $0x8] sm:$0xff] %vm697_vm3, %v685_v9 }
 0x466 PF: > { %s15_s20 = sadd.s32 1, %s968_s20   ;;  %s1106_s18 = smov %s964_s19 }
 0x467   : > { %p12_p5 = scmp.ge.s32.totalorder %s15_s20, 4   ;;  %s1107_s19 = smov %s1109_s21 }
 0x469   :  { %14 = sbr.rel (!%p12_p5) target bundleno = 2 (0x2), region = 77 }

// kernel: model_forward.13
= control target key start
LH: loop header
LB: loop body
LE: loop exit
PB: predicated region body
PF: predicated region fallthrough
CT: control target
= control target key end

     0   :  { %s985_s18 = smov 0   ;;  %s987_s19 = smov 0   ;;  %s1081_s0 = inlined_call_operand.vmem [shape: f32[2,32,8], index: 0, kind: input, shape index: {}]   ;;  %s1082_s1 = inlined_call_operand.vmem [shape: f32[2,32,16], index: 1, kind: input, shape index: {}]   ;;  %s1083_s2 = inlined_call_operand.vmem [shape: bf16[32,32], index: 2, kind: input, shape index: {}]   ;;  %s1084_s3 = inlined_call_operand.vmem [shape: bf16[64,32], index: 3, kind: input, shape index: {}]   ;;  %s1085_s4 = inlined_call_operand.vmem [shape: bf16[32,32], index: 4, kind: input, shape index: {}]   ;;  %s1086_s5 = inlined_call_operand.vmem [shape: f32[2,32,8], index: 5, kind: output, shape index: {}]  }
   0x1   :  { %s989_s20 = smov 0  }
   0x2 LB: > { %s27_s21 = sadd.s32 1, %s947_s19  ;;  %p788_p0 = scmp.ge.s32.totalorder %s951_s20, 1  ;;  %s951_s20 = sphi %s989_s20, %s15_s20   ;;  %s947_s19 = sphi %s987_s19, %s1088_s19   ;;  %s943_s18 = sphi %s985_s18, %s1087_s18  }
   0x3   : > { %p29_p1 = scmp.ge.s32.totalorder %s27_s21, 2  ;;  %p216_p2 = scmp.lt.s32.totalorder %s951_s20, 3 }
   0x5   : > { %s1090_s21 = smov (%p29_p1, %s27_s21), 0  ;;  %p217_p3 = pnand %p788_p0, %p216_p2 }
   0x6   : > { %p255_p4 = scmp.lt.s32.totalorder (!%p217_p3), %s943_s18, 1  ;;  %v917_v0 = vld [vmem:[%s1084_s3 + $0x10] sm:$0xff] (!%p217_p3)   ;;  %vm315_vm0 = vcmask (!%p217_p3), 261120   ;;  %v921_v1 = vld [vmem:[%s1084_s3] sm:$0xff] (!%p217_p3)   ;;  %v918_v13 = vld [vmem:[%s1084_s3 + $0x18] sm:$0xff] (!%p217_p3)   ;;  %v953_v18 = vmov (!%p217_p3), 0.0  }
   0x7   : > { %220 = sbr.rel (%p217_p3) target bundleno = 1122 (0x462), region = 40  ;;  %847 = vmatprep.mubr.msk.bf16.mxu1 (!%p217_p3), %vm315_vm0, %v917_v0  ;;  %843 = vmatprep.mubr.msk.bf16.mxu0 (!%p217_p3), %vm315_vm0, %v921_v1  ;;  %v922_v14 = vld [vmem:[%s1084_s3 + $0x8] sm:$0xff] (!%p217_p3)   ;;  %v919_v15 = vld [vmem:[%s1083_s2] sm:$0xff] (!%p217_p3)   ;;  %vm954_vm1 = vmmov (!%p217_p3), 0   ;;  %vm397_vm2 = vcmask (!%p217_p3), 130048   ;;  %vm684_vm3 = vcmask (!%p217_p3), 64512  }
   0x8   : > { %v920_v17 = vld [vmem:[%s1083_s2 + $0x8] sm:$0xff] (!%p217_p3)   ;;  %v923_v57 = vld [vmem:[%s1085_s4] sm:$0xff] (!%p217_p3)  }
   0x9   : > { %v924_v59 = vld [vmem:[%s1085_s4 + $0x8] sm:$0xff] (!%p217_p3)  }
   0xe   : > { %s1092_s18 = smov (!%p255_p4, %s943_s18), 1 }
   0xf   : > { %s1007_s24 = sshll.u32 %s1092_s18, 5 }
  0x10   : > { %s267_s29 = scalar_lea.vmem %s1082_s1, %s1007_s24  ;;  %s262_s7 = scalar_lea.vmem %s1081_s0, %s1007_s24 }
  0x11   : > { %v289_v2 = vld [vmem:[%s267_s29] sm:$0xff]  ;;  %v290_v3 = vld [vmem:[%s267_s29 + $0x8] sm:$0xff]  ;;  %v291_v4 = vld [vmem:[%s267_s29 + $0x10] sm:$0xff]  ;;  %s275_s26 = scalar_lea.vmem %s1086_s5, %s1007_s24 }
  0x12   : > { %v293_v5 = vpack.c.bf16 %v290_v3, %v289_v2  ;;  %v292_v6 = vld [vmem:[%s267_s29 + $0x18] sm:$0xff]  ;;  %v402_v8 = vld [vmem:[%s262_s7] sm:$0xff]  ;;  %v403_v9 = vld [vmem:[%s262_s7 + $0x8] sm:$0xff] }
  0x13   : > { %v294_v7 = vpack.c.bf16 %v292_v6, %v291_v4  ;;  %v1021_v10 = vpack.c.bf16 %v403_v9, %v402_v8  ;;  %v404_v11 = vld [vmem:[%s262_s7 + $0x10] sm:$0xff]  ;;  %v405_v12 = vld [vmem:[%s262_s7 + $0x18] sm:$0xff] }
  0x14   : > { %881 = vmatprep.subr.bf16.mxu1 %v293_v5  ;;  %839 = vmatprep.subr.bf16.mxu0 %v293_v5  ;;  %v1033_v16 = vpack.c.bf16 %v405_v12, %v404_v11 }
  0x15   : > { %883 = vmatpush3.bf16.msra.mxu1 %v293_v5  ;;  %840 = vmatpush3.bf16.msra.mxu0 %v293_v5 }
  0x16   : > { %882 = vmatprep.subr.bf16.mxu1 %v294_v7  ;;  %841 = vmatprep.subr.bf16.mxu0 %v294_v7 }
  0x19   : > { %884 = vmatpush3.bf16.msra.mxu1 %v294_v7  ;;  %842 = vmatpush3.bf16.msra.mxu0 %v294_v7 }
  0x1a   : > { %851 = vmatprep.subr.bf16.mxu1 %v1021_v10 }
  0x1c   : > { %848 = vmatmul.mubr.msk.bf16.vlgmr.msra.gmra.mrb[0].mxu1 %vm315_vm0, %v918_v13  ;;  %844 = vmatmul.mubr.msk.bf16.vlgmr.msra.gmra.mrb[0].mxu0 %vm315_vm0, %v922_v14 }
  0x1d   : > { %852 = vmatpush3.bf16.msra.mxu1 %v1021_v10  ;;  %855 = vmatprep.mubr.msk.bf16.mxu1 %vm315_vm0, %v919_v15 }
  0x1e   : > { %853 = vmatprep.subr.bf16.mxu1 %v1033_v16 }
  0x21   : > { %854 = vmatpush3.bf16.msra.mxu1 %v1033_v16 }
  0x22   : > { %859 = vmatprep.subr.bf16.mxu1 %v953_v18 }
  0x24   : > { %856 = vmatmul.mubr.msk.bf16.vlgmr.msra.gmra.mrb[4].mxu1 %vm315_vm0, %v920_v17 }
  0x25   : > { %863 = vmatprep.mubr.msk.bf16.mxu1 %vm954_vm1, %v953_v18 }
  0xef   : > { %v849_v19 = vpop.f32.mrb[0].mxu1  ;;  %v845_v20 = vpop.f32.mrb[0].mxu0 }
  0xf0   : > { %v378_v21 = vpop.f32.mrb[1].mxu1  ;;  %v362_v22 = vpop.f32.mrb[1].mxu0 }
  0xf1   : > { %v850_v23 = vpop.f32.mrb[2].mxu1  ;;  %v846_v24 = vpop.f32.mrb[2].mxu0 }
  0xf2   : > { %v396_v25 = vpack.c.bf16 %v850_v23, %v849_v19  ;;  %v381_v26 = vpop.f32.mrb[3].mxu1  ;;  %v394_v27 = vpack.c.bf16 %v846_v24, %v845_v20  ;;  %v365_v28 = vpop.f32.mrb[3].mxu0 }
  0xf3   : > { %v395_v29 = vpack.c.bf16 %v381_v26, %v378_v21  ;;  %v393_v30 = vpack.c.bf16 %v365_v28, %v362_v22 }
  0xf4   : > { %401 = vst.msk [vmem:[#allocation2 + $0x18] sm:$0xff] %vm397_vm2, %v396_v25  ;;  %399 = vst.msk [vmem:[#allocation2 + $0x8] sm:$0xff] %vm397_vm2, %v394_v27 }
  0xf5   : > { %400 = vst.msk [vmem:[#allocation2 + $0x10] sm:$0xff] %vm397_vm2, %v395_v29  ;;  %398 = vst.msk [vmem:[#allocation2] sm:$0xff] %vm397_vm2, %v393_v30 }
  0xf7   : > { %v857_v31 = vpop.f32.mrb[4].mxu1 }
  0xf8   : > { %v463_v32 = vpop.f32.mrb[5].mxu1 }
  0xf9   : > { %v858_v33 = vpop.f32.mrb[6].mxu1 }
  0xfa   : > { %v483_v34 = vpack.c.bf16 %v858_v33, %v857_v31  ;;  %v466_v35 = vpop.f32.mrb[7].mxu1 }
  0xfb   : > { %v482_v36 = vpack.c.bf16 %v466_v35, %v463_v32  ;;  %v479_v39 = vld [vmem:[#allocation2 + $0x8] sm:$0xff]  ;;  %v481_v58 = vld [vmem:[#allocation2 + $0x18] sm:$0xff] }
  0xfc   : > { %v480_v37 = vld [vmem:[#allocation2 + $0x10] sm:$0xff]  ;;  %v478_v38 = vld [vmem:[#allocation2] sm:$0xff] }
  0xfd   : > { %869 = vmatprep.mubr.msk.bf16.mxu0 %vm397_vm2, %v480_v37  ;;  %484 = vxpose.xlu0.c.b16.start [1/2] (short) (narrow) %v482_v36, 16 }
  0xfe   : > { %860 = vmatpush3.bf16.msra.mxu1 %v478_v38 }
  0xff   : > { %861 = vmatprep.subr.bf16.mxu1 %v953_v18 }
 0x101   : > { %485 = vxpose.xlu0.c.b16.end [2/2] (short) (narrow) %v483_v34, 16 }
 0x102   : > { %862 = vmatpush3.bf16.msra.mxu1 %v479_v39 }
 0x163   : > { %v492_v40 = vpop.trf.xlu0 }
 0x164   : > { %864 = vmatmul.mubr.msk.bf16.vlgmr.msra.gmra.mrb[8].mxu1 %vm315_vm0, %v492_v40 }
 0x237   : > { %v537_v41 = vpop.f32.mrb[8].mxu1 }
 0x238   : > { %v543_v42 = vmul.f32 0.17677669, %v537_v41  ;;  %v865_v43 = vpop.f32.mrb[9].mxu1 }
 0x239   : > { %v540_v44 = vpop.f32.mrb[10].mxu1 }
 0x23a   : > { %v866_v45 = vpop.f32.mrb[11].mxu1  ;;  %v545_v46 = vsel %vm397_vm2, %v543_v42, -inf }
 0x23b   : > { %546 = vmax.xlane.f32.xlu1 %v545_v46 }
 0x2c8   : > { %v547_v47 = vpop.xlane.xlu1 %546 }
 0x2c9   : > { %v548_v48 = vsub.f32 %v543_v42, %v547_v47 }
 0x2cb   : > { %v549_v49 = vmul.f32 1.442695, %v548_v48 }
 0x2cd   : > { %925 = vpow2.f32 %v549_v49 }
 0x2d7   : > { %v926_v50 = vpop.eup %925 }
 0x2d8   : > { %v551_v51 = vsel %vm397_vm2, %v926_v50, 0.0 }
 0x2d9   : > { %552 = vadd.xlane.f32.xlu1 %v551_v51 }
 0x366   : > { %v553_v52 = vpop.xlane.xlu1 %552 }
 0x367   : > { %927 = vrcp.f32 %v553_v52 }
 0x371   : > { %v928_v53 = vpop.eup %927 }
 0x372   : > { %v555_v54 = vmul.f32 %v928_v53, %v926_v50 }
 0x374   : > { %v556_v55 = vpack.c.bf16 %v555_v54, %v555_v54 }
 0x376   : > { %889 = vmatprep.subr.msk.bf16.mxu0 %vm397_vm2, %v556_v55  ;;  %v564_v56 = vsel %vm397_vm2, %v556_v55, 0 }
 0x377   : > { %868 = vmatpush3.bf16.xpose.msra.mxu0 %v564_v56 }
 0x378   : > { %873 = vmatprep.subr.bf16.mxu0 %v1021_v10 }
 0x37e   : > { %870 = vmatmul.mubr.msk.bf16.vlgmr.msra.gmra.mrb[4].mxu0 %vm397_vm2, %v481_v58 }
 0x37f   : > { %874 = vmatpush3.bf16.msra.mxu0 %v1021_v10  ;;  %877 = vmatprep.mubr.msk.bf16.mxu0 %vm315_vm0, %v923_v57 }
 0x380   : > { %875 = vmatprep.subr.bf16.mxu0 %v1033_v16 }
 0x383   : > { %876 = vmatpush3.bf16.msra.mxu0 %v1033_v16 }
 0x38a   : > { %878 = vmatmul.mubr.msk.bf16.vlgmr.msra.gmra.mrb[4].mxu0 %vm315_vm0, %v924_v59 }
 0x45d   : > { %v879_v60 = vpop.f32.mrb[4].mxu0 }
 0x45e   : > { %687 = vst.msk [vmem:[%s275_s26 + $0x10] sm:$0xff] %vm684_vm3, %v879_v60  ;;  %v669_v61 = vpop.f32.mrb[5].mxu0 }
 0x45f   : > { %685 = vst.msk [vmem:[%s275_s26] sm:$0xff] %vm684_vm3, %v669_v61  ;;  %v880_v62 = vpop.f32.mrb[6].mxu0 }
 0x460   : > { %688 = vst.msk [vmem:[%s275_s26 + $0x18] sm:$0xff] %vm684_vm3, %v880_v62  ;;  %v672_v63 = vpop.f32.mrb[7].mxu0 }
 0x461   : > { %686 = vst.msk [vmem:[%s275_s26 + $0x8] sm:$0xff] %vm684_vm3, %v672_v63 }
 0x462 PF: > { %s15_s20 = sadd.s32 1, %s951_s20   ;;  %s1087_s18 = smov %s947_s19 }
 0x463   : > { %p12_p5 = scmp.ge.s32.totalorder %s15_s20, 4   ;;  %s1088_s19 = smov %s1090_s21 }
 0x465   :  { %14 = sbr.rel (!%p12_p5) target bundleno = 2 (0x2), region = 77 }

// kernel: squeeze.3
= control target key start
LH: loop header
LB: loop body
LE: loop exit
PB: predicated region body
PF: predicated region fallthrough
CT: control target
= control target key end

     0   :  { %s66_s8 = smov 119   ;;  %vm7_vm0 = vcmask 23552   ;;  %s67_s11 = smov 122   ;;  %s117_s0 = inlined_call_operand.vmem [shape: f32[2,24], index: 0, kind: input, shape index: {}]   ;;  %s118_s1 = inlined_call_operand.vmem [shape: f32[2,8,3], index: 1, kind: output, shape index: {}]  }
   0x1   :  { %v4_v0 = vld [vmem:[%s117_s0] sm:$0x3]  ;;  %s65_s0 = smov 125   ;;  %s68_s12 = smov 116  }
   0x2   :  { %5 = vst [vmem:[#allocation0] sm:$0x3] %v4_v0  ;;  %s69_s13 = smov 113   ;;  %s70_s14 = smov 110  }
   0x3   :  { %s71_s15 = smov 107  }
   0x9   :  { %v9_v1 = vld [vmem:[#allocation0] sm:$0x3]  }
   0xa   :  { %v21_v2 = vld [vmem:[#allocation0] sm:$0x3]   ;;  %10 = vrot.lane.b32.xlu0 %v9_v1, %s65_s0 }
   0xb   :  { %22 = vrot.lane.b32.xlu1 %v21_v2, %s66_s8  ;;  %v15_v3 = vld [vmem:[#allocation0] sm:$0x3]  }
   0xc   :  { %v27_v4 = vld [vmem:[#allocation0] sm:$0x3]  }
   0xd   :  { %v6_v5 = vld [vmem:[#allocation0] sm:$0x3]  }
   0xe   :  { %8 = vst.msk [vmem:[%s118_s1] ss:$8 sm:$0x3] %vm7_vm0, %v6_v5   ;;  %16 = vrot.lane.b32.xlu0 %v15_v3, %s67_s11  ;;  %v33_v6 = vld [vmem:[#allocation0] sm:$0x3]  }
   0xf   :  { %28 = vrot.lane.b32.xlu1 %v27_v4, %s68_s12  ;;  %v39_v7 = vld [vmem:[#allocation0] sm:$0x3]  }
  0x10   :  { %v45_v8 = vld [vmem:[#allocation0] sm:$0x3]  }
  0x12   :  { %34 = vrot.lane.b32.xlu0 %v33_v6, %s69_s13 }
  0x13   :  { %40 = vrot.lane.b32.xlu1 %v39_v7, %s70_s14 }
  0x16   :  { %46 = vrot.lane.b32.xlu0 %v45_v8, %s71_s15 }
  0x7c   :  { %v11_v9 = vpop.permute.xlu0 %10  }
  0x7d   :  { %v23_v10 = vpop.permute.xlu1 %22   ;;  %51 = vst.msk [vmem:[%s118_s1 + $0x1] ss:$8 sm:$0x3] %vm7_vm0, %v11_v9  }
  0x7e   :  { %53 = vst.msk [vmem:[%s118_s1 + $0x3] ss:$8 sm:$0x3] %vm7_vm0, %v23_v10  }
  0x80   :  { %v17_v11 = vpop.permute.xlu0 %16  }
  0x81   :  { %v29_v12 = vpop.permute.xlu1 %28   ;;  %52 = vst.msk [vmem:[%s118_s1 + $0x2] ss:$8 sm:$0x3] %vm7_vm0, %v17_v11  }
  0x82   :  { %54 = vst.msk [vmem:[%s118_s1 + $0x4] ss:$8 sm:$0x3] %vm7_vm0, %v29_v12  }
  0x84   :  { %v35_v13 = vpop.permute.xlu0 %34  }
  0x85   :  { %v41_v14 = vpop.permute.xlu1 %40   ;;  %55 = vst.msk [vmem:[%s118_s1 + $0x5] ss:$8 sm:$0x3] %vm7_vm0, %v35_v13  }
  0x86   :  { %56 = vst.msk [vmem:[%s118_s1 + $0x6] ss:$8 sm:$0x3] %vm7_vm0, %v41_v14  }
  0x88   :  { %v47_v15 = vpop.permute.xlu0 %46  }
  0x89   :  { %57 = vst.msk [vmem:[%s118_s1 + $0x7] ss:$8 sm:$0x3] %vm7_vm0, %v47_v15  }

// kernel: model_forward.15
= control target key start
LH: loop header
LB: loop body
LE: loop exit
PB: predicated region body
PF: predicated region fallthrough
CT: control target
= control target key end

     0   :  { %s1340_s30 = smov 0   ;;  %s1342_s10 = smov 0   ;;  %s1506_s0 = inlined_call_operand.vmem [shape: f32[2,32,16], index: 0, kind: input, shape index: {}]   ;;  %s1507_s1 = inlined_call_operand.vmem [shape: f32[2,32,16], index: 1, kind: input, shape index: {}]   ;;  %s1508_s2 = inlined_call_operand.vmem [shape: bf16[32,32], index: 2, kind: input, shape index: {}]   ;;  %s1509_s3 = inlined_call_operand.vmem [shape: bf16[64,32], index: 3, kind: input, shape index: {}]   ;;  %s1510_s4 = inlined_call_operand.vmem [shape: bf16[32,32], index: 4, kind: input, shape index: {}]   ;;  %s1511_s5 = inlined_call_operand.vmem [shape: bf16[32,32], index: 5, kind: input, shape index: {}]   ;;  %s1512_s6 = inlined_call_operand.vmem [shape: f32[32,1], index: 6, kind: input, shape index: {}]   ;;  %s1513_s7 = inlined_call_operand.vmem [shape: bf16[24,32], index: 7, kind: input, shape index: {}]   ;;  %s1514_s8 = inlined_call_operand.vmem [shape: f32[24,1], index: 8, kind: input, shape index: {}]   ;;  %s1515_s9 = inlined_call_operand.vmem [shape: f32[2,24,1], index: 9, kind: output, shape index: {}]  }
   0x1   :  { %s1344_s11 = smov 0  }
   0x2 LB: > { %s31_s12 = sadd.s32 1, %s1281_s10  ;;  %p1086_p0 = scmp.ge.s32.totalorder %s1285_s11, 1  ;;  %s1285_s11 = sphi %s1344_s11, %s19_s11   ;;  %s1281_s10 = sphi %s1342_s10, %s1517_s10   ;;  %s1277_s30 = sphi %s1340_s30, %s1516_s30  }
   0x3   : > { %p33_p1 = scmp.ge.s32.totalorder %s31_s12, 2  ;;  %p314_p2 = scmp.lt.s32.totalorder %s1285_s11, 3 }
   0x5   : > { %s1519_s12 = smov (%p33_p1, %s31_s12), 0  ;;  %p315_p3 = pnand %p1086_p0, %p314_p2 }
   0x6   : > { %p358_p4 = scmp.lt.s32.totalorder (!%p315_p3), %s1277_s30, 1  ;;  %vm415_vm0 = vcmask (!%p315_p3), 261120   ;;  %v1243_v0 = vld [vmem:[%s1508_s2] sm:$0xff] (!%p315_p3)   ;;  %v1244_v14 = vld [vmem:[%s1508_s2 + $0x8] sm:$0xff] (!%p315_p3)   ;;  %v1287_v16 = vmov (!%p315_p3), 0.0   ;;  %vm1288_vm1 = vmmov (!%p315_p3), 0  }
   0x7   : > { %318 = sbr.rel (%p315_p3) target bundleno = 1730 (0x6c2), region = 56  ;;  %1167 = vmatprep.mubr.msk.bf16.mxu1 (!%p315_p3), %vm415_vm0, %v1243_v0  ;;  %v1245_v1 = vld [vmem:[%s1509_s3] sm:$0xff] (!%p315_p3)   ;;  %v1246_v15 = vld [vmem:[%s1509_s3 + $0x8] sm:$0xff] (!%p315_p3)   ;;  %vm497_vm2 = vcmask (!%p315_p3), 130048   ;;  %v1247_v32 = vld [vmem:[%s1509_s3 + $0x10] sm:$0xff] (!%p315_p3)   ;;  %vm502_vm3 = vcmask (!%p315_p3), 7168  }
   0x8   : > { %1155 = vmatprep.mubr.msk.bf16.mxu0 (!%p315_p3), %vm415_vm0, %v1245_v1  ;;  %v1248_v33 = vld [vmem:[%s1509_s3 + $0x18] sm:$0xff] (!%p315_p3)  }
   0xe   : > { %s1521_s30 = smov (!%p358_p4, %s1277_s30), 1 }
   0xf   : > { %s1121_s17 = sshll.u32 %s1521_s30, 5 }
  0x10   : > { %s365_s20 = scalar_lea.vmem %s1506_s0, %s1121_s17  ;;  %s370_s23 = scalar_lea.vmem %s1507_s1, %s1121_s17 }
  0x11   : > { %v510_v2 = vld [vmem:[%s365_s20] sm:$0xff]  ;;  %v511_v3 = vld [vmem:[%s365_s20 + $0x8] sm:$0xff]  ;;  %v512_v4 = vld [vmem:[%s365_s20 + $0x10] sm:$0xff] }
  0x12   : > { %v1375_v5 = vpack.c.bf16 %v511_v3, %v510_v2  ;;  %v513_v6 = vld [vmem:[%s365_s20 + $0x18] sm:$0xff]  ;;  %v389_v7 = vld [vmem:[%s370_s23] sm:$0xff]  ;;  %v390_v8 = vld [vmem:[%s370_s23 + $0x8] sm:$0xff] }
  0x13   : > { %v1377_v9 = vpack.c.bf16 %v513_v6, %v512_v4  ;;  %v393_v10 = vpack.c.bf16 %v390_v8, %v389_v7  ;;  %v391_v11 = vld [vmem:[%s370_s23 + $0x10] sm:$0xff]  ;;  %v392_v12 = vld [vmem:[%s370_s23 + $0x18] sm:$0xff]  ;;  %v1249_v3 = vld [vmem:[%s1510_s4] sm:$0xff]   ;;  %v1289_v7 = vmov -inf   ;;  %s1214_s23 = smul.u32 24, %s1521_s30 }
  0x14   : > { %1163 = vmatprep.subr.bf16.mxu1 %v1375_v5  ;;  %v394_v13 = vpack.c.bf16 %v392_v12, %v391_v11  ;;  %v1250_v6 = vld [vmem:[%s1510_s4 + $0x8] sm:$0xff]   ;;  %503 = vst.msk [vmem:[#allocation3] sm:$0xff] %vm502_vm3, %v1289_v7  ;;  %504 = vst.msk [vmem:[#allocation3 + $0x8] sm:$0xff] %vm502_vm3, %v1289_v7 }
  0x15   : > { %1164 = vmatpush3.bf16.msra.mxu1 %v1375_v5  ;;  %1151 = vmatprep.subr.bf16.mxu0 %v393_v10  ;;  %505 = vst.msk [vmem:[#allocation3 + $0x10] sm:$0xff] %vm502_vm3, %v1289_v7  ;;  %506 = vst.msk [vmem:[#allocation3 + $0x18] sm:$0xff] %vm502_vm3, %v1289_v7  ;;  %s1455_s28 = scalar_lea.vmem %s1515_s9, %s1214_s23 }
  0x16   : > { %1165 = vmatprep.subr.bf16.mxu1 %v1377_v9  ;;  %1152 = vmatpush3.bf16.msra.mxu0 %v393_v10  ;;  %509 = vst.msk [vmem:[%s1455_s28 + $0x10] sm:$0xff] %vm502_vm3, %v1287_v16  ;;  %507 = vst.msk [vmem:[%s1455_s28] sm:$0xff] %vm502_vm3, %v1287_v16 }
  0x17   : > { %1153 = vmatprep.subr.bf16.mxu0 %v394_v13  ;;  %508 = vst.msk [vmem:[%s1455_s28 + $0x8] sm:$0xff] %vm502_vm3, %v1287_v16 }
  0x19   : > { %1166 = vmatpush3.bf16.msra.mxu1 %v1377_v9 }
  0x1a   : > { %1154 = vmatpush3.bf16.msra.mxu0 %v394_v13  ;;  %1171 = vmatprep.subr.bf16.mxu1 %v1287_v16 }
  0x1c   : > { %1168 = vmatmul.mubr.msk.bf16.vlgmr.msra.gmra.mrb[0].mxu1 %vm415_vm0, %v1244_v14 }
  0x1d   : > { %1156 = vmatmul.mubr.msk.bf16.vlgmr.msra.gmra.mrb[0].mxu0 %vm415_vm0, %v1246_v15  ;;  %1175 = vmatprep.mubr.msk.bf16.mxu1 %vm1288_vm1, %v1287_v16 }
  0x1e   : > { %1159 = vmatprep.mubr.msk.bf16.mxu0 %vm415_vm0, %v1247_v32  ;;  %v819_v32 = vld [vmem:[#allocation3 + $0x10] sm:$0xff] }
  0x25   : > { %1160 = vmatmul.mubr.msk.bf16.gmra.mrb[4].mxu0 %vm415_vm0, %v1248_v33 }
  0xef   : > { %v1169_v17 = vpop.f32.mrb[0].mxu1 }
  0xf0   : > { %v571_v18 = vpop.f32.mrb[1].mxu1  ;;  %v1157_v19 = vpop.f32.mrb[0].mxu0 }
  0xf1   : > { %v1170_v20 = vpop.f32.mrb[2].mxu1  ;;  %v462_v21 = vpop.f32.mrb[1].mxu0 }
  0xf2   : > { %v591_v22 = vpack.c.bf16 %v1170_v20, %v1169_v17  ;;  %v574_v23 = vpop.f32.mrb[3].mxu1  ;;  %v1158_v24 = vpop.f32.mrb[2].mxu0 }
  0xf3   : > { %v590_v25 = vpack.c.bf16 %v574_v23, %v571_v18  ;;  %v494_v26 = vpack.c.bf16 %v1158_v24, %v1157_v19  ;;  %v465_v27 = vpop.f32.mrb[3].mxu0  ;;  %v817_v23 = vld [vmem:[#allocation3] sm:$0xff]  ;;  %v820_v24 = vld [vmem:[#allocation3 + $0x18] sm:$0xff] }
  0xf4   : > { %v493_v28 = vpack.c.bf16 %v465_v27, %v462_v21 }
  0xf5   : > { %592 = vxpose.xlu0.c.b16.start [1/2] (short) (narrow) %v590_v25, 16  ;;  %499 = vst.msk [vmem:[#allocation2 + $0x8] sm:$0xff] %vm497_vm2, %v494_v26 }
  0xf6   : > { %498 = vst.msk [vmem:[#allocation2] sm:$0xff] %vm497_vm2, %v493_v28 }
  0xf8   : > { %v1161_v52 = vpop.f32.mrb[4].mxu0 }
  0xf9   : > { %593 = vxpose.xlu0.c.b16.end [2/2] (short) (narrow) %v591_v22, 16  ;;  %v478_v53 = vpop.f32.mrb[5].mxu0  ;;  %v1251_v22 = vld [vmem:[%s1511_s5] sm:$0xff]  }
  0xfa   : > { %v1162_v54 = vpop.f32.mrb[6].mxu0 }
  0xfb   : > { %v496_v55 = vpack.c.bf16 %v1162_v54, %v1161_v52  ;;  %v481_v56 = vpop.f32.mrb[7].mxu0 }
  0xfc   : > { %v587_v30 = vld [vmem:[#allocation2 + $0x8] sm:$0xff]  ;;  %v495_v57 = vpack.c.bf16 %v481_v56, %v478_v53 }
  0xfd   : > { %v586_v29 = vld [vmem:[#allocation2] sm:$0xff]  ;;  %501 = vst.msk [vmem:[#allocation2 + $0x18] sm:$0xff] %vm497_vm2, %v496_v55 }
  0xfe   : > { %1172 = vmatpush3.bf16.msra.mxu1 %v586_v29  ;;  %500 = vst.msk [vmem:[#allocation2 + $0x10] sm:$0xff] %vm497_vm2, %v495_v57  ;;  %v818_v29 = vld [vmem:[#allocation3 + $0x8] sm:$0xff] }
  0xff   : > { %1173 = vmatprep.subr.bf16.mxu1 %v1287_v16 }
 0x102   : > { %1174 = vmatpush3.bf16.msra.mxu1 %v587_v30 }
 0x104   : > { %v589_v4 = vld [vmem:[#allocation2 + $0x18] sm:$0xff] }
 0x105   : > { %v588_v58 = vld [vmem:[#allocation2 + $0x10] sm:$0xff] }
 0x106   : > { %1181 = vmatprep.mubr.msk.bf16.mxu0 %vm497_vm2, %v588_v58 }
 0x15b   : > { %v600_v31 = vpop.trf.xlu0 }
 0x15c   : > { %1176 = vmatmul.mubr.msk.bf16.vlgmr.msra.gmra.mrb[4].mxu1 %vm415_vm0, %v600_v31 }
 0x15d   : > { %1197 = vmatprep.mubr.msk.bf16.mxu1 %vm415_vm0, %v1251_v22 }
 0x22f   : > { %v645_v34 = vpop.f32.mrb[4].mxu1 }
 0x230   : > { %v652_v35 = vmul.f32 0.17677669, %v645_v34  ;;  %v1177_v36 = vpop.f32.mrb[5].mxu1 }
 0x231   : > { %v648_v37 = vpop.f32.mrb[6].mxu1 }
 0x232   : > { %v653_v38 = vmul.f32 0.17677669, %v648_v37  ;;  %v1178_v39 = vpop.f32.mrb[7].mxu1  ;;  %v655_v40 = vsel %vm497_vm2, %v652_v35, -inf }
 0x233   : > { %656 = vmax.xlane.f32.xlu1 %v655_v40 }
 0x234   : > { %v658_v41 = vsel %vm497_vm2, %v653_v38, -inf }
 0x237   : > { %659 = vmax.xlane.f32.xlu1 %v658_v41  ;;  %v1252_v41 = vld [vmem:[%s1511_s5 + $0x8] sm:$0xff]  }
 0x2c0   : > { %v657_v42 = vpop.xlane.xlu1 %656 }
 0x2c1   : > { %v661_v43 = vsub.f32 %v652_v35, %v657_v42  ;;  %v1253_v42 = vld [vmem:[%s1513_s7] sm:$0xff]  }
 0x2c3   : > { %v663_v44 = vmul.f32 1.442695, %v661_v43  ;;  %v857_v43 = vld [vmem:[%s1512_s6 + $0x10] sm:$0xff] }
 0x2c4   : > { %v660_v45 = vpop.xlane.xlu1 %659 }
 0x2c5   : > { %1255 = vpow2.f32 %v663_v44  ;;  %v662_v46 = vsub.f32 %v653_v38, %v660_v45  ;;  %v855_v44 = vld [vmem:[%s1512_s6] sm:$0xff] }
 0x2c7   : > { %v665_v47 = vmul.f32 1.442695, %v662_v46  ;;  %v858_v46 = vld [vmem:[%s1512_s6 + $0x18] sm:$0xff] }
 0x2c9   : > { %1257 = vpow2.f32 %v665_v47 }
 0x2cf   : > { %v1256_v48 = vpop.eup %1255 }
 0x2d0   : > { %v667_v49 = vsel %vm497_vm2, %v1256_v48, 0.0 }
 0x2d1   : > { %668 = vadd.xlane.f32.xlu0 %v667_v49  ;;  %v856_v49 = vld [vmem:[%s1512_s6 + $0x8] sm:$0xff] }
 0x2d3   : > { %v1258_v50 = vpop.eup %1257 }
 0x2d4   : > { %v670_v51 = vsel %vm497_vm2, %v1258_v50, 0.0 }
 0x2d5   : > { %671 = vadd.xlane.f32.xlu1 %v670_v51 }
 0x35e   : > { %v669_v59 = vpop.xlane.xlu0 %668 }
 0x35f   : > { %1259 = vrcp.f32 %v669_v59 }
 0x362   : > { %v672_v60 = vpop.xlane.xlu1 %671 }
 0x363   : > { %1261 = vrcp.f32 %v672_v60  ;;  %v1254_v60 = vld [vmem:[%s1513_s7 + $0x8] ss:$0 sps:$4 sm:$0xff]  }
 0x369   : > { %v1260_v61 = vpop.eup %1259 }
 0x36a   : > { %v675_v63 = vmul.f32 %v1260_v61, %v1256_v48  ;;  %v935_v61 = vld [vmem:[%s1514_s8 + $0x10] sm:$0xff] }
 0x36d   : > { %v1262_v62 = vpop.eup %1261 }
 0x36e   : > { %v676_v0 = vmul.f32 %v1262_v62, %v1258_v50  ;;  %v933_v62 = vld [vmem:[%s1514_s8] sm:$0xff] }
 0x370   : > { %v677_v1 = vpack.c.bf16 %v676_v0, %v675_v63 }
 0x372   : > { %1213 = vmatprep.subr.msk.bf16.mxu0 %vm497_vm2, %v677_v1  ;;  %v685_v2 = vsel %vm497_vm2, %v677_v1, 0 }
 0x373   : > { %1180 = vmatpush3.bf16.xpose.msra.mxu0 %v685_v2  ;;  %v934_v2 = vld [vmem:[%s1514_s8 + $0x8] sm:$0xff] }
 0x374   : > { %1185 = vmatprep.subr.bf16.mxu0 %v1375_v5 }
 0x37a   : > { %1182 = vmatmul.mubr.msk.bf16.vlgmr.msra.gmra.mrb[8].mxu0 %vm497_vm2, %v589_v4 }
 0x37b   : > { %1186 = vmatpush3.bf16.msra.mxu0 %v1375_v5  ;;  %1189 = vmatprep.mubr.msk.bf16.mxu0 %vm415_vm0, %v1249_v3  ;;  %v806_v5 = vlaneseq }
 0x37c   : > { %1187 = vmatprep.subr.bf16.mxu0 %v1377_v9 }
 0x37d   : > { %v807_v8 = vand.u32 127, %v806_v5 }
 0x37f   : > { %1188 = vmatpush3.bf16.msra.mxu0 %v1377_v9  ;;  %vm810_vm4 = vcmp.lt.s32.totalorder %v807_v8, 16 }
 0x386   : > { %1190 = vmatmul.mubr.msk.bf16.vlgmr.msra.gmra.mrb[8].mxu0 %vm415_vm0, %v1250_v6 }
 0x459   : > { %v1191_v9 = vpop.f32.mrb[8].mxu0 }
 0x45a   : > { %v790_v10 = vpop.f32.mrb[9].mxu0  ;;  %v815_v20 = vsel %vm810_vm4, %v1191_v9, -inf }
 0x45b   : > { %v813_v11 = vsel %vm810_vm4, %v790_v10, -inf  ;;  %v1192_v12 = vpop.f32.mrb[10].mxu0  ;;  %v827_v21 = vsel %vm497_vm2, %v815_v20, -inf }
 0x45c   : > { %v816_v13 = vsel %vm810_vm4, %v1192_v12, -inf  ;;  %v793_v14 = vpop.f32.mrb[11].mxu0  ;;  %v821_v15 = vsel %vm497_vm2, %v813_v11, -inf }
 0x45d   : > { %v814_v17 = vsel %vm810_vm4, %v793_v14, -inf  ;;  %822 = vmax.xlane.f32.xlu1 %v821_v15  ;;  %v830_v18 = vsel %vm497_vm2, %v816_v13, -inf }
 0x45e   : > { %831 = vmax.xlane.f32.xlu0 %v830_v18  ;;  %v824_v19 = vsel %vm497_vm2, %v814_v17, -inf }
 0x461   : > { %825 = vmax.xlane.f32.xlu1 %v824_v19 }
 0x465   : > { %828 = vmax.xlane.f32.xlu1 %v827_v21 }
 0x4ea   : > { %v823_v25 = vpop.xlane.xlu1 %822 }
 0x4eb   : > { %v833_v26 = vmax.f32 %v817_v23, %v823_v25  ;;  %v832_v27 = vpop.xlane.xlu0 %831 }
 0x4ec   : > { %v836_v28 = vmax.f32 %v820_v24, %v832_v27 }
 0x4ed   : > { %838 = vst.msk [vmem:[#allocation3] sm:$0xff] %vm502_vm3, %v833_v26 }
 0x4ee   : > { %841 = vst.msk [vmem:[#allocation3 + $0x18] sm:$0xff] %vm502_vm3, %v836_v28  ;;  %v826_v30 = vpop.xlane.xlu1 %825 }
 0x4ef   : > { %v834_v31 = vmax.f32 %v818_v29, %v826_v30 }
 0x4f1   : > { %839 = vst.msk [vmem:[#allocation3 + $0x8] sm:$0xff] %vm502_vm3, %v834_v31 }
 0x4f2   : > { %v829_v33 = vpop.xlane.xlu1 %828 }
 0x4f3   : > { %v835_v34 = vmax.f32 %v819_v32, %v829_v33 }
 0x4f4   : > { %v845_v35 = vld [vmem:[#allocation3] sm:$0xff] }
 0x4f5   : > { %840 = vst.msk [vmem:[#allocation3 + $0x10] sm:$0xff] %vm502_vm3, %v835_v34  ;;  %v848_v39 = vld [vmem:[#allocation3 + $0x18] sm:$0xff] }
 0x4f8   : > { %v846_v36 = vld [vmem:[#allocation3 + $0x8] sm:$0xff] }
 0x4f9   : > { %v853_v37 = vpack.c.bf16 %v846_v36, %v845_v35 }
 0x4fb   : > { %1193 = vmatprep.subr.bf16.mxu1 %v853_v37 }
 0x4fc   : > { %1194 = vmatpush3.bf16.msra.mxu1 %v853_v37  ;;  %v847_v38 = vld [vmem:[#allocation3 + $0x10] sm:$0xff] }
 0x4fd   : > { %v854_v40 = vpack.c.bf16 %v848_v39, %v847_v38 }
 0x4ff   : > { %1195 = vmatprep.subr.bf16.mxu1 %v854_v40 }
 0x500   : > { %1196 = vmatpush3.bf16.msra.mxu1 %v854_v40 }
 0x503   : > { %1198 = vmatmul.mubr.msk.bf16.vlgmr.msra.gmra.mrb[8].mxu1 %vm415_vm0, %v1252_v41 }
 0x504   : > { %1205 = vmatprep.mubr.msk.bf16.mxu1 %vm415_vm0, %v1253_v42 }
 0x5d6   : > { %v1199_v45 = vpop.f32.mrb[8].mxu1 }
 0x5d7   : > { %v918_v47 = vadd.f32 %v1199_v45, %v857_v43  ;;  %v909_v48 = vpop.f32.mrb[9].mxu1 }
 0x5d8   : > { %v910_v16 = vadd.f32 %v909_v48, %v855_v44  ;;  %v1200_v50 = vpop.f32.mrb[10].mxu1 }
 0x5d9   : > { %v921_v51 = vadd.f32 %v1200_v50, %v858_v46  ;;  %v912_v52 = vpop.f32.mrb[11].mxu1  ;;  %v926_v54 = vmax.f32 %v918_v47, 0.0 }
 0x5da   : > { %v913_v53 = vadd.f32 %v912_v52, %v856_v49  ;;  %v924_v56 = vmax.f32 %v910_v16, 0.0 }
 0x5db   : > { %v927_v55 = vmax.f32 %v921_v51, 0.0 }
 0x5dc   : > { %v925_v57 = vmax.f32 %v913_v53, 0.0 }
 0x5dd   : > { %v932_v58 = vpack.c.bf16 %v927_v55, %v926_v54 }
 0x5de   : > { %v931_v59 = vpack.c.bf16 %v925_v57, %v924_v56 }
 0x5e0   : > { %1201 = vmatprep.subr.bf16.mxu1 %v931_v59 }
 0x5e1   : > { %1202 = vmatpush3.bf16.msra.mxu1 %v931_v59 }
 0x5e2   : > { %1203 = vmatprep.subr.bf16.mxu1 %v932_v58 }
 0x5e5   : > { %1204 = vmatpush3.bf16.msra.mxu1 %v932_v58 }
 0x5e8   : > { %1206 = vmatmul.mubr.msk.bf16.vlgmr.msra.gmra.mrb[12].mxu1 %vm415_vm0, %v1254_v60 }
 0x6bb   : > { %v1207_v63 = vpop.f32.mrb[12].mxu1 }
 0x6bc   : > { %v993_v0 = vadd.f32 %v1207_v63, %v935_v61  ;;  %v984_v1 = vpop.f32.mrb[13].mxu1 }
 0x6bd   : > { %v985_v3 = vadd.f32 %v984_v1, %v933_v62  ;;  %v1208_v4 = vpop.f32.mrb[14].mxu1 }
 0x6be   : > { %1000 = vst.msk [vmem:[%s1455_s28 + $0x10] sm:$0xff] %vm502_vm3, %v993_v0  ;;  %v987_v6 = vpop.f32.mrb[15].mxu1 }
 0x6bf   : > { %998 = vst.msk [vmem:[%s1455_s28] sm:$0xff] %vm502_vm3, %v985_v3  ;;  %v988_v7 = vadd.f32 %v987_v6, %v934_v2 }
 0x6c1   : > { %999 = vst.msk [vmem:[%s1455_s28 + $0x8] sm:$0xff] %vm502_vm3, %v988_v7 }
 0x6c2 PF: > { %s19_s11 = sadd.s32 1, %s1285_s11   ;;  %s1516_s30 = smov %s1281_s10 }
 0x6c3   : > { %p16_p5 = scmp.ge.s32.totalorder %s19_s11, 4   ;;  %s1517_s10 = smov %s1519_s12 }
 0x6c5   :  { %18 = sbr.rel (!%p16_p5) target bundleno = 2 (0x2), region = 97 }

</bundles_post_ra>
